<compile_context>
chip_gen: v7x
topology: tpu7x:2x2x1
jax: 0.10.0
libtpu: 0.0.40
codegen_flags: <defaults>
</compile_context>

<pallas_src>
import math
import functools

import jax
import jax.numpy as jnp
from jax.experimental import pallas as pl
from jax.experimental.pallas import tpu as pltpu

_NEG_INF = -1.0e9      # additive-mask fill for padded key columns (exp -> 0)


def _round_up(x: int, m: int) -> int:
    return (x + m - 1) // m * m


# ----------------------------------------------------------------------------
# kernel
# ----------------------------------------------------------------------------
def _bert_out_attention_kernel(num_heads, head_dim,
                               h_ref, c_ref, m_ref,
                               wq_ref, bq_ref, wk_ref, bk_ref, wv_ref, bv_ref,
                               ctx_ref, scores_ref):
    h = h_ref[0]                      # (tq, H)      f32
    c = c_ref[0]                      # (Lk_pad, Cd) f32
    m = m_ref[0]                      # (1,  Lk_pad) f32 additive mask

    # Every MXU matmul runs with `mm_dtype` operands (bf16 by default) and f32
    # accumulation; elementwise / softmax math stays f32 (v5e has no bf16 VPU).
    mm_dtype = wq_ref.dtype
    h_mm = h.astype(mm_dtype)
    c_mm = c.astype(mm_dtype)

    q = jnp.dot(h_mm, wq_ref[...], preferred_element_type=jnp.float32) + bq_ref[...]
    k = jnp.dot(c_mm, wk_ref[...], preferred_element_type=jnp.float32) + bk_ref[...]
    v = jnp.dot(c_mm, wv_ref[...], preferred_element_type=jnp.float32) + bv_ref[...]

    tq = h.shape[0]
    lk = c.shape[0]

    # Fold 1/sqrt(head_dim) into q once (instead of scaling scores).
    q = q * (1.0 / math.sqrt(head_dim))

    # Head split via one reshape; all heads hit the MXU in a single batched
    # contraction, with operands cast to mm_dtype so QK^T / PV also use the
    # fast (bf16) MXU path.
    # TODO(synk): folding the head split into the projections (W as (in, nh, hd))
    # was considered but rejected: head_dim < 128 would lane-pad the weight
    # blocks and bloat their VMEM footprint.
    qh = q.astype(mm_dtype).reshape(tq, num_heads, head_dim)
    kh = k.astype(mm_dtype).reshape(lk, num_heads, head_dim)
    vh = v.astype(mm_dtype).reshape(lk, num_heads, head_dim)

    s = jnp.einsum('qhd,khd->hqk', qh, kh,
                   preferred_element_type=jnp.float32)        # (nh, tq, lk) f32
    s = s + m[None, :, :]                                      # mask added once
    scores_ref[0] = s.astype(scores_ref.dtype)                 # lane-dense store

    # Numerically stable softmax in f32; reciprocal goes to the idle EUP slot.
    s = s - jnp.max(s, axis=-1, keepdims=True)
    e = jnp.exp(s)
    denom = jnp.sum(e, axis=-1, keepdims=True)
    p = e * pl.reciprocal(denom, approx=True)
    # TODO(synk): attention-prob dropout is identity here (eval mode / p=0).

    ctx = jnp.einsum('hqk,khd->qhd', p.astype(mm_dtype), vh,
                     preferred_element_type=jnp.float32)       # (tq, nh, hd)
    ctx_ref[0] = ctx.reshape(tq, num_heads * head_dim).astype(ctx_ref.dtype)


# ----------------------------------------------------------------------------
# pallas_call wrapper
# ----------------------------------------------------------------------------
def bert_out_attention(hidden_states, context, attention_mask, params, num_heads,
                       *, q_tile=128, scores_dtype=jnp.float32, out_dtype=None,
                       vmem_limit_bytes=64 * 1024 * 1024):
    """Fused BertOutAttention forward. Returns (context_layer, attention_scores)."""
    B, Lq, H = hidden_states.shape
    Bc, Lk, Cd = context.shape
    assert Bc == B and H % num_heads == 0
    head_dim = H // num_heads
    if out_dtype is None:
        out_dtype = hidden_states.dtype

    wq, wk, wv = params['wq'], params['wk'], params['wv']
    bq, bk, bv = params['bq'], params['bk'], params['bv']

    # --- pad to TPU-friendly shapes ------------------------------------------
    # Lq: multiple of the query tile (>= 8 sublanes).  Lk: multiple of 128 so
    # the large scores writeback is a lane-dense unmasked vst on every chip.
    Lq_pad = _round_up(Lq, 8)
    tq = _round_up(min(q_tile, Lq_pad), 8)
    Lq_pad = _round_up(Lq_pad, tq)
    Lk_pad = _round_up(Lk, 128)

    if attention_mask is None:
        mask = jnp.zeros((B, 1, Lk), jnp.float32)
    else:
        # Accepts (B, Lk), (B, 1, Lk) or BERT-extended (B, 1, 1, Lk).
        mask = attention_mask.astype(jnp.float32).reshape(B, 1, Lk)

    h_p = hidden_states.astype(jnp.float32)
    c_p = context.astype(jnp.float32)
    if Lq_pad != Lq:
        h_p = jnp.pad(h_p, ((0, 0), (0, Lq_pad - Lq), (0, 0)))
    if Lk_pad != Lk:
        c_p = jnp.pad(c_p, ((0, 0), (0, Lk_pad - Lk), (0, 0)))
        mask = jnp.pad(mask, ((0, 0), (0, 0), (0, Lk_pad - Lk)),
                       constant_values=_NEG_INF)

    kernel = functools.partial(_bert_out_attention_kernel, num_heads, head_dim)
    grid = (B, Lq_pad // tq)

    # Advisory cost estimate so XLA can overlap the kernel with neighbours.
    w_item = jnp.dtype(wq.dtype).itemsize
    b_item = jnp.dtype(bq.dtype).itemsize
    flops = int(2 * B * (Lq_pad * H * H + 2 * Lk_pad * Cd * H
                         + 2 * Lq_pad * Lk_pad * H))
    transcendentals = int(B * num_heads * Lq_pad * Lk_pad)
    bytes_accessed = int(
        (h_p.size + c_p.size + mask.size) * 4
        + (wq.size + wk.size + wv.size) * w_item
        + (bq.size + bk.size + bv.size) * b_item
        + B * Lq_pad * H * jnp.dtype(out_dtype).itemsize
        + B * num_heads * Lq_pad * Lk_pad * jnp.dtype(scores_dtype).itemsize)
    cost = pl.CostEstimate(flops=flops, transcendentals=transcendentals,
                           bytes_accessed=bytes_accessed)

    def call(single_buffer_weights):
        if single_buffer_weights:
            # Weights / biases are grid-invariant: single-buffer them so they
            # don't pay a double-buffer in VMEM (matters at H=768 on v7x).
            def wspec(shape):
                return pl.BlockSpec(shape, lambda b, qi: (0,) * len(shape),
                                    pipeline_mode=pl.Buffered(1))
        else:
            def wspec(shape):
                return pl.BlockSpec(shape, lambda b, qi: (0,) * len(shape))

        out = pl.pallas_call(
            kernel,
            out_shape=(
                jax.ShapeDtypeStruct((B, Lq_pad, H), out_dtype),
                jax.ShapeDtypeStruct((B, num_heads, Lq_pad, Lk_pad), scores_dtype),
            ),
            grid=grid,
            in_specs=[
                pl.BlockSpec((1, tq, H), lambda b, qi: (b, qi, 0)),       # hidden
                pl.BlockSpec((1, Lk_pad, Cd), lambda b, qi: (b, 0, 0)),   # context
                pl.BlockSpec((1, 1, Lk_pad), lambda b, qi: (b, 0, 0)),    # mask
                wspec((H, H)),    # Wq
                wspec((1, H)),    # bq
                wspec((Cd, H)),   # Wk
                wspec((1, H)),    # bk
                wspec((Cd, H)),   # Wv
                wspec((1, H)),    # bv
            ],
            out_specs=(
                pl.BlockSpec((1, tq, H), lambda b, qi: (b, qi, 0)),
                pl.BlockSpec((1, num_heads, tq, Lk_pad),
                             lambda b, qi: (b, 0, qi, 0)),
            ),
            compiler_params=pltpu.CompilerParams(
                dimension_semantics=("parallel", "parallel"),  # B and Lq tiles
                vmem_limit_bytes=vmem_limit_bytes),
            cost_estimate=cost,
        )(h_p, c_p, mask, wq, bq, wk, bk, wv, bv)
        return jax.block_until_ready(out)

    try:
        ctx_p, scores_p = call(True)
    except Exception:
        # pipeline_mode=pl.Buffered(1) unsupported on this jax build:
        # fall back to default (double-buffered) weight blocks.
        ctx_p, scores_p = call(False)

    # Strip padding; returned scores are scaled + masked, exactly like PyTorch.
    return ctx_p[:, :Lq, :], scores_p[:, :, :Lq, :Lk]


# ----------------------------------------------------------------------------
# deterministic parameter init (same shapes as the module's nn.Linear layers)
# ----------------------------------------------------------------------------
def _linear(key, fan_in, fan_out, weight_dtype):
    kw, kb = jax.random.split(key)
    bound = 1.0 / math.sqrt(fan_in)
    w = jax.random.uniform(kw, (fan_in, fan_out), jnp.float32, -bound, bound)
    b = jax.random.uniform(kb, (1, fan_out), jnp.float32, -bound, bound)
    return w.astype(weight_dtype), b


def init_params(key, hidden, ctx_dim, weight_dtype=jnp.bfloat16):
    """Weights stored once in the MXU compute dtype (bf16); biases stay f32."""
    ks = jax.random.split(key, 3)
    wq, bq = _linear(ks[0], hidden, hidden, weight_dtype)
    wk, bk = _linear(ks[1], ctx_dim, hidden, weight_dtype)
    wv, bv = _linear(ks[2], ctx_dim, hidden, weight_dtype)
    return dict(wq=wq, bq=bq, wk=wk, bk=bk, wv=wv, bv=bv)


# ----------------------------------------------------------------------------
# main
# ----------------------------------------------------------------------------
if __name__ == "__main__":
    B = 2
    LQ = 8            # query (hidden_states) sequence length
    LK = 16           # key/value (context) sequence length
    HIDDEN = 32       # config.hidden_size
    CTX_DIM = 64      # cross-modal ctx_dim != hidden_size
    NUM_HEADS = 4     # config.num_attention_heads  -> head_dim = 8

    key = jax.random.PRNGKey(0)
    k_p, k_h, k_c = jax.random.split(key, 3)

    params = init_params(k_p, HIDDEN, CTX_DIM)            # bf16 weights, f32 biases
    hidden_states = jax.random.normal(k_h, (B, LQ, HIDDEN), jnp.float32)
    context = jax.random.normal(k_c, (B, LK, CTX_DIM), jnp.float32)

    # BERT-style extended additive mask: valid -> 0, padded -> -10000
    ctx_lens = jnp.array([LK, LK - 5], jnp.int32)
    ctx_valid = jnp.arange(LK, dtype=jnp.int32)[None, :] < ctx_lens[:, None]
    attention_mask = (1.0 - ctx_valid.astype(jnp.float32))[:, None, :] * -10000.0

    ctx_layer, attn_scores = bert_out_attention(
        hidden_states, context, attention_mask, params, NUM_HEADS)
    jax.block_until_ready((ctx_layer, attn_scores))

    assert ctx_layer.shape == (B, LQ, HIDDEN), ctx_layer.shape
    assert attn_scores.shape == (B, NUM_HEADS, LQ, LK), attn_scores.shape
    assert bool(jnp.all(jnp.isfinite(ctx_layer)))
    assert bool(jnp.all(jnp.isfinite(attn_scores)))
    print("KERNEL_OK")
</pallas_src>

<mosaic_0001>
module attributes {stable_mosaic.version = 11 : i64} {
  func.func @_bert_out_attention_kernel(%arg0: i32, %arg1: i32, %arg2: memref<1x8x32xf32, #tpu.memory_space<vmem>>, %arg3: memref<1x128x64xf32, #tpu.memory_space<vmem>>, %arg4: memref<1x1x128xf32, #tpu.memory_space<vmem>>, %arg5: memref<32x32xbf16, #tpu.memory_space<vmem>>, %arg6: memref<1x32xf32, #tpu.memory_space<vmem>>, %arg7: memref<64x32xbf16, #tpu.memory_space<vmem>>, %arg8: memref<1x32xf32, #tpu.memory_space<vmem>>, %arg9: memref<64x32xbf16, #tpu.memory_space<vmem>>, %arg10: memref<1x32xf32, #tpu.memory_space<vmem>>, %arg11: memref<1x8x32xf32, #tpu.memory_space<vmem>>, %arg12: memref<1x4x8x128xf32, #tpu.memory_space<vmem>>) attributes {dimension_semantics = [#tpu.dimension_semantics<parallel>, #tpu.dimension_semantics<parallel>], iteration_bounds = array<i64: 2, 1>, scalar_prefetch = 0 : i64, scratch_operands = 0 : i64, tpu.core_type = #tpu.core_type<tc>, window_params = [{transform_indices = @transform_0, window_bounds = array<i64: 1, 8, 32>}, {transform_indices = @transform_1, window_bounds = array<i64: 1, 128, 64>}, {transform_indices = @transform_2, window_bounds = array<i64: 1, 1, 128>}, {pipeline_mode = #tpu.pipeline_mode<synchronous>, transform_indices = @transform_3, window_bounds = array<i64: 32, 32>}, {pipeline_mode = #tpu.pipeline_mode<synchronous>, transform_indices = @transform_4, window_bounds = array<i64: 1, 32>}, {pipeline_mode = #tpu.pipeline_mode<synchronous>, transform_indices = @transform_5, window_bounds = array<i64: 64, 32>}, {pipeline_mode = #tpu.pipeline_mode<synchronous>, transform_indices = @transform_6, window_bounds = array<i64: 1, 32>}, {pipeline_mode = #tpu.pipeline_mode<synchronous>, transform_indices = @transform_7, window_bounds = array<i64: 64, 32>}, {pipeline_mode = #tpu.pipeline_mode<synchronous>, transform_indices = @transform_8, window_bounds = array<i64: 1, 32>}, {transform_indices = @transform_9, window_bounds = array<i64: 1, 8, 32>}, {transform_indices = @transform_10, window_bounds = array<i64: 1, 4, 8, 128>}]} {
    %c0 = arith.constant 0 : index
    %c0_0 = arith.constant 0 : index
    %c0_1 = arith.constant 0 : index
    %0 = vector.load %arg2[%c0, %c0_0, %c0_1] : memref<1x8x32xf32, #tpu.memory_space<vmem>>, vector<1x8x32xf32>
    %1 = vector.shape_cast %0 : vector<1x8x32xf32> to vector<8x32xf32>
    %c0_2 = arith.constant 0 : index
    %c0_3 = arith.constant 0 : index
    %c0_4 = arith.constant 0 : index
    %2 = vector.load %arg3[%c0_2, %c0_3, %c0_4] : memref<1x128x64xf32, #tpu.memory_space<vmem>>, vector<1x128x64xf32>
    %3 = vector.shape_cast %2 : vector<1x128x64xf32> to vector<128x64xf32>
    %c0_5 = arith.constant 0 : index
    %c0_6 = arith.constant 0 : index
    %c0_7 = arith.constant 0 : index
    %4 = vector.load %arg4[%c0_5, %c0_6, %c0_7] : memref<1x1x128xf32, #tpu.memory_space<vmem>>, vector<1x1x128xf32>
    %5 = vector.shape_cast %4 : vector<1x1x128xf32> to vector<1x128xf32>
    %6 = arith.truncf %1 : vector<8x32xf32> to vector<8x32xbf16>
    %7 = arith.truncf %3 : vector<128x64xf32> to vector<128x64xbf16>
    %c0_8 = arith.constant 0 : index
    %c0_9 = arith.constant 0 : index
    %8 = vector.load %arg5[%c0_8, %c0_9] : memref<32x32xbf16, #tpu.memory_space<vmem>>, vector<32x32xbf16>
    %cst = arith.constant dense<0.000000e+00> : vector<8x32xf32>
    %9 = tpu.matmul %6, %8, %cst {dimension_numbers = #tpu.dot_dimension_numbers<[1], [0], [0], [1], [0, 0, 1, 1], [], []>} : vector<8x32xbf16>, vector<32x32xbf16>, vector<8x32xf32> -> vector<8x32xf32>
    %c0_10 = arith.constant 0 : index
    %c0_11 = arith.constant 0 : index
    %10 = vector.load %arg6[%c0_10, %c0_11] : memref<1x32xf32, #tpu.memory_space<vmem>>, vector<1x32xf32>
    %11 = vector.broadcast %10 : vector<1x32xf32> to vector<8x32xf32>
    %12 = arith.addf %9, %11 : vector<8x32xf32>
    %c0_12 = arith.constant 0 : index
    %c0_13 = arith.constant 0 : index
    %13 = vector.load %arg7[%c0_12, %c0_13] : memref<64x32xbf16, #tpu.memory_space<vmem>>, vector<64x32xbf16>
    %cst_14 = arith.constant dense<0.000000e+00> : vector<128x32xf32>
    %14 = tpu.matmul %7, %13, %cst_14 {dimension_numbers = #tpu.dot_dimension_numbers<[1], [0], [0], [1], [0, 0, 1, 1], [], []>} : vector<128x64xbf16>, vector<64x32xbf16>, vector<128x32xf32> -> vector<128x32xf32>
    %c0_15 = arith.constant 0 : index
    %c0_16 = arith.constant 0 : index
    %15 = vector.load %arg8[%c0_15, %c0_16] : memref<1x32xf32, #tpu.memory_space<vmem>>, vector<1x32xf32>
    %16 = vector.broadcast %15 : vector<1x32xf32> to vector<128x32xf32>
    %17 = arith.addf %14, %16 : vector<128x32xf32>
    %c0_17 = arith.constant 0 : index
    %c0_18 = arith.constant 0 : index
    %18 = vector.load %arg9[%c0_17, %c0_18] : memref<64x32xbf16, #tpu.memory_space<vmem>>, vector<64x32xbf16>
    %cst_19 = arith.constant dense<0.000000e+00> : vector<128x32xf32>
    %19 = tpu.matmul %7, %18, %cst_19 {dimension_numbers = #tpu.dot_dimension_numbers<[1], [0], [0], [1], [0, 0, 1, 1], [], []>} : vector<128x64xbf16>, vector<64x32xbf16>, vector<128x32xf32> -> vector<128x32xf32>
    %c0_20 = arith.constant 0 : index
    %c0_21 = arith.constant 0 : index
    %20 = vector.load %arg10[%c0_20, %c0_21] : memref<1x32xf32, #tpu.memory_space<vmem>>, vector<1x32xf32>
    %21 = vector.broadcast %20 : vector<1x32xf32> to vector<128x32xf32>
    %22 = arith.addf %19, %21 : vector<128x32xf32>
    %cst_22 = arith.constant 0.353553385 : f32
    %23 = vector.broadcast %cst_22 : f32 to vector<8x32xf32>
    %24 = arith.mulf %12, %23 : vector<8x32xf32>
    %25 = arith.truncf %24 : vector<8x32xf32> to vector<8x32xbf16>
    %26 = vector.shape_cast %25 : vector<8x32xbf16> to vector<8x4x8xbf16>
    %27 = arith.truncf %17 : vector<128x32xf32> to vector<128x32xbf16>
    %28 = vector.shape_cast %27 : vector<128x32xbf16> to vector<128x4x8xbf16>
    %29 = arith.truncf %22 : vector<128x32xf32> to vector<128x32xbf16>
    %30 = vector.shape_cast %29 : vector<128x32xbf16> to vector<128x4x8xbf16>
    "tpu.trace_start"() <{level = 10 : i32, message = "qhd,khd->hqk"}> : () -> ()
    %cst_23 = arith.constant dense<0.000000e+00> : vector<4x8x128xf32>
    %31 = tpu.matmul %26, %28, %cst_23 {dimension_numbers = #tpu.dot_dimension_numbers<[2], [2], [0], [0], [0, 1, 0, 0, 1, 0], [1], [1]>} : vector<8x4x8xbf16>, vector<128x4x8xbf16>, vector<4x8x128xf32> -> vector<4x8x128xf32>
    "tpu.trace_stop"() : () -> ()
    %32 = vector.shape_cast %5 : vector<1x128xf32> to vector<1x1x128xf32>
    %33 = vector.broadcast %32 : vector<1x1x128xf32> to vector<4x8x128xf32>
    %34 = arith.addf %31, %33 : vector<4x8x128xf32>
    %c0_24 = arith.constant 0 : index
    %c0_25 = arith.constant 0 : index
    %c0_26 = arith.constant 0 : index
    %c0_27 = arith.constant 0 : index
    %35 = vector.load %arg12[%c0_24, %c0_25, %c0_26, %c0_27] : memref<1x4x8x128xf32, #tpu.memory_space<vmem>>, vector<1x4x8x128xf32>
    %36 = vector.shape_cast %35 : vector<1x4x8x128xf32> to vector<4x8x128xf32>
    %37 = vector.shape_cast %34 : vector<4x8x128xf32> to vector<1x4x8x128xf32>
    tpu.vector_store %arg12[%c0_24, %c0_25, %c0_26, %c0_27], %37 {strides = array<i32>} : memref<1x4x8x128xf32, #tpu.memory_space<vmem>>, vector<1x4x8x128xf32>,
    %cst_28 = arith.constant dense<0xFF800000> : vector<4x8xf32>
    %38 = vector.multi_reduction <maximumf>, %34, %cst_28 [2] : vector<4x8x128xf32> to vector<4x8xf32>
    %39 = vector.shape_cast %38 : vector<4x8xf32> to vector<4x8x1xf32>
    %40 = vector.broadcast %39 : vector<4x8x1xf32> to vector<4x8x128xf32>
    %41 = arith.subf %34, %40 : vector<4x8x128xf32>
    %42 = math.exp %41 : vector<4x8x128xf32>
    %cst_29 = arith.constant dense<0.000000e+00> : vector<4x8xf32>
    %43 = vector.multi_reduction <add>, %42, %cst_29 [2] : vector<4x8x128xf32> to vector<4x8xf32>
    %44 = vector.shape_cast %43 : vector<4x8xf32> to vector<4x8x1xf32>
    %45 = tpu.reciprocal %44 {approx = true} : vector<4x8x1xf32> -> vector<4x8x1xf32>
    %46 = vector.broadcast %45 : vector<4x8x1xf32> to vector<4x8x128xf32>
    %47 = arith.mulf %42, %46 : vector<4x8x128xf32>
    %48 = arith.truncf %47 : vector<4x8x128xf32> to vector<4x8x128xbf16>
    "tpu.trace_start"() <{level = 10 : i32, message = "hqk,khd->qhd"}> : () -> ()
    %cst_30 = arith.constant dense<0.000000e+00> : vector<4x8x8xf32>
    %49 = tpu.matmul %30, %48, %cst_30 {dimension_numbers = #tpu.dot_dimension_numbers<[0], [2], [2], [1], [0, 1, 0, 2, 1, 1], [1], [0]>} : vector<128x4x8xbf16>, vector<4x8x128xbf16>, vector<4x8x8xf32> -> vector<4x8x8xf32>
    %50 = tpu.transpose %49, [2, 0, 1] : vector<4x8x8xf32> -> vector<8x4x8xf32>
    "tpu.trace_stop"() : () -> ()
    %51 = vector.shape_cast %50 : vector<8x4x8xf32> to vector<8x32xf32>
    %c0_31 = arith.constant 0 : index
    %c0_32 = arith.constant 0 : index
    %c0_33 = arith.constant 0 : index
    %52 = vector.load %arg11[%c0_31, %c0_32, %c0_33] : memref<1x8x32xf32, #tpu.memory_space<vmem>>, vector<1x8x32xf32>
    %53 = vector.shape_cast %52 : vector<1x8x32xf32> to vector<8x32xf32>
    %54 = vector.shape_cast %51 : vector<8x32xf32> to vector<1x8x32xf32>
    tpu.vector_store %arg11[%c0_31, %c0_32, %c0_33], %54 {strides = array<i32>} : memref<1x8x32xf32, #tpu.memory_space<vmem>>, vector<1x8x32xf32>,
    return
  }
  func.func @transform_0(%arg0: i32, %arg1: i32) -> (i32, i32, i32) {
    %c0_i32 = arith.constant 0 : i32
    %c0_i32_0 = arith.constant 0 : i32
    return %arg0, %arg1, %c0_i32 : i32, i32, i32
  }
  func.func @transform_1(%arg0: i32, %arg1: i32) -> (i32, i32, i32) {
    %c0_i32 = arith.constant 0 : i32
    %c0_i32_0 = arith.constant 0 : i32
    %c0_i32_1 = arith.constant 0 : i32
    return %arg0, %c0_i32, %c0_i32_0 : i32, i32, i32
  }
  func.func @transform_2(%arg0: i32, %arg1: i32) -> (i32, i32, i32) {
    %c0_i32 = arith.constant 0 : i32
    %c0_i32_0 = arith.constant 0 : i32
    %c0_i32_1 = arith.constant 0 : i32
    return %arg0, %c0_i32, %c0_i32_0 : i32, i32, i32
  }
  func.func @transform_3(%arg0: i32, %arg1: i32) -> (i32, i32) {
    %c0_i32 = arith.constant 0 : i32
    %c0_i32_0 = arith.constant 0 : i32
    %c0_i32_1 = arith.constant 0 : i32
    return %c0_i32, %c0_i32_0 : i32, i32
  }
  func.func @transform_4(%arg0: i32, %arg1: i32) -> (i32, i32) {
    %c0_i32 = arith.constant 0 : i32
    %c0_i32_0 = arith.constant 0 : i32
    %c0_i32_1 = arith.constant 0 : i32
    return %c0_i32, %c0_i32_0 : i32, i32
  }
  func.func @transform_5(%arg0: i32, %arg1: i32) -> (i32, i32) {
    %c0_i32 = arith.constant 0 : i32
    %c0_i32_0 = arith.constant 0 : i32
    %c0_i32_1 = arith.constant 0 : i32
    return %c0_i32, %c0_i32_0 : i32, i32
  }
  func.func @transform_6(%arg0: i32, %arg1: i32) -> (i32, i32) {
    %c0_i32 = arith.constant 0 : i32
    %c0_i32_0 = arith.constant 0 : i32
    %c0_i32_1 = arith.constant 0 : i32
    return %c0_i32, %c0_i32_0 : i32, i32
  }
  func.func @transform_7(%arg0: i32, %arg1: i32) -> (i32, i32) {
    %c0_i32 = arith.constant 0 : i32
    %c0_i32_0 = arith.constant 0 : i32
    %c0_i32_1 = arith.constant 0 : i32
    return %c0_i32, %c0_i32_0 : i32, i32
  }
  func.func @transform_8(%arg0: i32, %arg1: i32) -> (i32, i32) {
    %c0_i32 = arith.constant 0 : i32
    %c0_i32_0 = arith.constant 0 : i32
    %c0_i32_1 = arith.constant 0 : i32
    return %c0_i32, %c0_i32_0 : i32, i32
  }
  func.func @transform_9(%arg0: i32, %arg1: i32) -> (i32, i32, i32) {
    %c0_i32 = arith.constant 0 : i32
    %c0_i32_0 = arith.constant 0 : i32
    return %arg0, %arg1, %c0_i32 : i32, i32, i32
  }
  func.func @transform_10(%arg0: i32, %arg1: i32) -> (i32, i32, i32, i32) {
    %c0_i32 = arith.constant 0 : i32
    %c0_i32_0 = arith.constant 0 : i32
    %c0_i32_1 = arith.constant 0 : i32
    return %arg0, %c0_i32, %arg1, %c0_i32_0 : i32, i32, i32, i32
  }
}

module attributes {stable_mosaic.version = 11 : i64} {
  func.func @_bert_out_attention_kernel(%arg0: i32, %arg1: i32, %arg2: memref<1x8x32xf32, #tpu.memory_space<vmem>>, %arg3: memref<1x128x64xf32, #tpu.memory_space<vmem>>, %arg4: memref<1x1x128xf32, #tpu.memory_space<vmem>>, %arg5: memref<32x32xbf16, #tpu.memory_space<vmem>>, %arg6: memref<1x32xf32, #tpu.memory_space<vmem>>, %arg7: memref<64x32xbf16, #tpu.memory_space<vmem>>, %arg8: memref<1x32xf32, #tpu.memory_space<vmem>>, %arg9: memref<64x32xbf16, #tpu.memory_space<vmem>>, %arg10: memref<1x32xf32, #tpu.memory_space<vmem>>, %arg11: memref<1x8x32xf32, #tpu.memory_space<vmem>>, %arg12: memref<1x4x8x128xf32, #tpu.memory_space<vmem>>) attributes {dimension_semantics = [#tpu.dimension_semantics<parallel>, #tpu.dimension_semantics<parallel>], iteration_bounds = array<i64: 2, 1>, scalar_prefetch = 0 : i64, scratch_operands = 0 : i64, tpu.core_type = #tpu.core_type<tc>, window_params = [{transform_indices = @transform_0, window_bounds = array<i64: 1, 8, 32>}, {transform_indices = @transform_1, window_bounds = array<i64: 1, 128, 64>}, {transform_indices = @transform_2, window_bounds = array<i64: 1, 1, 128>}, {pipeline_mode = #tpu.pipeline_mode<synchronous>, transform_indices = @transform_3, window_bounds = array<i64: 32, 32>}, {pipeline_mode = #tpu.pipeline_mode<synchronous>, transform_indices = @transform_4, window_bounds = array<i64: 1, 32>}, {pipeline_mode = #tpu.pipeline_mode<synchronous>, transform_indices = @transform_5, window_bounds = array<i64: 64, 32>}, {pipeline_mode = #tpu.pipeline_mode<synchronous>, transform_indices = @transform_6, window_bounds = array<i64: 1, 32>}, {pipeline_mode = #tpu.pipeline_mode<synchronous>, transform_indices = @transform_7, window_bounds = array<i64: 64, 32>}, {pipeline_mode = #tpu.pipeline_mode<synchronous>, transform_indices = @transform_8, window_bounds = array<i64: 1, 32>}, {transform_indices = @transform_9, window_bounds = array<i64: 1, 8, 32>}, {transform_indices = @transform_10, window_bounds = array<i64: 1, 4, 8, 128>}]} {
    %c0 = arith.constant 0 : index
    %c0_0 = arith.constant 0 : index
    %c0_1 = arith.constant 0 : index
    %0 = vector.load %arg2[%c0, %c0_0, %c0_1] : memref<1x8x32xf32, #tpu.memory_space<vmem>>, vector<1x8x32xf32>
    %1 = vector.shape_cast %0 : vector<1x8x32xf32> to vector<8x32xf32>
    %c0_2 = arith.constant 0 : index
    %c0_3 = arith.constant 0 : index
    %c0_4 = arith.constant 0 : index
    %2 = vector.load %arg3[%c0_2, %c0_3, %c0_4] : memref<1x128x64xf32, #tpu.memory_space<vmem>>, vector<1x128x64xf32>
    %3 = vector.shape_cast %2 : vector<1x128x64xf32> to vector<128x64xf32>
    %c0_5 = arith.constant 0 : index
    %c0_6 = arith.constant 0 : index
    %c0_7 = arith.constant 0 : index
    %4 = vector.load %arg4[%c0_5, %c0_6, %c0_7] : memref<1x1x128xf32, #tpu.memory_space<vmem>>, vector<1x1x128xf32>
    %5 = vector.shape_cast %4 : vector<1x1x128xf32> to vector<1x128xf32>
    %6 = arith.truncf %1 : vector<8x32xf32> to vector<8x32xbf16>
    %7 = arith.truncf %3 : vector<128x64xf32> to vector<128x64xbf16>
    %c0_8 = arith.constant 0 : index
    %c0_9 = arith.constant 0 : index
    %8 = vector.load %arg5[%c0_8, %c0_9] : memref<32x32xbf16, #tpu.memory_space<vmem>>, vector<32x32xbf16>
    %cst = arith.constant dense<0.000000e+00> : vector<8x32xf32>
    %9 = tpu.matmul %6, %8, %cst {dimension_numbers = #tpu.dot_dimension_numbers<[1], [0], [0], [1], [0, 0, 1, 1], [], []>} : vector<8x32xbf16>, vector<32x32xbf16>, vector<8x32xf32> -> vector<8x32xf32>
    %c0_10 = arith.constant 0 : index
    %c0_11 = arith.constant 0 : index
    %10 = vector.load %arg6[%c0_10, %c0_11] : memref<1x32xf32, #tpu.memory_space<vmem>>, vector<1x32xf32>
    %11 = vector.broadcast %10 : vector<1x32xf32> to vector<8x32xf32>
    %12 = arith.addf %9, %11 : vector<8x32xf32>
    %c0_12 = arith.constant 0 : index
    %c0_13 = arith.constant 0 : index
    %13 = vector.load %arg7[%c0_12, %c0_13] : memref<64x32xbf16, #tpu.memory_space<vmem>>, vector<64x32xbf16>
    %cst_14 = arith.constant dense<0.000000e+00> : vector<128x32xf32>
    %14 = tpu.matmul %7, %13, %cst_14 {dimension_numbers = #tpu.dot_dimension_numbers<[1], [0], [0], [1], [0, 0, 1, 1], [], []>} : vector<128x64xbf16>, vector<64x32xbf16>, vector<128x32xf32> -> vector<128x32xf32>
    %c0_15 = arith.constant 0 : index
    %c0_16 = arith.constant 0 : index
    %15 = vector.load %arg8[%c0_15, %c0_16] : memref<1x32xf32, #tpu.memory_space<vmem>>, vector<1x32xf32>
    %16 = vector.broadcast %15 : vector<1x32xf32> to vector<128x32xf32>
    %17 = arith.addf %14, %16 : vector<128x32xf32>
    %c0_17 = arith.constant 0 : index
    %c0_18 = arith.constant 0 : index
    %18 = vector.load %arg9[%c0_17, %c0_18] : memref<64x32xbf16, #tpu.memory_space<vmem>>, vector<64x32xbf16>
    %cst_19 = arith.constant dense<0.000000e+00> : vector<128x32xf32>
    %19 = tpu.matmul %7, %18, %cst_19 {dimension_numbers = #tpu.dot_dimension_numbers<[1], [0], [0], [1], [0, 0, 1, 1], [], []>} : vector<128x64xbf16>, vector<64x32xbf16>, vector<128x32xf32> -> vector<128x32xf32>
    %c0_20 = arith.constant 0 : index
    %c0_21 = arith.constant 0 : index
    %20 = vector.load %arg10[%c0_20, %c0_21] : memref<1x32xf32, #tpu.memory_space<vmem>>, vector<1x32xf32>
    %21 = vector.broadcast %20 : vector<1x32xf32> to vector<128x32xf32>
    %22 = arith.addf %19, %21 : vector<128x32xf32>
    %cst_22 = arith.constant 0.353553385 : f32
    %23 = vector.broadcast %cst_22 : f32 to vector<8x32xf32>
    %24 = arith.mulf %12, %23 : vector<8x32xf32>
    %25 = arith.truncf %24 : vector<8x32xf32> to vector<8x32xbf16>
    %26 = vector.shape_cast %25 : vector<8x32xbf16> to vector<8x4x8xbf16>
    %27 = arith.truncf %17 : vector<128x32xf32> to vector<128x32xbf16>
    %28 = vector.shape_cast %27 : vector<128x32xbf16> to vector<128x4x8xbf16>
    %29 = arith.truncf %22 : vector<128x32xf32> to vector<128x32xbf16>
    %30 = vector.shape_cast %29 : vector<128x32xbf16> to vector<128x4x8xbf16>
    "tpu.trace_start"() <{level = 10 : i32, message = "qhd,khd->hqk"}> : () -> ()
    %cst_23 = arith.constant dense<0.000000e+00> : vector<4x8x128xf32>
    %31 = tpu.matmul %26, %28, %cst_23 {dimension_numbers = #tpu.dot_dimension_numbers<[2], [2], [0], [0], [0, 1, 0, 0, 1, 0], [1], [1]>} : vector<8x4x8xbf16>, vector<128x4x8xbf16>, vector<4x8x128xf32> -> vector<4x8x128xf32>
    "tpu.trace_stop"() : () -> ()
    %32 = vector.shape_cast %5 : vector<1x128xf32> to vector<1x1x128xf32>
    %33 = vector.broadcast %32 : vector<1x1x128xf32> to vector<4x8x128xf32>
    %34 = arith.addf %31, %33 : vector<4x8x128xf32>
    %c0_24 = arith.constant 0 : index
    %c0_25 = arith.constant 0 : index
    %c0_26 = arith.constant 0 : index
    %c0_27 = arith.constant 0 : index
    %35 = vector.load %arg12[%c0_24, %c0_25, %c0_26, %c0_27] : memref<1x4x8x128xf32, #tpu.memory_space<vmem>>, vector<1x4x8x128xf32>
    %36 = vector.shape_cast %35 : vector<1x4x8x128xf32> to vector<4x8x128xf32>
    %37 = vector.shape_cast %34 : vector<4x8x128xf32> to vector<1x4x8x128xf32>
    tpu.vector_store %arg12[%c0_24, %c0_25, %c0_26, %c0_27], %37 {strides = array<i32>} : memref<1x4x8x128xf32, #tpu.memory_space<vmem>>, vector<1x4x8x128xf32>,
    %cst_28 = arith.constant dense<0xFF800000> : vector<4x8xf32>
    %38 = vector.multi_reduction <maximumf>, %34, %cst_28 [2] : vector<4x8x128xf32> to vector<4x8xf32>
    %39 = vector.shape_cast %38 : vector<4x8xf32> to vector<4x8x1xf32>
    %40 = vector.broadcast %39 : vector<4x8x1xf32> to vector<4x8x128xf32>
    %41 = arith.subf %34, %40 : vector<4x8x128xf32>
    %42 = math.exp %41 : vector<4x8x128xf32>
    %cst_29 = arith.constant dense<0.000000e+00> : vector<4x8xf32>
    %43 = vector.multi_reduction <add>, %42, %cst_29 [2] : vector<4x8x128xf32> to vector<4x8xf32>
    %44 = vector.shape_cast %43 : vector<4x8xf32> to vector<4x8x1xf32>
    %45 = tpu.reciprocal %44 {approx = true} : vector<4x8x1xf32> -> vector<4x8x1xf32>
    %46 = vector.broadcast %45 : vector<4x8x1xf32> to vector<4x8x128xf32>
    %47 = arith.mulf %42, %46 : vector<4x8x128xf32>
    %48 = arith.truncf %47 : vector<4x8x128xf32> to vector<4x8x128xbf16>
    "tpu.trace_start"() <{level = 10 : i32, message = "hqk,khd->qhd"}> : () -> ()
    %cst_30 = arith.constant dense<0.000000e+00> : vector<4x8x8xf32>
    %49 = tpu.matmul %30, %48, %cst_30 {dimension_numbers = #tpu.dot_dimension_numbers<[0], [2], [2], [1], [0, 1, 0, 2, 1, 1], [1], [0]>} : vector<128x4x8xbf16>, vector<4x8x128xbf16>, vector<4x8x8xf32> -> vector<4x8x8xf32>
    %50 = tpu.transpose %49, [2, 0, 1] : vector<4x8x8xf32> -> vector<8x4x8xf32>
    "tpu.trace_stop"() : () -> ()
    %51 = vector.shape_cast %50 : vector<8x4x8xf32> to vector<8x32xf32>
    %c0_31 = arith.constant 0 : index
    %c0_32 = arith.constant 0 : index
    %c0_33 = arith.constant 0 : index
    %52 = vector.load %arg11[%c0_31, %c0_32, %c0_33] : memref<1x8x32xf32, #tpu.memory_space<vmem>>, vector<1x8x32xf32>
    %53 = vector.shape_cast %52 : vector<1x8x32xf32> to vector<8x32xf32>
    %54 = vector.shape_cast %51 : vector<8x32xf32> to vector<1x8x32xf32>
    tpu.vector_store %arg11[%c0_31, %c0_32, %c0_33], %54 {strides = array<i32>} : memref<1x8x32xf32, #tpu.memory_space<vmem>>, vector<1x8x32xf32>,
    return
  }
  func.func @transform_0(%arg0: i32, %arg1: i32) -> (i32, i32, i32) {
    %c0_i32 = arith.constant 0 : i32
    %c0_i32_0 = arith.constant 0 : i32
    return %arg0, %arg1, %c0_i32 : i32, i32, i32
  }
  func.func @transform_1(%arg0: i32, %arg1: i32) -> (i32, i32, i32) {
    %c0_i32 = arith.constant 0 : i32
    %c0_i32_0 = arith.constant 0 : i32
    %c0_i32_1 = arith.constant 0 : i32
    return %arg0, %c0_i32, %c0_i32_0 : i32, i32, i32
  }
  func.func @transform_2(%arg0: i32, %arg1: i32) -> (i32, i32, i32) {
    %c0_i32 = arith.constant 0 : i32
    %c0_i32_0 = arith.constant 0 : i32
    %c0_i32_1 = arith.constant 0 : i32
    return %arg0, %c0_i32, %c0_i32_0 : i32, i32, i32
  }
  func.func @transform_3(%arg0: i32, %arg1: i32) -> (i32, i32) {
    %c0_i32 = arith.constant 0 : i32
    %c0_i32_0 = arith.constant 0 : i32
    %c0_i32_1 = arith.constant 0 : i32
    return %c0_i32, %c0_i32_0 : i32, i32
  }
  func.func @transform_4(%arg0: i32, %arg1: i32) -> (i32, i32) {
    %c0_i32 = arith.constant 0 : i32
    %c0_i32_0 = arith.constant 0 : i32
    %c0_i32_1 = arith.constant 0 : i32
    return %c0_i32, %c0_i32_0 : i32, i32
  }
  func.func @transform_5(%arg0: i32, %arg1: i32) -> (i32, i32) {
    %c0_i32 = arith.constant 0 : i32
    %c0_i32_0 = arith.constant 0 : i32
    %c0_i32_1 = arith.constant 0 : i32
    return %c0_i32, %c0_i32_0 : i32, i32
  }
  func.func @transform_6(%arg0: i32, %arg1: i32) -> (i32, i32) {
    %c0_i32 = arith.constant 0 : i32
    %c0_i32_0 = arith.constant 0 : i32
    %c0_i32_1 = arith.constant 0 : i32
    return %c0_i32, %c0_i32_0 : i32, i32
  }
  func.func @transform_7(%arg0: i32, %arg1: i32) -> (i32, i32) {
    %c0_i32 = arith.constant 0 : i32
    %c0_i32_0 = arith.constant 0 : i32
    %c0_i32_1 = arith.constant 0 : i32
    return %c0_i32, %c0_i32_0 : i32, i32
  }
  func.func @transform_8(%arg0: i32, %arg1: i32) -> (i32, i32) {
    %c0_i32 = arith.constant 0 : i32
    %c0_i32_0 = arith.constant 0 : i32
    %c0_i32_1 = arith.constant 0 : i32
    return %c0_i32, %c0_i32_0 : i32, i32
  }
  func.func @transform_9(%arg0: i32, %arg1: i32) -> (i32, i32, i32) {
    %c0_i32 = arith.constant 0 : i32
    %c0_i32_0 = arith.constant 0 : i32
    return %arg0, %arg1, %c0_i32 : i32, i32, i32
  }
  func.func @transform_10(%arg0: i32, %arg1: i32) -> (i32, i32, i32, i32) {
    %c0_i32 = arith.constant 0 : i32
    %c0_i32_0 = arith.constant 0 : i32
    %c0_i32_1 = arith.constant 0 : i32
    return %arg0, %c0_i32, %arg1, %c0_i32_0 : i32, i32, i32, i32
  }
}

</mosaic_0001>

<bundles_post_ra>
// kernel: tpu_custom_call.1
= control target key start
LH: loop header
LB: loop body
LE: loop exit
PB: predicated region body
PF: predicated region fallthrough
CT: control target
= control target key end

     0   :  { %s3727_s0 = inlined_call_operand.hbm [shape: f32[2,8,32], index: 0, kind: input, shape index: {}]   ;;  %s3728_s1 = inlined_call_operand.hbm [shape: f32[2,128,64], index: 1, kind: input, shape index: {}]   ;;  %s3729_s2 = inlined_call_operand.hbm [shape: f32[2,1,128], index: 2, kind: input, shape index: {}]   ;;  %s3730_s3 = inlined_call_operand.hbm [shape: bf16[32,32], index: 3, kind: input, shape index: {}]   ;;  %s3731_s4 = inlined_call_operand.hbm [shape: f32[1,32], index: 4, kind: input, shape index: {}]   ;;  %s3732_s5 = inlined_call_operand.hbm [shape: bf16[64,32], index: 5, kind: input, shape index: {}]   ;;  %s3733_s6 = inlined_call_operand.hbm [shape: f32[1,32], index: 6, kind: input, shape index: {}]   ;;  %s3734_s7 = inlined_call_operand.hbm [shape: bf16[64,32], index: 7, kind: input, shape index: {}]   ;;  %s3735_s8 = inlined_call_operand.hbm [shape: f32[1,32], index: 8, kind: input, shape index: {}]   ;;  %s3736_s9 = inlined_call_operand.hbm [shape: f32[2,8,32], index: 9, kind: output, shape index: {0}]   ;;  %s3737_s10 = inlined_call_operand.hbm [shape: f32[2,4,8,128], index: 10, kind: output, shape index: {1}]  }
   0x1   :  { %3759 = sst [smem:[#allocation34_spill]] %s3728_s1 }
   0x2   :  { %3760 = sst [smem:[#allocation35_spill]] %s3730_s3 }
   0x3   :  { %3761 = sst [smem:[#allocation36_spill]] %s3732_s5 }
   0x4   :  { %3762 = sst [smem:[#allocation37_spill]] %s3734_s7 }
   0x5   :  { %3763 = sst [smem:[#allocation38_spill]] %s3736_s9 }
   0x6   :  { %3764 = sst [smem:[#allocation39_spill]] %s3737_s10 }
   0x7   :  { %16 = vsyncpa [#allocation3], 0 }
   0x8   :  { %18 = vsyncpa [#allocation3 + $0x1], 0 }
   0x9   :  { %19 = vsyncpa [#allocation6], 0 }
   0xa   :  { %21 = vsyncpa [#allocation6 + $0x1], 0 }
   0xb   :  { %22 = vsyncpa [#allocation9], 0 }
   0xc   :  { %23 = vsyncpa [#allocation12], 0 }
   0xd   :  { %24 = vsyncpa [#allocation15], 0 }
   0xe   :  { %25 = vsyncpa [#allocation4], 0 }
   0xf   :  { %27 = vsyncpa [#allocation4 + $0x1], 0 }
  0x10   :  { %28 = vsyncpa [#allocation19], 0 }
  0x11   :  { %30 = vsyncpa [#allocation19 + $0x1], 0  ;;  %s3058_s13 = smov 0   ;;  %s3060_s14 = smov 0  }
  0x12   :  { %s3062_s15 = smov 0   ;;  %s3064_s16 = smov 0  }
  0x13   :  { %s3066_s17 = smov 0   ;;  %s3068_s18 = smov 0  }
  0x14 LB: > { %3765 = sst [smem:[#allocation27_spill]] %s2963_s15  ;;  %s3089_s19 = sadd.s32 4294967295, %s2975_s18   ;;  %s2975_s18 = sphi %s3068_s18, %s36_s18   ;;  %s2971_s17 = sphi %s3066_s17, %s3813_s17   ;;  %s2967_s16 = sphi %s3064_s16, %s3812_s16   ;;  %s2963_s15 = sphi %s3062_s15, %s3808_s15   ;;  %s2959_s14 = sphi %s3060_s14, %s3811_s14   ;;  %s2955_s13 = sphi %s3058_s13, %s3810_s13  }
  0x15   : > { %3766 = sst [smem:[#allocation28_spill]] %s2967_s16  ;;  %p2190_p0 = scmp.ge.s32.totalorder %s2975_s18, 1 }
  0x16   : > { %3767 = sst [smem:[#allocation29_spill]] %s2975_s18  ;;  %p3742_p1 = scmp.eq.s32.totalorder %s3089_s19, 0 }
  0x17   : > { %p315_p2 = scmp.lt.s32.totalorder %s2975_s18, 3  ;;  %s2977_s21 = smov [#allocation8]  }
  0x18   : > { %s327_s22 = sshll.u32 %s2977_s21, 4  ;;  %s2978_s24 = smov [#allocation11]   ;;  %s3098_s22 = int_to_ptr.vmem [resolvable:$true] %s327_s22 }
  0x19   : > { %p3094_p3 = pnand %p2190_p0, %p315_p2  ;;  %s351_s25 = sshll.u32 %s2978_s24, 4  ;;  %s3109_s25 = int_to_ptr.vmem [resolvable:$true] %s351_s25 }
  0x1a   : > { %s2979_s26 = smov [#allocation14]   ;;  %s3771_s3 = sld [smem:[#allocation35_spill]] }
  0x1b   : > { %s3768_s20 = scalar_select %p3094_p3, 1, 0 }
  0x1c   : > { %p2442_p4 = pneg %p3094_p3  ;;  %s3111_s27 = sshll.u32 %s2979_s26, 4  ;;  %s376_s27 = int_to_ptr.vmem [resolvable:$true] %s3111_s27 }
  0x1d   : > { %3769 = sst [smem:[#allocation30_spill]] %s3768_s20 }
  0x1e   : > { %p3105_p6 = pnand %p2442_p4, %p3742_p1 }
  0x20   : > { %s3770_s23 = scalar_select %p3105_p6, 1, 0 }
  0x21   : > { %s2587_s30 = scalar_lea.hbm %s3771_s3, 256  ;;  %p3121_p8 = pneg %p3105_p6 }
  0x22   : > { %p2588_p7 = scmp.ne.s32.totalorder %s3771_s3, %s2587_s30  ;;  %p2594_p11 = scmp.lt.u32.totalorder %s2587_s30, %s3771_s3 }
  0x23   : > { %s3772_s21 = scalar_select %p3121_p8, 1, 0 }
  0x24   : > { %p2590_p9 = pnand %p3121_p8, %p2588_p7 }
  0x26   : > { %p2591_p10 = pneg %p2590_p9 }
  0x28   : > { %p2596_p12 = pnand %p2594_p11, %p2591_p10 }
  0x2a   : > { %2599 = shalt.err (!%p2596_p12)
}
  0x2b   : > { %s2600_s28 = scalar_lea.vmem %s3098_s22, 256  ;;  %p2608_p4 = scmp.lt.s32.totalorder %s3098_s22, %s3098_s22 }
  0x2c   : > { %p2601_p13 = scmp.ne.s32.totalorder %s3098_s22, %s2600_s28  ;;  %p2609_p5 = scmp.lt.s32.totalorder %s2600_s28, %s2600_s28 }
  0x2e   : > { %p2603_p0 = pnand %p2601_p13, %p3121_p8  ;;  %p2610_p7 = por %p2609_p5, %p2608_p4 }
  0x30   : > { %p2604_p2 = pneg %p2603_p0 }
  0x32   : > { %p2611_p9 = pnand %p2610_p7, %p2604_p2 }
  0x34   : > { %2614 = shalt.err (!%p2611_p9)
}
  0x35   : > { %s2980_s29 = smov 64   ;;  %s2981_s30 = smov 4  }
  0x36   : > { %2445 = dma.hbm_to_vmem [thread:$0]  (!%p3105_p6), %s3771_s3, 256, %s3098_s22, [#allocation9], %s2980_s29, %s2980_s29, %s2981_s30  }
  0x37   : > { %s3773_s5 = sld [smem:[#allocation36_spill]] }
  0x3d   : > { %s2615_s28 = scalar_lea.hbm %s3773_s5, 512 }
  0x3e   : > { %p2616_p5 = scmp.ne.s32.totalorder %s3773_s5, %s2615_s28  ;;  %p2622_p12 = scmp.lt.u32.totalorder %s2615_s28, %s3773_s5 }
  0x40   : > { %p2618_p10 = pnand %p2616_p5, %p3121_p8 }
  0x42   : > { %p2619_p11 = pneg %p2618_p10 }
  0x44   : > { %p2624_p13 = pnand %p2622_p12, %p2619_p11 }
  0x46   : > { %2627 = shalt.err (!%p2624_p13)
}
  0x47   : > { %s2628_s22 = scalar_lea.vmem %s3109_s25, 512  ;;  %p2636_p7 = scmp.lt.s32.totalorder %s3109_s25, %s3109_s25 }
  0x48   : > { %p2629_p0 = scmp.ne.s32.totalorder %s3109_s25, %s2628_s22  ;;  %p2637_p9 = scmp.lt.s32.totalorder %s2628_s22, %s2628_s22 }
  0x4a   : > { %p2631_p2 = pnand %p2629_p0, %p3121_p8  ;;  %p2638_p5 = por %p2637_p9, %p2636_p7 }
  0x4c   : > { %p2632_p4 = pneg %p2631_p2 }
  0x4e   : > { %p2639_p10 = pnand %p2638_p5, %p2632_p4 }
  0x50   : > { %2642 = shalt.err (!%p2639_p10)
}
  0x51   : > { %2451 = dma.hbm_to_vmem [thread:$0]  (!%p3105_p6), %s3773_s5, 512, %s3109_s25, [#allocation12], %s2980_s29, %s2980_s29, %s2981_s30  }
  0x52   : > { %s3774_s7 = sld [smem:[#allocation37_spill]] }
  0x58   : > { %s2643_s11 = scalar_lea.hbm %s3774_s7, 512 }
  0x59   : > { %p2644_p11 = scmp.ne.s32.totalorder %s3774_s7, %s2643_s11  ;;  %p2650_p0 = scmp.lt.u32.totalorder %s2643_s11, %s3774_s7 }
  0x5b   : > { %p2646_p12 = pnand %p2644_p11, %p3121_p8 }
  0x5d   : > { %p2647_p13 = pneg %p2646_p12 }
  0x5f   : > { %p2652_p2 = pnand %p2650_p0, %p2647_p13 }
  0x61   : > { %2655 = shalt.err (!%p2652_p2)
}
  0x62   : > { %s2656_s22 = scalar_lea.vmem %s376_s27, 512  ;;  %p2664_p5 = scmp.lt.s32.totalorder %s376_s27, %s376_s27 }
  0x63   : > { %p2657_p4 = scmp.ne.s32.totalorder %s376_s27, %s2656_s22  ;;  %p2665_p10 = scmp.lt.s32.totalorder %s2656_s22, %s2656_s22 }
  0x65   : > { %p2659_p7 = pnand %p2657_p4, %p3121_p8  ;;  %p2666_p1 = por %p2665_p10, %p2664_p5 }
  0x67   : > { %p2660_p9 = pneg %p2659_p7 }
  0x69   : > { %p2667_p3 = pnand %p2666_p1, %p2660_p9 }
  0x6b   : > { %2670 = shalt.err (!%p2667_p3)
}
  0x6c   : > { %2457 = dma.hbm_to_vmem [thread:$0]  (!%p3105_p6), %s3774_s7, 512, %s376_s27, [#allocation15], %s2980_s29, %s2980_s29, %s2981_s30  }
  0x6d   : > { %s2189_s10 = sadd.s32 4294967294, %s2975_s18   ;;  %s48_s16 = sadd.s32 1, %s2971_s17 }
  0x6e   : > { %s57_s20 = sadd.s32 1, %s2963_s15  ;;  %p50_p1 = scmp.ge.s32.totalorder %s48_s16, 2 }
  0x6f   : > { %p64_p3 = scmp.ne.s32.totalorder %s2963_s15, %s2959_s14  ;;  %p65_p11 = scmp.eq.s32.totalorder %s2975_s18, 0 }
  0x70   : > { %p70_p12 = scmp.ne.s32.totalorder %s2959_s14, %s2955_s13  ;;  %s3815_s16 = smov (%p50_p1, %s48_s16), 0 }
  0x71   : > { %3775 = sst [smem:[#allocation31_spill]] %s3815_s16  ;;  %p66_p13 = por %p65_p11, %p64_p3 }
  0x72   : > { %p3776_p0 = scmp.eq.s32.totalorder %s3089_s19, 0  ;;  %s52_s27 = ssub.s32 %s2971_s17, %s3815_s16 }
  0x73   : > { %p274_p4 = scmp.eq.s32.totalorder %s3089_s19, 1  ;;  %p55_p7 = scmp.eq.s32.totalorder %s52_s27, 0 }
  0x74   : > { %p3205_p2 = por %p3776_p0, %p70_p12  ;;  %p280_p9 = scmp.eq.s32.totalorder %s2189_s10, 1 }
  0x75   : > { %p3212_p5 = por %p274_p4, %p64_p3  ;;  %p2484_p10 = scmp.lt.s32.totalorder %s2975_s18, 2 }
  0x76   : > { %s3777_s11 = scalar_select %p3205_p2, 1, 0 }
  0x77   : > { %s3778_s29 = scalar_select %p3212_p5, 1, 0 }
  0x78   : > { %s3218_s30 = scalar_select %p55_p7, %s2963_s15, %s57_s20  }
  0x79   : > { %p3220_p1 = por %p280_p9, %p70_p12  ;;  %s3225_s24 = sand.u32 1, %s2963_s15  }
  0x7a   : > { %3779 = sst [smem:[#allocation32_spill]] %s3218_s30  ;;  %p3227_p11 = pnand %p2484_p10, %p66_p13 }
  0x7b   : > { %s3780_s12 = scalar_select %p3220_p1, 1, 0 }
  0x7c   : > { %s3782_s26 = scalar_select %p3227_p11, 1, 0 }
  0x7d   : > { %3781 = sst [smem:[#allocation33_spill]] %s3780_s12  ;;  %s419_s28 = sand.u32 1, %s2975_s18  }
  0x7e   : > { %s2200_s22 = sshll.u32 %s3225_s24, 7  ;;  %s2259_s25 = sshll.u32 %s2971_s17, 11 }
  0x7f   : > { %s423_s9 = scalar_lea.vmem [#allocation5], %s2200_s22  ;;  %s3783_s1 = sld [smem:[#allocation34_spill]] }
  0x80   : > { %s430_s10 = sshll.u32 %s423_s9, 4  ;;  %s3241_s5 = scalar_lea.sflag [#allocation6], %s419_s28  ;;  %s3239_s10 = int_to_ptr.vmem [resolvable:$true] %s430_s10 }
  0x81   : > { %p3247_p12 = pneg %p3227_p11 }
  0x83   : > { %s3784_s16 = scalar_select %p3247_p12, 1, 0 }
  0x85   : > { %s3237_s3 = scalar_lea.hbm %s3783_s1, %s2259_s25  ;;  %s2676_s9 = scalar_lea.hbm %s3783_s1, 4096 }
  0x86   : > { %s2671_s7 = scalar_lea.hbm %s3237_s3, 2048  ;;  %p2677_p4 = scmp.lt.u32.totalorder %s3237_s3, %s3783_s1 }
  0x87   : > { %p2672_p3 = scmp.ne.s32.totalorder %s3237_s3, %s2671_s7  ;;  %p2678_p7 = scmp.lt.u32.totalorder %s2676_s9, %s2671_s7 }
  0x88   : > { %p2680_p10 = scmp.lt.u32.totalorder %s2671_s7, %s3237_s3 }
  0x89   : > { %p2674_p13 = pnand %p3247_p12, %p2672_p3  ;;  %p2679_p9 = por %p2678_p7, %p2677_p4 }
  0x8b   : > { %p2675_p0 = pneg %p2674_p13  ;;  %p2681_p1 = por %p2680_p10, %p2679_p9 }
  0x8d   : > { %p2682_p5 = pnand %p2681_p1, %p2675_p0 }
  0x8f   : > { %2685 = shalt.err (!%p2682_p5)
}
  0x90   : > { %s2686_s28 = scalar_lea.vmem %s3239_s10, 2048  ;;  %s2982_s22 = smov [#allocation5]  }
  0x91   : > { %p2687_p3 = scmp.ne.s32.totalorder %s3239_s10, %s2686_s28  ;;  %s2691_s25 = sshll.u32 %s2982_s22, 4  ;;  %s2692_s25 = int_to_ptr.vmem [resolvable:$false] %s2691_s25 }
  0x92   : > { %s2693_s27 = scalar_lea.vmem %s2692_s25, 4096  ;;  %p2694_p6 = scmp.lt.s32.totalorder %s3239_s10, %s2692_s25 }
  0x93   : > { %p2689_p13 = pnand %p2687_p3, %p3247_p12  ;;  %p2695_p8 = scmp.lt.s32.totalorder %s2693_s27, %s2686_s28 }
  0x95   : > { %p2690_p2 = pneg %p2689_p13  ;;  %p2696_p4 = por %p2695_p8, %p2694_p6 }
  0x97   : > { %p2697_p7 = pnand %p2696_p4, %p2690_p2 }
  0x99   : > { %2700 = shalt.err (!%p2697_p7)
}
  0x9a   : > { %s2983_s7 = smov 128   ;;  %s2984_s9 = smov 8  }
  0x9b   : > { %2467 = dma.hbm_to_vmem [thread:$0]  (!%p3227_p11), %s3237_s3, 2048, %s3239_s10, %s3241_s5, %s2983_s7, %s2983_s7, %s2984_s9  }
  0x9c   : > { %s2985_s20 = smov [#allocation10]   ;;  %s2986_s30 = smov [#allocation13]  }
  0x9d   : > { %s341_s1 = sshll.u32 %s2985_s20, 4  ;;  %s365_s22 = sshll.u32 %s2986_s30, 4  ;;  %s342_s1 = int_to_ptr.vmem [resolvable:$true] %s341_s1  ;;  %s3271_s22 = int_to_ptr.vmem [resolvable:$true] %s365_s22 }
  0x9e   : > { %s2701_s27 = scalar_lea.hbm %s3731_s4, 16  ;;  %p3785_p8 = scmp.ne.s32.totalorder %s3772_s21, 0 }
  0x9f   : > { %p2702_p6 = scmp.ne.s32.totalorder %s3731_s4, %s2701_s27  ;;  %p2708_p1 = scmp.lt.u32.totalorder %s2701_s27, %s3731_s4 }
  0xa1   : > { %p2704_p2 = pnand %p2702_p6, %p3785_p8 }
  0xa3   : > { %p2705_p5 = pneg %p2704_p2 }
  0xa5   : > { %p2710_p0 = pnand %p2708_p1, %p2705_p5 }
  0xa7   : > { %2713 = shalt.err (!%p2710_p0)
}
  0xa8   : > { %s2714_s30 = scalar_lea.vmem %s342_s1, 16  ;;  %s2721_s10 = scalar_lea.vmem %s342_s1, 32 }
  0xa9   : > { %p2715_p9 = scmp.ne.s32.totalorder %s342_s1, %s2714_s30  ;;  %p2722_p13 = scmp.lt.s32.totalorder %s342_s1, %s342_s1 }
  0xaa   : > { %p2723_p4 = scmp.lt.s32.totalorder %s2721_s10, %s2714_s30 }
  0xab   : > { %p2717_p10 = pnand %p2715_p9, %p3785_p8 }
  0xac   : > { %p2724_p7 = por %p2723_p4, %p2722_p13 }
  0xad   : > { %p2718_p3 = pneg %p2717_p10 }
  0xaf   : > { %p2725_p11 = pnand %p2724_p7, %p2718_p3 }
  0xb1   : > { %2728 = shalt.err (!%p2725_p11)
}
  0xb2   : > { %p3786_p6 = scmp.ne.s32.totalorder %s3770_s23, 0  ;;  %s2729_s9 = scalar_lea.hbm %s3733_s6, 16 }
  0xb3   : > { %p2730_p2 = scmp.ne.s32.totalorder %s3733_s6, %s2729_s9  ;;  %p2736_p11 = scmp.lt.u32.totalorder %s2729_s9, %s3733_s6 }
  0xb4   : > { %2448 = dma.hbm_to_vmem [thread:$0]  (!%p3786_p6), %s3731_s4, 16, %s342_s1, [#allocation9]  }
  0xb5   : > { %p2732_p5 = pnand %p2730_p2, %p3785_p8 }
  0xb7   : > { %p2733_p1 = pneg %p2732_p5 }
  0xb9   : > { %p2738_p0 = pnand %p2736_p11, %p2733_p1 }
  0xbb   : > { %2741 = shalt.err (!%p2738_p0)
}
  0xbc   : > { %s2742_s1 = scalar_lea.vmem %s3271_s22, 16  ;;  %s2749_s3 = scalar_lea.vmem %s3271_s22, 32 }
  0xbd   : > { %p2743_p9 = scmp.ne.s32.totalorder %s3271_s22, %s2742_s1  ;;  %p2750_p13 = scmp.lt.s32.totalorder %s3271_s22, %s3271_s22 }
  0xbe   : > { %p2751_p4 = scmp.lt.s32.totalorder %s2749_s3, %s2742_s1 }
  0xbf   : > { %p2745_p10 = pnand %p2743_p9, %p3785_p8 }
  0xc0   : > { %p2752_p7 = por %p2751_p4, %p2750_p13 }
  0xc1   : > { %p2746_p3 = pneg %p2745_p10 }
  0xc3   : > { %p2753_p2 = pnand %p2752_p7, %p2746_p3 }
  0xc5   : > { %2756 = shalt.err (!%p2753_p2)
}
  0xc6   : > { %2454 = dma.hbm_to_vmem [thread:$0]  (!%p3786_p6), %s3733_s6, 16, %s3271_s22, [#allocation12]  }
  0xc7   : > { %s2987_s15 = smov [#allocation16]   ;;  %s2198_s12 = sshll.u32 %s3225_s24, 3 }
  0xc8   : > { %s389_s18 = sshll.u32 %s2987_s15, 4  ;;  %s2757_s20 = scalar_lea.hbm %s3735_s8, 16  ;;  %s390_s18 = int_to_ptr.vmem [resolvable:$true] %s389_s18 }
  0xc9   : > { %p2758_p5 = scmp.ne.s32.totalorder %s3735_s8, %s2757_s20  ;;  %p2764_p0 = scmp.lt.u32.totalorder %s2757_s20, %s3735_s8 }
  0xcb   : > { %p2760_p1 = pnand %p2758_p5, %p3785_p8 }
  0xcd   : > { %p2761_p11 = pneg %p2760_p1 }
  0xcf   : > { %p2766_p9 = pnand %p2764_p0, %p2761_p11 }
  0xd1   : > { %2769 = shalt.err (!%p2766_p9)
}
  0xd2   : > { %s2770_s22 = scalar_lea.vmem %s390_s18, 16  ;;  %s2777_s3 = scalar_lea.vmem %s390_s18, 32 }
  0xd3   : > { %p2771_p10 = scmp.ne.s32.totalorder %s390_s18, %s2770_s22  ;;  %p2778_p4 = scmp.lt.s32.totalorder %s390_s18, %s390_s18 }
  0xd4   : > { %p2779_p7 = scmp.lt.s32.totalorder %s2777_s3, %s2770_s22 }
  0xd5   : > { %p2773_p3 = pnand %p2771_p10, %p3785_p8 }
  0xd6   : > { %p2780_p2 = por %p2779_p7, %p2778_p4 }
  0xd7   : > { %p2774_p13 = pneg %p2773_p3 }
  0xd9   : > { %p2781_p12 = pnand %p2780_p2, %p2774_p13 }
  0xdb   : > { %2784 = shalt.err (!%p2781_p12)
}
  0xdc   : > { %2460 = dma.hbm_to_vmem [thread:$0]  (!%p3786_p6), %s3735_s8, 16, %s390_s18, [#allocation15]  }
  0xdd   : > { %s2199_s15 = sshll.u32 %s2971_s17, 7  ;;  %s404_s7 = scalar_lea.vmem [#allocation2], %s2198_s12 }
  0xde   : > { %s412_s21 = sshll.u32 %s404_s7, 4  ;;  %s3338_s28 = scalar_lea.hbm %s3727_s0, %s2199_s15  ;;  %s413_s21 = int_to_ptr.vmem [resolvable:$true] %s412_s21 }
  0xdf   : > { %s401_s23 = scalar_lea.sflag [#allocation3], %s3225_s24  ;;  %s2785_s25 = scalar_lea.hbm %s3338_s28, 128 }
  0xe0   : > { %p2786_p12 = scmp.ne.s32.totalorder %s3338_s28, %s2785_s25  ;;  %p3787_p8 = scmp.ne.s32.totalorder %s3784_s16, 0 }
  0xe1   : > { %s2790_s12 = scalar_lea.hbm %s3727_s0, 256  ;;  %p2791_p6 = scmp.lt.u32.totalorder %s3338_s28, %s3727_s0 }
  0xe2   : > { %p2788_p5 = pnand %p2786_p12, %p3787_p8  ;;  %p2792_p11 = scmp.lt.u32.totalorder %s2790_s12, %s2785_s25 }
  0xe3   : > { %p2794_p9 = scmp.lt.u32.totalorder %s2785_s25, %s3338_s28 }
  0xe4   : > { %p2789_p1 = pneg %p2788_p5  ;;  %p2793_p0 = por %p2792_p11, %p2791_p6 }
  0xe6   : > { %p2795_p10 = por %p2794_p9, %p2793_p0 }
  0xe8   : > { %p2796_p3 = pnand %p2795_p10, %p2789_p1 }
  0xea   : > { %2799 = shalt.err (!%p2796_p3)
}
  0xeb   : > { %s2800_s3 = scalar_lea.vmem %s413_s21, 128  ;;  %s2988_s30 = smov [#allocation2]  }
  0xec   : > { %p2801_p13 = scmp.ne.s32.totalorder %s413_s21, %s2800_s3  ;;  %s2805_s10 = sshll.u32 %s2988_s30, 4  ;;  %s2806_s10 = int_to_ptr.vmem [resolvable:$false] %s2805_s10 }
  0xed   : > { %s2807_s15 = scalar_lea.vmem %s2806_s10, 256  ;;  %p2808_p2 = scmp.lt.s32.totalorder %s413_s21, %s2806_s10 }
  0xee   : > { %p2803_p4 = pnand %p2801_p13, %p3787_p8  ;;  %p2809_p12 = scmp.lt.s32.totalorder %s2807_s15, %s2800_s3 }
  0xf0   : > { %p2804_p7 = pneg %p2803_p4  ;;  %p2810_p5 = por %p2809_p12, %p2808_p2 }
  0xf2   : > { %p2811_p6 = pnand %p2810_p5, %p2804_p7 }
  0xf4   : > { %2814 = shalt.err (!%p2811_p6)
}
  0xf5   : > { %p3788_p11 = scmp.ne.s32.totalorder %s3782_s26, 0  ;;  %s2203_s7 = sshll.u32 %s2971_s17, 4 }
  0xf6   : > { %s3362_s25 = scalar_lea.hbm %s3729_s2, %s2203_s7  ;;  %s443_s18 = scalar_lea.vmem [#allocation7], %s3225_s24 }
  0xf7   : > { %2464 = dma.hbm_to_vmem [thread:$0]  (!%p3788_p11), %s3338_s28, 128, %s413_s21, %s401_s23  }
  0xf8   : > { %s450_s27 = sshll.u32 %s443_s18, 4  ;;  %s2815_s12 = scalar_lea.hbm %s3362_s25, 16  ;;  %s451_s27 = int_to_ptr.vmem [resolvable:$true] %s450_s27 }
  0xf9   : > { %p2816_p1 = scmp.ne.s32.totalorder %s3362_s25, %s2815_s12  ;;  %s2820_s28 = scalar_lea.hbm %s3729_s2, 32 }
  0xfa   : > { %p2821_p10 = scmp.lt.u32.totalorder %s3362_s25, %s3729_s2  ;;  %p2822_p3 = scmp.lt.u32.totalorder %s2820_s28, %s2815_s12 }
  0xfb   : > { %p2818_p0 = pnand %p2816_p1, %p3787_p8  ;;  %p2824_p4 = scmp.lt.u32.totalorder %s2815_s12, %s3362_s25 }
  0xfc   : > { %p2823_p13 = por %p2822_p3, %p2821_p10 }
  0xfd   : > { %p2819_p9 = pneg %p2818_p0 }
  0xfe   : > { %p2825_p7 = por %p2824_p4, %p2823_p13 }
 0x100   : > { %p2826_p2 = pnand %p2825_p7, %p2819_p9 }
 0x102   : > { %2829 = shalt.err (!%p2826_p2)
}
 0x103   : > { %s2830_s24 = scalar_lea.vmem %s451_s27, 16  ;;  %s2989_s3 = smov [#allocation7]  }
 0x104   : > { %p2831_p12 = scmp.ne.s32.totalorder %s451_s27, %s2830_s24  ;;  %s2835_s30 = sshll.u32 %s2989_s3, 4  ;;  %s2836_s30 = int_to_ptr.vmem [resolvable:$false] %s2835_s30 }
 0x105   : > { %s2837_s10 = scalar_lea.vmem %s2836_s30, 32  ;;  %p2838_p1 = scmp.lt.s32.totalorder %s451_s27, %s2836_s30 }
 0x106   : > { %p2833_p5 = pnand %p2831_p12, %p3787_p8  ;;  %p2839_p0 = scmp.lt.s32.totalorder %s2837_s10, %s2830_s24 }
 0x108   : > { %p2834_p6 = pneg %p2833_p5  ;;  %p2840_p11 = por %p2839_p0, %p2838_p1 }
 0x10a   : > { %p2841_p3 = pnand %p2840_p11, %p2834_p6 }
 0x10c   : > { %2844 = shalt.err (!%p2841_p3)
}
 0x10d   : > { %p3789_p10 = scmp.ne.s32.totalorder %s3782_s26, 0  ;;  %s3790_s15 = sld [smem:[#allocation30_spill]] }
 0x10f   : > { %2470 = dma.hbm_to_vmem [thread:$0]  (!%p3789_p10), %s3362_s25, 16, %s451_s27, %s3241_s5  }
 0x113   : > { %p3791_p9 = scmp.ne.s32.totalorder %s3790_s15, 0 }
 0x114   : > { %s3386_s16 = sand.u32 (!%p3791_p9), 1, %s2959_s14   ;;  %p3792_p8 = scmp.ne.s32.totalorder (!%p3791_p9), %s3777_s11, 0 }
 0x115   : > { %459 = sbr.rel (%p3791_p9) target bundleno = 1944 (0x798), region = 56  ;;  %s2205_s7 = sshll.u32 (!%p3791_p9), %s3386_s16, 3 }
 0x116   : > { %s462_s9 = scalar_lea.sflag (!%p3791_p9), [#allocation3], %s3386_s16  ;;  %s465_s20 = scalar_lea.vmem (!%p3791_p9), [#allocation2], %s2205_s7 }
 0x11c   : > { %2926 = dma.done.wait (%p3792_p8), %s462_s9, 128  }
 0x11d   : > { %2928 = vsyncadd (%p3792_p8), %s462_s9, 4294967168  ;;  %s470_s5 = sand.u32 1, %s3089_s19   ;;  %s2206_s26 = sshll.u32 %s3386_s16, 7 }
 0x11e   : > { %s471_s25 = scalar_lea.sflag [#allocation6], %s470_s5  ;;  %s3398_s18 = scalar_lea.vmem [#allocation5], %s2206_s26 }
 0x11f   : > { %2930 = dma.done.wait (%p3792_p8), %s471_s25, 2064  }
 0x120   : > { %2932 = vsyncadd (%p3792_p8), %s471_s25, 4294965232  ;;  %s482_s27 = scalar_lea.vmem [#allocation7], %s3386_s16  ;;  %p3793_p11 = scmp.eq.s32.totalorder %s3089_s19, 0 }
 0x122   : > { %2934 = dma.done.wait (%p3793_p11), [#allocation9], 272   ;;  %p3794_p13 = pmov %p3793_p11 }
 0x123   : > { %p3795_p4 = pmov %p3793_p11 }
 0x124   : > { %2936 = vsyncadd (%p3794_p13), [#allocation9], 4294967024 }
 0x125   : > { %2938 = dma.done.wait (%p3795_p4), [#allocation12], 528   ;;  %p3796_p7 = pmov %p3795_p4 }
 0x126   : > { %p3797_p2 = pmov %p3795_p4 }
 0x127   : > { %2940 = vsyncadd (%p3796_p7), [#allocation12], 4294966768 }
 0x128   : > { %2942 = dma.done.wait (%p3797_p2), [#allocation15], 528   ;;  %p3798_p12 = pmov %p3797_p2 }
 0x129   : > { %v2990_v0 = vmov 0.0   ;;  %vm2991_vm0 = vmmov 0   ;;  %v2561_v1 = vld [vmem:[#allocation11] sm:$0xff]   ;;  %v2562_v2 = vld [vmem:[#allocation8] sm:$0xff]   ;;  %v2564_v4 = vld [vmem:[#allocation8 + $0x8] sm:$0xff]   ;;  %vm691_vm1 = vcmask 523264  }
 0x12a   : > { %2944 = vsyncadd (%p3798_p12), [#allocation15], 4294966768  ;;  %2304 = vmatprep.subr.bf16.mxu0 %v2990_v0  ;;  %2308 = vmatprep.mubr.msk.bf16.mxu0 %vm2991_vm0, %v2990_v0  ;;  %v2563_v3 = vld [vmem:[#allocation11 + $0x8] sm:$0xff]   ;;  %v2565_v6 = vld [vmem:[#allocation11 + $0x10] sm:$0xff]   ;;  %vm608_vm2 = vcmask 261120   ;;  %s2992_s19 = smov 120  }
 0x12b   : > { %2312 = vmatprep.subr.bf16.mxu1 %v2561_v1  ;;  %2305 = vmatpush3.bf16.msra.mxu0 %v2562_v2  ;;  %v558_v5 = vld [vmem:[%s465_s20] sm:$0xff]  ;;  %v559_v8 = vld [vmem:[%s3398_s18] sm:$0xff]  ;;  %v560_v9 = vld [vmem:[%s3398_s18 + $0x8] sm:$0xff]  ;;  %s2993_s11 = smov 112   ;;  %s2994_s12 = smov 104   ;;  %vm1208_vm3 = vcmask 1043456  }
 0x12c   : > { %2313 = vmatpush3.bf16.msra.mxu1 %v2561_v1  ;;  %2306 = vmatprep.subr.bf16.mxu0 %v2990_v0  ;;  %v576_v7 = vpack.c.bf16 %v558_v5, %v558_v5  ;;  %v577_v10 = vpack.c.bf16 %v560_v9, %v559_v8  ;;  %v2566_v11 = vld [vmem:[#allocation11 + $0x18] sm:$0xff]   ;;  %v562_v13 = vld [vmem:[%s3398_s18 + $0x18] sm:$0xff]  ;;  %v563_v14 = vld [vmem:[%s3398_s18 + $0x20] sm:$0xff]  ;;  %vm1204_vm4 = vcmask 64512   ;;  %s2214_s1 = sshll.u32 %s3386_s16, 5  ;;  %s3799_s28 = sld [smem:[#allocation28_spill]] }
 0x12d   : > { %2314 = vmatprep.subr.bf16.mxu1 %v2563_v3  ;;  %v561_v12 = vld [vmem:[%s3398_s18 + $0x10] sm:$0xff]  ;;  %v564_v15 = vld [vmem:[%s3398_s18 + $0x28] sm:$0xff]  ;;  %v566_v19 = vld [vmem:[%s3398_s18 + $0x38] sm:$0xff]  ;;  %s3581_s21 = scalar_lea.vmem [#allocation18], %s2214_s1  ;;  %s3800_s30 = sld [smem:[#allocation39_spill]] }
 0x12e   : > { %2320 = vmatprep.mubr.msk.bf16.mxu1 %vm691_vm1, %v577_v10  ;;  %v578_v16 = vpack.c.bf16 %v562_v13, %v561_v12  ;;  %v579_v17 = vpack.c.bf16 %v564_v15, %v563_v14  ;;  %v565_v18 = vld [vmem:[%s3398_s18 + $0x30] sm:$0xff]  ;;  %v567_v20 = vld [vmem:[%s3398_s18 + $0x40] sm:$0xff]  ;;  %v568_v21 = vld [vmem:[%s3398_s18 + $0x48] sm:$0xff]  ;;  %s1974_s23 = sshll.u32 %s3581_s21, 4  ;;  %s1946_s15 = scalar_lea.sflag [#allocation19], %s3386_s16  ;;  %s3638_s23 = int_to_ptr.vmem [resolvable:$true] %s1974_s23 }
 0x12f   : > { %2307 = vmatpush3.bf16.msra.mxu0 %v2564_v4  ;;  %v580_v22 = vpack.c.bf16 %v566_v19, %v565_v18  ;;  %v581_v23 = vpack.c.bf16 %v568_v21, %v567_v20  ;;  %v569_v24 = vld [vmem:[%s3398_s18 + $0x50] sm:$0xff]  ;;  %v570_v25 = vld [vmem:[%s3398_s18 + $0x58] sm:$0xff]  ;;  %v571_v26 = vld [vmem:[%s3398_s18 + $0x60] sm:$0xff]  ;;  %s2845_s9 = scalar_lea.vmem %s3638_s23, 512  ;;  %p3801_p6 = scmp.ne.s32.totalorder %s3778_s29, 0 }
 0x130   : > { %2315 = vmatpush3.bf16.msra.mxu1 %v2563_v3  ;;  %v572_v27 = vld [vmem:[%s3398_s18 + $0x68] sm:$0xff]  ;;  %v582_v28 = vpack.c.bf16 %v570_v25, %v569_v24  ;;  %v573_v30 = vld [vmem:[%s3398_s18 + $0x70] sm:$0xff]  ;;  %v574_v31 = vld [vmem:[%s3398_s18 + $0x78] sm:$0xff]  ;;  %p2846_p5 = scmp.ne.s32.totalorder %s3638_s23, %s2845_s9  ;;  %s2997_s20 = smov [#allocation18]  }
 0x131   : > { %2316 = vmatprep.subr.bf16.mxu1 %v2565_v6  ;;  %v583_v29 = vpack.c.bf16 %v572_v27, %v571_v26  ;;  %v584_v32 = vpack.c.bf16 %v574_v31, %v573_v30  ;;  %v2567_v33 = vld [vmem:[#allocation14] sm:$0xff]   ;;  %v2568_v34 = vld [vmem:[#allocation14 + $0x8] sm:$0xff]   ;;  %v2569_v35 = vld [vmem:[#allocation14 + $0x10] sm:$0xff]   ;;  %s2849_s5 = sshll.u32 %s2997_s20, 4  ;;  %s2850_s5 = int_to_ptr.vmem [resolvable:$false] %s2849_s5 }
 0x132   : > { %2309 = vmatmul.mubr.msk.bf16.vlgmr.msra.gmra.mrb[0].mxu0 %vm608_vm2, %v576_v7  ;;  %2336 = vmatprep.subr.bf16.mxu0 %v2567_v33  ;;  %v2570_v36 = vld [vmem:[#allocation14 + $0x18] sm:$0xff]   ;;  %s2260_s22 = sshll.u32 %s3799_s28, 9  ;;  %p2847_p1 = pnand %p2846_p5, %p3801_p6 }
 0x133   : > { %2344 = vmatprep.mubr.msk.bf16.mxu0 %vm691_vm1, %v577_v10  ;;  %2337 = vmatpush3.bf16.msra.mxu0 %v2567_v33  ;;  %v2215_v37 = vld [vmem:[#allocation10] ss:$0 sm:$0xff]  ;;  %v2219_v46 = vld [vmem:[#allocation13] ss:$0 sm:$0xff]  ;;  %s3644_s10 = scalar_lea.hbm %s3800_s30, %s2260_s22  ;;  %s2851_s26 = scalar_lea.vmem %s2850_s5, 1024 }
 0x134   : > { %2317 = vmatpush3.bf16.msra.mxu1 %v2565_v6  ;;  %2338 = vmatprep.subr.bf16.mxu0 %v2568_v34  ;;  %p2848_p0 = pneg %p2847_p1  ;;  %p2852_p3 = scmp.lt.s32.totalorder %s3638_s23, %s2850_s5 }
 0x135   : > { %2318 = vmatprep.subr.bf16.mxu1 %v2566_v11  ;;  %p2853_p10 = scmp.lt.s32.totalorder %s2851_s26, %s2845_s9 }
 0x137   : > { %2339 = vmatpush3.bf16.msra.mxu0 %v2568_v34  ;;  %v2232_v34 = vld [vmem:[#allocation16] ss:$0 sm:$0xff]  ;;  %p2854_p9 = por %p2853_p10, %p2852_p3 }
 0x138   : > { %2319 = vmatpush3.bf16.msra.mxu1 %v2566_v11  ;;  %2340 = vmatprep.subr.bf16.mxu0 %v2569_v35 }
 0x139   : > { %2360 = vmatprep.subr.bf16.mxu1 %v2990_v0  ;;  %p2855_p8 = pnand %p2854_p9, %p2848_p0 }
 0x13b   : > { %2321 = vmatmul.mubr.msk.bf16.vlgmr.msra.gmra.mrb[0].mxu1 %vm691_vm1, %v578_v16  ;;  %2341 = vmatpush3.bf16.msra.mxu0 %v2569_v35 }
 0x13c   : > { %2324 = vmatprep.mubr.msk.bf16.mxu1 %vm691_vm1, %v579_v17  ;;  %2342 = vmatprep.subr.bf16.mxu0 %v2570_v36 }
 0x13f   : > { %2343 = vmatpush3.bf16.msra.mxu0 %v2570_v36 }
 0x140   : > { %2366 = vmatprep.subr.bf16.mxu0 %v2990_v0 }
 0x142   : > { %2345 = vmatmul.mubr.msk.bf16.vlgmr.msra.gmra.mrb[4].mxu0 %vm691_vm1, %v578_v16 }
 0x143   : > { %2325 = vmatmul.mubr.msk.bf16.gmra.mrb[4].mxu1 %vm691_vm1, %v580_v22  ;;  %2348 = vmatprep.mubr.msk.bf16.mxu0 %vm691_vm1, %v579_v17 }
 0x144   : > { %2328 = vmatprep.mubr.msk.bf16.mxu1 %vm691_vm1, %v581_v23 }
 0x14a   : > { %2349 = vmatmul.mubr.msk.bf16.gmra.mrb[8].mxu0 %vm691_vm1, %v580_v22 }
 0x14b   : > { %2329 = vmatmul.mubr.msk.bf16.gmra.mrb[8].mxu1 %vm691_vm1, %v582_v28  ;;  %2352 = vmatprep.mubr.msk.bf16.mxu0 %vm691_vm1, %v581_v23 }
 0x14c   : > { %2332 = vmatprep.mubr.msk.bf16.mxu1 %vm691_vm1, %v583_v29 }
 0x152   : > { %2353 = vmatmul.mubr.msk.bf16.gmra.mrb[12].mxu0 %vm691_vm1, %v582_v28 }
 0x153   : > { %2333 = vmatmul.mubr.msk.bf16.gmra.mrb[12].mxu1 %vm691_vm1, %v584_v32  ;;  %2356 = vmatprep.mubr.msk.bf16.mxu0 %vm691_vm1, %v583_v29 }
 0x154   : > { %2362 = vmatprep.mubr.msk.bf16.mxu1 %vm2991_vm0, %v2990_v0 }
 0x15a   : > { %2357 = vmatmul.mubr.msk.bf16.gmra.mrb[16].mxu0 %vm691_vm1, %v584_v32 }
 0x15b   : > { %2368 = vmatprep.mubr.msk.bf16.mxu0 %vm2991_vm0, %v2990_v0 }
 0x205   : > { %v646_v38 = vpop.f32.mrb[0].mxu0 }
 0x206   : > { %v647_v39 = vadd.f32 %v2215_v37, %v646_v38  ;;  %v2310_v40 = vpop.f32.mrb[1].mxu0 }
 0x207   : > { %v649_v41 = vpop.f32.mrb[2].mxu0 }
 0x208   : > { %v949_v42 = vmul.f32 0.35355338, %v647_v39  ;;  %v2311_v43 = vpop.f32.mrb[3].mxu0 }
 0x20a   : > { %v3460_v44 = vpack.c.bf16 %v949_v42, %v949_v42 }
 0x20c   : > { %952 = vrot.lane.b32.xlu0 %v3460_v44, %s2992_s19  ;;  %954 = vrot.lane.b32.xlu1 %v3460_v44, %s2993_s11 }
 0x20e   : > { %v2322_v45 = vpop.f32.mrb[0].mxu1 }
 0x20f   : > { %v750_v47 = vpop.f32.mrb[1].mxu1  ;;  %v759_v49 = vadd.f32 %v2322_v45, %v2219_v46 }
 0x210   : > { %v2323_v48 = vpop.f32.mrb[2].mxu1  ;;  %956 = vrot.lane.b32.xlu0 %v3460_v44, %s2994_s12  ;;  %v751_v52 = vadd.f32 %v2219_v46, %v750_v47 }
 0x211   : > { %v762_v50 = vadd.f32 %v2323_v48, %v2219_v46  ;;  %v753_v51 = vpop.f32.mrb[3].mxu1 }
 0x212   : > { %v754_v53 = vadd.f32 %v2219_v46, %v753_v51 }
 0x213   : > { %v959_v54 = vpack.c.bf16 %v762_v50, %v759_v49 }
 0x214   : > { %v958_v55 = vpack.c.bf16 %v754_v53, %v751_v52 }
 0x215   : > { %1024 = vrot.lane.b32.xlu1 %v959_v54, %s2994_s12  ;;  %976 = vrot.lane.b32.xlu0 %v959_v54, %s2992_s19  ;;  %v2346_v30 = vpop.f32.mrb[4].mxu0 }
 0x216   : > { %v2326_v56 = vpop.f32.mrb[4].mxu1  ;;  %v886_v31 = vpop.f32.mrb[5].mxu0  ;;  %v895_v42 = vadd.f32 %v2346_v30, %v2232_v34 }
 0x217   : > { %v766_v57 = vpop.f32.mrb[5].mxu1  ;;  %v775_v59 = vadd.f32 %v2326_v56, %v2219_v46  ;;  %v2347_v35 = vpop.f32.mrb[6].mxu0  ;;  %v887_v36 = vadd.f32 %v2232_v34, %v886_v31 }
 0x218   : > { %v2327_v58 = vpop.f32.mrb[6].mxu1  ;;  %v767_v62 = vadd.f32 %v2219_v46, %v766_v57  ;;  %v889_v37 = vpop.f32.mrb[7].mxu0  ;;  %v898_v43 = vadd.f32 %v2347_v35, %v2232_v34 }
 0x219   : > { %v778_v60 = vadd.f32 %v2327_v58, %v2219_v46  ;;  %v769_v61 = vpop.f32.mrb[7].mxu1  ;;  %998 = vrot.lane.b32.xlu1 %v958_v55, %s2993_s11  ;;  %1000 = vrot.lane.b32.xlu0 %v959_v54, %s2993_s11  ;;  %v890_v38 = vadd.f32 %v2232_v34, %v889_v37 }
 0x21a   : > { %v770_v63 = vadd.f32 %v2219_v46, %v769_v61  ;;  %v3504_v49 = vpack.c.bf16 %v898_v43, %v895_v42 }
 0x21b   : > { %v961_v1 = vpack.c.bf16 %v778_v60, %v775_v59  ;;  %v3502_v41 = vpack.c.bf16 %v890_v38, %v887_v36 }
 0x21c   : > { %v960_v2 = vpack.c.bf16 %v770_v63, %v767_v62 }
 0x21d   : > { %980 = vrot.lane.b32.xlu1 %v961_v1, %s2992_s19  ;;  %974 = vrot.lane.b32.xlu0 %v958_v55, %s2992_s19  ;;  %v2350_v45 = vpop.f32.mrb[8].mxu0 }
 0x21e   : > { %v2330_v3 = vpop.f32.mrb[8].mxu1  ;;  %v911_v57 = vadd.f32 %v2350_v45, %v2232_v34 }
 0x21f   : > { %v791_v4 = vadd.f32 %v2330_v3, %v2219_v46  ;;  %v782_v5 = vpop.f32.mrb[9].mxu1 }
 0x220   : > { %v783_v6 = vadd.f32 %v2219_v46, %v782_v5  ;;  %v2331_v7 = vpop.f32.mrb[10].mxu1 }
 0x221   : > { %1028 = vrot.lane.b32.xlu1 %v961_v1, %s2994_s12  ;;  %1022 = vrot.lane.b32.xlu0 %v958_v55, %s2994_s12  ;;  %v794_v8 = vadd.f32 %v2331_v7, %v2219_v46  ;;  %v785_v9 = vpop.f32.mrb[11].mxu1 }
 0x222   : > { %v786_v10 = vadd.f32 %v2219_v46, %v785_v9 }
 0x223   : > { %v963_v11 = vpack.c.bf16 %v794_v8, %v791_v4 }
 0x224   : > { %v962_v12 = vpack.c.bf16 %v786_v10, %v783_v6 }
 0x225   : > { %978 = vrot.lane.b32.xlu1 %v960_v2, %s2992_s19  ;;  %1004 = vrot.lane.b32.xlu0 %v961_v1, %s2993_s11 }
 0x226   : > { %v2334_v13 = vpop.f32.mrb[12].mxu1 }
 0x227   : > { %v807_v14 = vadd.f32 %v2334_v13, %v2219_v46  ;;  %v798_v15 = vpop.f32.mrb[13].mxu1 }
 0x228   : > { %v799_v16 = vadd.f32 %v2219_v46, %v798_v15  ;;  %v2335_v17 = vpop.f32.mrb[14].mxu1 }
 0x229   : > { %1002 = vrot.lane.b32.xlu1 %v960_v2, %s2993_s11  ;;  %1026 = vrot.lane.b32.xlu0 %v960_v2, %s2994_s12  ;;  %v810_v18 = vadd.f32 %v2335_v17, %v2219_v46  ;;  %v801_v19 = vpop.f32.mrb[15].mxu1 }
 0x22a   : > { %v802_v20 = vadd.f32 %v2219_v46, %v801_v19  ;;  %v902_v46 = vpop.f32.mrb[9].mxu0 }
 0x22b   : > { %v965_v21 = vpack.c.bf16 %v810_v18, %v807_v14  ;;  %v2351_v50 = vpop.f32.mrb[10].mxu0  ;;  %v903_v51 = vadd.f32 %v2232_v34, %v902_v46 }
 0x22c   : > { %v964_v22 = vpack.c.bf16 %v802_v20, %v799_v16  ;;  %v905_v52 = vpop.f32.mrb[11].mxu0  ;;  %v914_v58 = vadd.f32 %v2351_v50, %v2232_v34 }
 0x22d   : > { %984 = vrot.lane.b32.xlu1 %v963_v11, %s2992_s19  ;;  %1008 = vrot.lane.b32.xlu0 %v963_v11, %s2993_s11  ;;  %v906_v53 = vadd.f32 %v2232_v34, %v905_v52  ;;  %v2354_v59 = vpop.f32.mrb[12].mxu0 }
 0x22e   : > { %v918_v60 = vpop.f32.mrb[13].mxu0  ;;  %v3508_v63 = vpack.c.bf16 %v914_v58, %v911_v57  ;;  %v927_v7 = vadd.f32 %v2354_v59, %v2232_v34 }
 0x22f   : > { %v3506_v56 = vpack.c.bf16 %v906_v53, %v903_v51 }
 0x231   : > { %1032 = vrot.lane.b32.xlu1 %v963_v11, %s2994_s12  ;;  %982 = vrot.lane.b32.xlu0 %v962_v12, %s2992_s19 }
 0x235   : > { %1030 = vrot.lane.b32.xlu1 %v962_v12, %s2994_s12  ;;  %1006 = vrot.lane.b32.xlu0 %v962_v12, %s2993_s11 }
 0x239   : > { %988 = vrot.lane.b32.xlu1 %v965_v21, %s2992_s19  ;;  %1012 = vrot.lane.b32.xlu0 %v965_v21, %s2993_s11 }
 0x23d   : > { %1036 = vrot.lane.b32.xlu1 %v965_v21, %s2994_s12  ;;  %986 = vrot.lane.b32.xlu0 %v964_v22, %s2992_s19 }
 0x241   : > { %1034 = vrot.lane.b32.xlu1 %v964_v22, %s2994_s12  ;;  %1010 = vrot.lane.b32.xlu0 %v964_v22, %s2993_s11 }
 0x264   : > { %1140 = vxpose.xlu1.c.b16.start [1/8] (narrow) %v958_v55, 16 }
 0x268   : > { %1141 = vxpose.xlu1.c.b16.cont [2/8] (narrow) %v959_v54, 16 }
 0x26c   : > { %1142 = vxpose.xlu1.c.b16.cont [3/8] (narrow) %v960_v2, 16  ;;  %v919_v2 = vadd.f32 %v2232_v34, %v918_v60 }
 0x270   : > { %1143 = vxpose.xlu1.c.b16.cont [4/8] (narrow) %v961_v1, 16  ;;  %v2355_v1 = vpop.f32.mrb[14].mxu0 }
 0x271   : > { %v921_v3 = vpop.f32.mrb[15].mxu0  ;;  %v930_v8 = vadd.f32 %v2355_v1, %v2232_v34 }
 0x272   : > { %v922_v4 = vadd.f32 %v2232_v34, %v921_v3 }
 0x273   : > { %v3512_v10 = vpack.c.bf16 %v930_v8, %v927_v7 }
 0x274   : > { %1144 = vxpose.xlu1.c.b16.cont [5/8] (narrow) %v962_v12, 16  ;;  %v3510_v9 = vpack.c.bf16 %v922_v4, %v919_v2 }
 0x278   : > { %1145 = vxpose.xlu1.c.b16.cont [6/8] (narrow) %v963_v11, 16  ;;  %v2358_v11 = vpop.f32.mrb[16].mxu0 }
 0x279   : > { %v934_v12 = vpop.f32.mrb[17].mxu0  ;;  %v943_v15 = vadd.f32 %v2358_v11, %v2232_v34 }
 0x27a   : > { %v935_v16 = vadd.f32 %v2232_v34, %v934_v12  ;;  %v2359_v17 = vpop.f32.mrb[18].mxu0 }
 0x27b   : > { %v946_v18 = vadd.f32 %v2359_v17, %v2232_v34  ;;  %v937_v19 = vpop.f32.mrb[19].mxu0 }
 0x27c   : > { %1146 = vxpose.xlu1.c.b16.cont [7/8] (narrow) %v964_v22, 16  ;;  %v938_v20 = vadd.f32 %v2232_v34, %v937_v19 }
 0x27e   : > { %v3492_v23 = vpop.permute.xlu0 %952  ;;  %v3494_v24 = vpop.permute.xlu1 %954 }
 0x280   : > { %1147 = vxpose.xlu1.c.b16.end [8/8] (narrow) %v965_v21, 16 }
 0x282   : > { %v3496_v25 = vpop.permute.xlu0 %956 }
 0x287   : > { %v1025_v26 = vpop.permute.xlu1 %1024  ;;  %v977_v27 = vpop.permute.xlu0 %976 }
 0x28b   : > { %v3498_v28 = vpop.permute.xlu1 %998  ;;  %v3500_v29 = vpop.permute.xlu0 %1000 }
 0x28f   : > { %v981_v32 = vpop.permute.xlu1 %980  ;;  %v975_v33 = vpop.permute.xlu0 %974 }
 0x290   : > { %1156 = vxpose.xlu0.c.b16.start [1/8] (narrow) %v975_v33, 16 }
 0x293   : > { %v1029_v39 = vpop.permute.xlu1 %1028  ;;  %v1023_v40 = vpop.permute.xlu0 %1022 }
 0x294   : > { %1157 = vxpose.xlu0.c.b16.cont [2/8] (narrow) %v977_v27, 16  ;;  %1188 = vxpose.xlu1.c.b16.start [1/8] (narrow) %v1023_v40, 16  ;;  %v3516_v27 = vpack.c.bf16 %v938_v20, %v935_v16 }
 0x297   : > { %v979_v47 = vpop.permute.xlu1 %978  ;;  %v1005_v48 = vpop.permute.xlu0 %1004 }
 0x298   : > { %1158 = vxpose.xlu0.c.b16.cont [3/8] (narrow) %v979_v47, 16  ;;  %1189 = vxpose.xlu1.c.b16.cont [2/8] (narrow) %v1025_v26, 16  ;;  %v3514_v26 = vpack.c.bf16 %v946_v18, %v943_v15 }
 0x29b   : > { %v1003_v54 = vpop.permute.xlu1 %1002  ;;  %v1027_v55 = vpop.permute.xlu0 %1026 }
 0x29c   : > { %1159 = vxpose.xlu0.c.b16.cont [4/8] (narrow) %v981_v32, 16  ;;  %1190 = vxpose.xlu1.c.b16.cont [3/8] (narrow) %v1027_v55, 16 }
 0x29f   : > { %v985_v61 = vpop.permute.xlu1 %984  ;;  %v1009_v62 = vpop.permute.xlu0 %1008 }
 0x2a0   : > { %1191 = vxpose.xlu1.c.b16.cont [4/8] (narrow) %v1029_v39, 16 }
 0x2a3   : > { %v1033_v5 = vpop.permute.xlu1 %1032  ;;  %v983_v6 = vpop.permute.xlu0 %982 }
 0x2a4   : > { %1160 = vxpose.xlu0.c.b16.cont [5/8] (narrow) %v983_v6, 16 }
 0x2a7   : > { %v1031_v13 = vpop.permute.xlu1 %1030  ;;  %v1007_v14 = vpop.permute.xlu0 %1006 }
 0x2a8   : > { %1192 = vxpose.xlu1.c.b16.cont [5/8] (narrow) %v1031_v13, 16  ;;  %1161 = vxpose.xlu0.c.b16.cont [6/8] (narrow) %v985_v61, 16 }
 0x2ab   : > { %v989_v21 = vpop.permute.xlu1 %988  ;;  %v1013_v22 = vpop.permute.xlu0 %1012 }
 0x2ac   : > { %1193 = vxpose.xlu1.c.b16.cont [6/8] (narrow) %v1033_v5, 16 }
 0x2af   : > { %v1037_v30 = vpop.permute.xlu1 %1036  ;;  %v987_v31 = vpop.permute.xlu0 %986 }
 0x2b0   : > { %1162 = vxpose.xlu0.c.b16.cont [7/8] (narrow) %v987_v31, 16 }
 0x2b3   : > { %v1035_v32 = vpop.permute.xlu1 %1034 }
 0x2b4   : > { %1194 = vxpose.xlu1.c.b16.cont [7/8] (narrow) %v1035_v32, 16  ;;  %1163 = vxpose.xlu0.c.b16.end [8/8] (narrow) %v989_v21, 16 }
 0x2b8   : > { %1195 = vxpose.xlu1.c.b16.end [8/8] (narrow) %v1037_v30, 16  ;;  %1172 = vxpose.xlu0.c.b16.start [1/8] (narrow) %v3498_v28, 16 }
 0x2bc   : > { %1173 = vxpose.xlu0.c.b16.cont [2/8] (narrow) %v3500_v29, 16  ;;  %1064 = vrot.lane.b32.xlu1 %v3504_v49, %s2992_s19  ;;  %v1011_v29 = vpop.permute.xlu0 %1010 }
 0x2c0   : > { %1174 = vxpose.xlu0.c.b16.cont [3/8] (narrow) %v1003_v54, 16  ;;  %1066 = vrot.lane.b32.xlu1 %v3506_v56, %s2992_s19 }
 0x2c4   : > { %1175 = vxpose.xlu0.c.b16.cont [4/8] (narrow) %v1005_v48, 16  ;;  %1070 = vrot.lane.b32.xlu1 %v3510_v9, %s2992_s19 }
 0x2c8   : > { %1176 = vxpose.xlu0.c.b16.cont [5/8] (narrow) %v1007_v14, 16  ;;  %1110 = vrot.lane.b32.xlu1 %v3502_v41, %s2994_s12 }
 0x2ca   : > { %v1148_v33 = vpop.trf.xlu1 }
 0x2cb   : > { %v1210_v28 = vsel %vm1208_vm3, %v1148_v33, 0 }
 0x2cc   : > { %2361 = vmatpush3.bf16.msra.mxu1 %v1210_v28  ;;  %1177 = vxpose.xlu0.c.b16.cont [6/8] (narrow) %v1009_v62, 16 }
 0x2cd   : > { %2372 = vmatprep.subr.bf16.mxu1 %v2990_v0  ;;  %1088 = vrot.lane.b32.xlu1 %v3504_v49, %s2993_s11 }
 0x2cf   : > { %2363 = vmatmul.mubr.msk.bf16.vlgmr.msra.gmra.mrb[16].mxu1 %vm1204_vm4, %v3460_v44 }
 0x2d0   : > { %1178 = vxpose.xlu0.c.b16.cont [7/8] (narrow) %v1011_v29, 16  ;;  %2374 = vmatprep.mubr.msk.bf16.mxu1 %vm2991_vm0, %v2990_v0 }
 0x2d1   : > { %1074 = vrot.lane.b32.xlu1 %v3516_v27, %s2992_s19 }
 0x2d4   : > { %1179 = vxpose.xlu0.c.b16.end [8/8] (narrow) %v1013_v22, 16 }
 0x2d8   : > { %1434 = vxpose.xlu0.c.b16.start [1/8] (narrow) %v3502_v41, 16 }
 0x2dc   : > { %1435 = vxpose.xlu0.c.b16.cont [2/8] (narrow) %v3504_v49, 16 }
 0x2e0   : > { %1436 = vxpose.xlu0.c.b16.cont [3/8] (narrow) %v3506_v56, 16 }
 0x2e4   : > { %1437 = vxpose.xlu0.c.b16.cont [4/8] (narrow) %v3508_v63, 16 }
 0x2e8   : > { %1438 = vxpose.xlu0.c.b16.cont [5/8] (narrow) %v3510_v9, 16 }
 0x2ec   : > { %1439 = vxpose.xlu0.c.b16.cont [6/8] (narrow) %v3512_v10, 16 }
 0x2f0   : > { %1440 = vxpose.xlu0.c.b16.cont [7/8] (narrow) %v3516_v27, 16 }
 0x2f4   : > { %1441 = vxpose.xlu0.c.b16.end [8/8] (narrow) %v3514_v26, 16 }
 0x2fd   : > { %1062 = vrot.lane.b32.xlu0 %v3502_v41, %s2992_s19 }
 0x2fe   : > { %v1164_v44 = vpop.trf.xlu0 }
 0x2ff   : > { %v1256_v34 = vsel %vm1208_vm3, %v1164_v44, 0 }
 0x300   : > { %2367 = vmatpush3.bf16.msra.mxu0 %v1256_v34 }
 0x301   : > { %2378 = vmatprep.subr.bf16.mxu0 %v2990_v0  ;;  %1068 = vrot.lane.b32.xlu0 %v3508_v63, %s2992_s19 }
 0x302   : > { %v1196_v35 = vpop.trf.xlu1 }
 0x303   : > { %2369 = vmatmul.mubr.msk.bf16.vlgmr.msra.gmra.mrb[20].mxu0 %vm1204_vm4, %v3492_v23  ;;  %v1348_v36 = vsel %vm1208_vm3, %v1196_v35, 0 }
 0x304   : > { %2379 = vmatpush3.bf16.msra.mxu0 %v1348_v36  ;;  %2380 = vmatprep.mubr.msk.bf16.mxu0 %vm2991_vm0, %v2990_v0 }
 0x305   : > { %1086 = vrot.lane.b32.xlu0 %v3502_v41, %s2993_s11  ;;  %2390 = vmatprep.subr.bf16.mxu0 %v2990_v0 }
 0x309   : > { %1072 = vrot.lane.b32.xlu0 %v3512_v10, %s2992_s19 }
 0x30b   : > { %2381 = vmatmul.mubr.msk.bf16.vlgmr.msra.gmra.mrb[24].mxu0 %vm1204_vm4, %v3496_v25  ;;  %v2245_v25 = vld [vmem:[%s482_s27] ss:$0 sm:$0xff] }
 0x30c   : > { %2392 = vmatprep.mubr.msk.bf16.mxu0 %vm2991_vm0, %v2990_v0 }
 0x30d   : > { %1112 = vrot.lane.b32.xlu0 %v3504_v49, %s2994_s12 }
 0x311   : > { %1090 = vrot.lane.b32.xlu0 %v3506_v56, %s2993_s11 }
 0x31e   : > { %v1180_v23 = vpop.trf.xlu0 }
 0x31f   : > { %v1302_v37 = vsel %vm1208_vm3, %v1180_v23, 0 }
 0x320   : > { %2373 = vmatpush3.bf16.msra.mxu1 %v1302_v37 }
 0x321   : > { %2384 = vmatprep.subr.bf16.mxu1 %v2990_v0 }
 0x323   : > { %2375 = vmatmul.mubr.msk.bf16.vlgmr.msra.gmra.mrb[20].mxu1 %vm1204_vm4, %v3494_v24 }
 0x324   : > { %2386 = vmatprep.mubr.msk.bf16.mxu1 %vm2991_vm0, %v2990_v0 }
 0x32e   : > { %v1065_v60 = vpop.permute.xlu1 %1064 }
 0x332   : > { %v1067_v62 = vpop.permute.xlu1 %1066 }
 0x336   : > { %v1071_v2 = vpop.permute.xlu1 %1070 }
 0x33a   : > { %v1111_v4 = vpop.permute.xlu1 %1110 }
 0x33e   : > { %v3594_v59 = vpop.trf.xlu0 }
 0x33f   : > { %v3604_v6 = vpop.permute.xlu1 %1088 }
 0x343   : > { %v1075_v7 = vpop.permute.xlu1 %1074 }
 0x36f   : > { %v1063_v61 = vpop.permute.xlu0 %1062 }
 0x373   : > { %v1069_v1 = vpop.permute.xlu0 %1068 }
 0x377   : > { %v3598_v3 = vpop.permute.xlu0 %1086 }
 0x37b   : > { %v1073_v5 = vpop.permute.xlu0 %1072 }
 0x37f   : > { %v1113_v8 = vpop.permute.xlu0 %1112 }
 0x383   : > { %v3610_v11 = vpop.permute.xlu0 %1090 }
 0x3a2   : > { %v1246_v38 = vpop.f32.mrb[16].mxu1 }
 0x3a3   : > { %v3579_v39 = vadd.f32 %v2245_v25, %v1246_v38  ;;  %v2364_v40 = vpop.f32.mrb[17].mxu1 }
 0x3a4   : > { %v1249_v41 = vpop.f32.mrb[18].mxu1 }
 0x3a5   : > { %1390 = vst [vmem:[%s3581_s21] sm:$0xff] %v3579_v39  ;;  %v2365_v42 = vpop.f32.mrb[19].mxu1  ;;  %1394 = vmax.xlane.f32.xlu0 %v3579_v39 }
 0x3bb   : > { %1076 = vrot.lane.b32.xlu0 %v3514_v26, %s2992_s19 }
 0x3d6   : > { %v1292_v24 = vpop.f32.mrb[20].mxu0 }
 0x3d7   : > { %v1293_v43 = vadd.f32 %v2245_v25, %v1292_v24  ;;  %v2370_v45 = vpop.f32.mrb[21].mxu0 }
 0x3d8   : > { %v1295_v46 = vpop.f32.mrb[22].mxu0 }
 0x3d9   : > { %1391 = vst [vmem:[%s3581_s21 + $0x8] sm:$0xff] %v1293_v43  ;;  %v2371_v47 = vpop.f32.mrb[23].mxu0  ;;  %1396 = vmax.xlane.f32.xlu1 %v1293_v43 }
 0x3de   : > { %v1384_v48 = vpop.f32.mrb[24].mxu0 }
 0x3df   : > { %v3589_v49 = vadd.f32 %v2245_v25, %v1384_v48  ;;  %v2382_v50 = vpop.f32.mrb[25].mxu0 }
 0x3e0   : > { %v1387_v51 = vpop.f32.mrb[26].mxu0 }
 0x3e1   : > { %1393 = vst [vmem:[%s3581_s21 + $0x18] sm:$0xff] %v3589_v49  ;;  %v2383_v52 = vpop.f32.mrb[27].mxu0 }
 0x3f6   : > { %v1338_v53 = vpop.f32.mrb[20].mxu1 }
 0x3f7   : > { %v1339_v54 = vadd.f32 %v2245_v25, %v1338_v53  ;;  %v2376_v55 = vpop.f32.mrb[21].mxu1 }
 0x3f8   : > { %v1341_v57 = vpop.f32.mrb[22].mxu1 }
 0x3f9   : > { %1392 = vst [vmem:[%s3581_s21 + $0x10] sm:$0xff] %v1339_v54  ;;  %v2377_v58 = vpop.f32.mrb[23].mxu1  ;;  %1398 = vmax.xlane.f32.xlu0 %v1339_v54 }
 0x406   : > { %1450 = vxpose.xlu1.c.b16.start [1/8] (narrow) %v1063_v61, 16 }
 0x40a   : > { %1451 = vxpose.xlu1.c.b16.cont [2/8] (narrow) %v1065_v60, 16 }
 0x40e   : > { %1452 = vxpose.xlu1.c.b16.cont [3/8] (narrow) %v1067_v62, 16 }
 0x40f   : > { %1116 = vrot.lane.b32.xlu0 %v3508_v63, %s2994_s12 }
 0x412   : > { %1453 = vxpose.xlu1.c.b16.cont [4/8] (narrow) %v1069_v1, 16 }
 0x413   : > { %1118 = vrot.lane.b32.xlu0 %v3510_v9, %s2994_s12 }
 0x416   : > { %1454 = vxpose.xlu1.c.b16.cont [5/8] (narrow) %v1071_v2, 16 }
 0x417   : > { %1096 = vrot.lane.b32.xlu0 %v3512_v10, %s2993_s11 }
 0x41a   : > { %1455 = vxpose.xlu1.c.b16.cont [6/8] (narrow) %v1073_v5, 16 }
 0x41b   : > { %1122 = vrot.lane.b32.xlu0 %v3516_v27, %s2994_s12 }
 0x41e   : > { %1456 = vxpose.xlu1.c.b16.cont [7/8] (narrow) %v1075_v7, 16 }
 0x41f   : > { %1124 = vrot.lane.b32.xlu0 %v3514_v26, %s2994_s12 }
 0x432   : > { %v1395_v12 = vpop.xlane.xlu0 %1394 }
 0x436   : > { %v1077_v13 = vpop.permute.xlu0 %1076 }
 0x437   : > { %1457 = vxpose.xlu1.c.b16.end [8/8] (narrow) %v1077_v13, 16 }
 0x43b   : > { %1114 = vrot.lane.b32.xlu1 %v3506_v56, %s2994_s12  ;;  %v1402_v56 = vsub.f32 %v3579_v39, %v1395_v12  ;;  %v2995_v12 = vmov 1983009808  }
 0x43c   : > { %v1789_v13 = vunpack.c.l.s4 %v2995_v12 }
 0x43d   : > { %v1406_v19 = vmul.f32 1.442695, %v1402_v56 }
 0x45f   : > { %1400 = vmax.xlane.f32.xlu1 %v3589_v49 }
 0x466   : > { %v1397_v14 = vpop.xlane.xlu1 %1396 }
 0x467   : > { %v1403_v15 = vsub.f32 %v1293_v43, %v1397_v14  ;;  %v1791_v14 = vlaneseq }
 0x469   : > { %v1408_v16 = vmul.f32 1.442695, %v1403_v15  ;;  %v2996_v15 = vmov 1934713408   ;;  %v1792_v56 = vshrl.u32 %v1791_v14, 7 }
 0x46b   : > { %2571 = vpow2.f32 %v1408_v16  ;;  %v1821_v16 = vunpack.c.l.s4 %v2996_v15 }
 0x46c   : > { %2573 = vpow2.f32 %v1406_v19 }
 0x46d   : > { %v1822_v19 = vunpack.c.0.s8 %v1821_v16 }
 0x470   : > { %1092 = vrot.lane.b32.xlu1 %v3508_v63, %s2993_s11 }
 0x474   : > { %1094 = vrot.lane.b32.xlu1 %v3510_v9, %s2993_s11 }
 0x475   : > { %v2572_v17 = vpop.eup %2571 }
 0x476   : > { %1416 = vadd.xlane.f32.xlu0 %v2572_v17  ;;  %v2574_v9 = vpop.eup %2573 }
 0x478   : > { %1120 = vrot.lane.b32.xlu1 %v3512_v10, %s2994_s12 }
 0x47c   : > { %1098 = vrot.lane.b32.xlu1 %v3516_v27, %s2993_s11 }
 0x480   : > { %1100 = vrot.lane.b32.xlu1 %v3514_v26, %s2993_s11 }
 0x481   : > { %v1458_v10 = vpop.trf.xlu1 }
 0x486   : > { %v1399_v18 = vpop.xlane.xlu0 %1398 }
 0x487   : > { %v1404_v20 = vsub.f32 %v1339_v54, %v1399_v18 }
 0x489   : > { %v1410_v63 = vmul.f32 1.442695, %v1404_v20 }
 0x48a   : > { %v1117_v27 = vpop.permute.xlu0 %1116 }
 0x48b   : > { %2575 = vpow2.f32 %v1410_v63 }
 0x48e   : > { %v1119_v26 = vpop.permute.xlu0 %1118 }
 0x492   : > { %v1097_v28 = vpop.permute.xlu0 %1096 }
 0x495   : > { %v2576_v21 = vpop.eup %2575 }
 0x496   : > { %v1123_v34 = vpop.permute.xlu0 %1122 }
 0x49a   : > { %v1125_v36 = vpop.permute.xlu0 %1124 }
 0x4a4   : > { %1414 = vadd.xlane.f32.xlu1 %v2574_v9 }
 0x4a8   : > { %1418 = vadd.xlane.f32.xlu1 %v2576_v21 }
 0x4ad   : > { %v1115_v22 = vpop.permute.xlu1 %1114 }
 0x4d5   : > { %1482 = vxpose.xlu1.c.b16.start [1/8] (narrow) %v1111_v4, 16 }
 0x4d9   : > { %1483 = vxpose.xlu1.c.b16.cont [2/8] (narrow) %v1113_v8, 16 }
 0x4dd   : > { %1484 = vxpose.xlu1.c.b16.cont [3/8] (narrow) %v1115_v22, 16 }
 0x4e1   : > { %1485 = vxpose.xlu1.c.b16.cont [4/8] (narrow) %v1117_v27, 16 }
 0x4e5   : > { %1486 = vxpose.xlu1.c.b16.cont [5/8] (narrow) %v1119_v26, 16  ;;  %v1825_v26 = vsub.s32 %v1822_v19, %v1792_v56 }
 0x4ec   : > { %v1401_v30 = vpop.xlane.xlu1 %1400 }
 0x4ed   : > { %v1405_v31 = vsub.f32 %v3589_v49, %v1401_v30 }
 0x4ef   : > { %v1412_v32 = vmul.f32 1.442695, %v1405_v31 }
 0x4f0   : > { %v1093_v33 = vpop.permute.xlu1 %1092 }
 0x4f1   : > { %2577 = vpow2.f32 %v1412_v32 }
 0x4f4   : > { %v1095_v29 = vpop.permute.xlu1 %1094 }
 0x4f8   : > { %v1121_v44 = vpop.permute.xlu1 %1120 }
 0x4f9   : > { %1487 = vxpose.xlu1.c.b16.cont [6/8] (narrow) %v1121_v44, 16 }
 0x4fb   : > { %v2578_v35 = vpop.eup %2577 }
 0x4fc   : > { %1420 = vadd.xlane.f32.xlu0 %v2578_v35  ;;  %v1099_v39 = vpop.permute.xlu1 %1098 }
 0x4fd   : > { %1488 = vxpose.xlu1.c.b16.cont [7/8] (narrow) %v1123_v34, 16 }
 0x500   : > { %v1101_v40 = vpop.permute.xlu1 %1100 }
 0x501   : > { %1489 = vxpose.xlu1.c.b16.end [8/8] (narrow) %v1125_v36, 16 }
 0x503   : > { %v1417_v23 = vpop.xlane.xlu0 %1416 }
 0x504   : > { %2579 = vrcp.f32 %v1417_v23 }
 0x50e   : > { %v2580_v37 = vpop.eup %2579 }
 0x50f   : > { %v1427_v25 = vmul.f32 %v2580_v37, %v2572_v17  ;;  %v1790_v17 = vunpack.c.0.s8 %v1789_v13 }
 0x511   : > { %v1431_v38 = vpack.c.bf16 %v1427_v25, %v1427_v25  ;;  %v1793_v63 = vsub.s32 %v1790_v17, %v1792_v56 }
 0x513   : > { %2391 = vmatpush3.bf16.xpose.msra.mxu0 %v1431_v38 }
 0x514   : > { %2402 = vmatprep.subr.bf16.mxu0 %v2990_v0 }
 0x51a   : > { %2393 = vmatmul.mubr.bf16.vlgmr.msra.gmra.mrb[28].mxu0 %v1458_v10 }
 0x51b   : > { %2404 = vmatprep.mubr.msk.bf16.mxu0 %vm2991_vm0, %v2990_v0 }
 0x529   : > { %1466 = vxpose.xlu0.c.b16.start [1/8] (narrow) %v3598_v3, 16 }
 0x52d   : > { %1467 = vxpose.xlu0.c.b16.cont [2/8] (narrow) %v3604_v6, 16 }
 0x531   : > { %1468 = vxpose.xlu0.c.b16.cont [3/8] (narrow) %v3610_v11, 16  ;;  %v1415_v41 = vpop.xlane.xlu1 %1414 }
 0x532   : > { %2581 = vrcp.f32 %v1415_v41 }
 0x535   : > { %1469 = vxpose.xlu0.c.b16.cont [4/8] (narrow) %v1093_v33, 16  ;;  %v1419_v42 = vpop.xlane.xlu1 %1418 }
 0x536   : > { %2583 = vrcp.f32 %v1419_v42 }
 0x539   : > { %1470 = vxpose.xlu0.c.b16.cont [5/8] (narrow) %v1095_v29, 16 }
 0x53c   : > { %v2582_v24 = vpop.eup %2581 }
 0x53d   : > { %1471 = vxpose.xlu0.c.b16.cont [6/8] (narrow) %v1097_v28, 16  ;;  %v1426_v43 = vmul.f32 %v2582_v24, %v2574_v9 }
 0x53f   : > { %v1430_v45 = vpack.c.bf16 %v1426_v43, %v1426_v43 }
 0x540   : > { %v2584_v46 = vpop.eup %2583 }
 0x541   : > { %1472 = vxpose.xlu0.c.b16.cont [7/8] (narrow) %v1099_v39, 16  ;;  %2385 = vmatpush3.bf16.xpose.msra.mxu1 %v1430_v45  ;;  %v1428_v47 = vmul.f32 %v2584_v46, %v2576_v21 }
 0x542   : > { %2396 = vmatprep.subr.bf16.mxu1 %v2990_v0 }
 0x543   : > { %v1432_v48 = vpack.c.bf16 %v1428_v47, %v1428_v47 }
 0x545   : > { %1473 = vxpose.xlu0.c.b16.end [8/8] (narrow) %v1101_v40, 16 }
 0x548   : > { %2387 = vmatmul.mubr.bf16.vlgmr.msra.gmra.mrb[24].mxu1 %v3594_v59 }
 0x549   : > { %2397 = vmatpush3.bf16.xpose.msra.mxu1 %v1432_v48  ;;  %2398 = vmatprep.mubr.msk.bf16.mxu1 %vm2991_vm0, %v2990_v0 }
 0x54b   : > { %v1490_v54 = vpop.trf.xlu1 }
 0x589   : > { %v1421_v49 = vpop.xlane.xlu0 %1420 }
 0x58a   : > { %2585 = vrcp.f32 %v1421_v49 }
 0x58f   : > { %v1474_v50 = vpop.trf.xlu0 }
 0x590   : > { %2399 = vmatmul.mubr.bf16.vlgmr.msra.gmra.mrb[28].mxu1 %v1474_v50 }
 0x594   : > { %v2586_v51 = vpop.eup %2585 }
 0x595   : > { %v1429_v52 = vmul.f32 %v2586_v51, %v2578_v35 }
 0x597   : > { %v1433_v53 = vpack.c.bf16 %v1429_v52, %v1429_v52 }
 0x599   : > { %2403 = vmatpush3.bf16.xpose.msra.mxu0 %v1433_v53 }
 0x5a0   : > { %2405 = vmatmul.mubr.bf16.vlgmr.msra.gmra.mrb[32].mxu0 %v1490_v54 }
 0x5ed   : > { %v1572_v55 = vpop.f32.mrb[28].mxu0 }
 0x5ee   : > { %v2394_v57 = vpop.f32.mrb[29].mxu0  ;;  %1690 = vxpose.xlu1.b32.start.end [1/1] (short) (narrow) %v1572_v55, 8 }
 0x5ef   : > { %v1575_v58 = vpop.f32.mrb[30].mxu0 }
 0x5f0   : > { %v2395_v60 = vpop.f32.mrb[31].mxu0 }
 0x61b   : > { %v1532_v59 = vpop.f32.mrb[24].mxu1 }
 0x61c   : > { %1658 = vxpose.xlu0.b32.start.end [1/1] (short) (narrow) %v1532_v59, 8  ;;  %v2388_v61 = vpop.f32.mrb[25].mxu1 }
 0x61d   : > { %v1535_v62 = vpop.f32.mrb[26].mxu1 }
 0x61e   : > { %v2389_v0 = vpop.f32.mrb[27].mxu1 }
 0x663   : > { %v1612_v1 = vpop.f32.mrb[28].mxu1 }
 0x664   : > { %1722 = vxpose.xlu0.b32.start.end [1/1] (short) (narrow) %v1612_v1, 8  ;;  %v2400_v2 = vpop.f32.mrb[29].mxu1 }
 0x665   : > { %v1615_v3 = vpop.f32.mrb[30].mxu1 }
 0x666   : > { %v2401_v4 = vpop.f32.mrb[31].mxu1 }
 0x66e   : > { %v1706_v20 = vpop.trf.xlu1 }
 0x673   : > { %v1652_v5 = vpop.f32.mrb[32].mxu0 }
 0x674   : > { %1754 = vxpose.xlu0.b32.start.end [1/1] (short) (narrow) %v1652_v5, 8  ;;  %v2406_v6 = vpop.f32.mrb[33].mxu0 }
 0x675   : > { %v1655_v7 = vpop.f32.mrb[34].mxu0 }
 0x676   : > { %v2407_v8 = vpop.f32.mrb[35].mxu0 }
 0x69c   : > { %v1674_v11 = vpop.trf.xlu0 }
 0x6e4   : > { %v1738_v18 = vpop.trf.xlu0 }
 0x6e5   : > { %v1786_v9 = vcombine.low %v1674_v11, %v1738_v18  ;;  %v1787_v21 = vcombine.high %v1674_v11, %v1738_v18 }
 0x6e7   : > { %v1794_v30 = vrot.slane %v1786_v9, %v1793_v63  ;;  %v1801_v31 = vrot.slane %v1787_v21, %v1793_v63 }
 0x6f4   : > { %v1770_v10 = vpop.trf.xlu0 }
 0x6f5   : > { %v1802_v22 = vcombine.low %v1706_v20, %v1770_v10  ;;  %v1803_v27 = vcombine.high %v1706_v20, %v1770_v10 }
 0x6f7   : > { %v1810_v32 = vrot.slane %v1802_v22, %v1793_v63  ;;  %v1817_v33 = vrot.slane %v1803_v27, %v1793_v63 }
 0x6f9   : > { %v1818_v28 = vcombine.low %v1794_v30, %v1810_v32  ;;  %v1819_v29 = vcombine.high %v1794_v30, %v1810_v32  ;;  %v1834_v44 = vcombine.low %v1801_v31, %v1817_v33  ;;  %v1835_v34 = vcombine.high %v1801_v31, %v1817_v33 }
 0x6fb   : > { %v1826_v35 = vrot.slane %v1818_v28, %v1825_v26  ;;  %v1833_v36 = vrot.slane %v1819_v29, %v1825_v26  ;;  %v1842_v23 = vrot.slane %v1834_v44, %v1825_v26  ;;  %v1849_v37 = vrot.slane %v1835_v34, %v1825_v26 }
 0x6fd   : > { %v1854_v25 = vcombine.low %v1826_v35, %v1833_v36  ;;  %v2250_v38 = vcombine.high %v1826_v35, %v1833_v36  ;;  %v1870_v39 = vcombine.low %v1842_v23, %v1849_v37  ;;  %v2251_v40 = vcombine.high %v1842_v23, %v1849_v37 }
 0x6ff   : > { %v1861_v41 = vrot.slane %v1854_v25, %v1793_v63  ;;  %v1869_v42 = vrot.slane %v2250_v38, %v1793_v63  ;;  %v1877_v24 = vrot.slane %v1870_v39, %v1793_v63  ;;  %v1885_v43 = vrot.slane %v2251_v40, %v1793_v63 }
 0x701   : > { %v1886_v45 = vcombine.low %v1861_v41, %v1869_v42  ;;  %v1902_v46 = vcombine.low %v1877_v24, %v1885_v43  ;;  %v1887_v47 = vcombine.high %v1861_v41, %v1869_v42  ;;  %v1903_v48 = vcombine.high %v1877_v24, %v1885_v43 }
 0x703   : > { %v1894_v49 = vrot.slane %v1886_v45, %v1825_v26  ;;  %v1910_v50 = vrot.slane %v1902_v46, %v1825_v26  ;;  %v1901_v51 = vrot.slane %v1887_v47, %v1825_v26  ;;  %v1917_v52 = vrot.slane %v1903_v48, %v1825_v26 }
 0x704   : > { %2858 = shalt.err (!%p2855_p8)
}
 0x705   : > { %s2859_s25 = scalar_lea.hbm %s3644_s10, 512  ;;  %s2863_s19 = scalar_lea.hbm %s3800_s30, 1024 }
 0x706   : > { %p2860_p11 = scmp.ne.s32.totalorder %s3644_s10, %s2859_s25  ;;  %p2864_p7 = scmp.lt.u32.totalorder %s3644_s10, %s3800_s30 }
 0x707   : > { %p2865_p2 = scmp.lt.u32.totalorder %s2863_s19, %s2859_s25  ;;  %p2867_p5 = scmp.lt.u32.totalorder %s2859_s25, %s3644_s10 }
 0x708   : > { %p2861_p13 = pnand %p2860_p11, %p3801_p6 }
 0x709   : > { %p2866_p12 = por %p2865_p2, %p2864_p7 }
 0x70a   : > { %p2862_p4 = pneg %p2861_p13 }
 0x70b   : > { %p2868_p1 = por %p2867_p5, %p2866_p12 }
 0x70d   : > { %p2869_p0 = pnand %p2868_p1, %p2862_p4 }
 0x70f   : > { %2872 = shalt.err (!%p2869_p0)
}
 0x710   : > { %s2998_s1 = smov 128   ;;  %s2999_s21 = smov 8   ;;  %v1919_v53 = vcombine.high %v1894_v49, %v1910_v50  ;;  %v1920_v54 = vcombine.low %v1901_v51, %v1917_v52  ;;  %v1918_v55 = vcombine.low %v1894_v49, %v1910_v50  ;;  %v1921_v57 = vcombine.high %v1901_v51, %v1917_v52 }
 0x711   : > { %2439 = dma.vmem_to_hbm [thread:$0]  (%p3801_p6), %s3638_s23, 512, %s3644_s10, %s1946_s15, %s2998_s1, %s2998_s1, %s2999_s21   ;;  %vm1935_vm5 = vcmask 130048   ;;  %vm1937_vm6 = vcmask 195584  }
 0x712   : > { %1923 = vrot.lane.b32.xlu1 %v1919_v53, %s2999_s21  ;;  %s3000_s22 = smov 16   ;;  %s3001_s24 = smov 24  }
 0x713   : > { %1927 = vrot.lane.b32.xlu0 %v1920_v54, %s3000_s22  ;;  %s2254_s3 = sshll.u32 %s3799_s28, 7  ;;  %s549_s9 = scalar_lea.vmem [#allocation17], %s2205_s7 }
 0x714   : > { %s1960_s23 = sshll.u32 %s549_s9, 4  ;;  %s3802_s20 = sld [smem:[#allocation38_spill]]  ;;  %s3679_s23 = int_to_ptr.vmem [resolvable:$true] %s1960_s23 }
 0x715   : > { %s1941_s28 = scalar_lea.sflag [#allocation4], %s3386_s16  ;;  %s2873_s26 = scalar_lea.vmem %s3679_s23, 128 }
 0x716   : > { %1931 = vrot.lane.b32.xlu1 %v1921_v57, %s3001_s24  ;;  %p2874_p3 = scmp.ne.s32.totalorder %s3679_s23, %s2873_s26  ;;  %s3002_s7 = smov [#allocation17]  }
 0x717   : > { %s2877_s25 = sshll.u32 %s3002_s7, 4  ;;  %s2878_s25 = int_to_ptr.vmem [resolvable:$false] %s2877_s25 }
 0x718   : > { %p2875_p10 = pnand %p2874_p3, %p3801_p6  ;;  %s2879_s18 = scalar_lea.vmem %s2878_s25, 256 }
 0x719   : > { %p2880_p8 = scmp.lt.s32.totalorder %s3679_s23, %s2878_s25  ;;  %p2881_p11 = scmp.lt.s32.totalorder %s2879_s18, %s2873_s26 }
 0x71a   : > { %s3677_s5 = scalar_lea.hbm %s3802_s20, %s2254_s3  ;;  %p2876_p9 = pneg %p2875_p10 }
 0x71b   : > { %p2882_p13 = por %p2881_p11, %p2880_p8 }
 0x71d   : > { %p2883_p4 = pnand %p2882_p13, %p2876_p9 }
 0x784   : > { %v1924_v58 = vpop.permute.xlu1 %1923 }
 0x785   : > { %v1934_v60 = vsel %vm1204_vm4, %v1918_v55, %v1924_v58  ;;  %v1928_v59 = vpop.permute.xlu0 %1927 }
 0x786   : > { %v1936_v61 = vsel %vm1935_vm5, %v1934_v60, %v1928_v59 }
 0x788   : > { %v1932_v62 = vpop.permute.xlu1 %1931 }
 0x789   : > { %v1938_v0 = vsel %vm1937_vm6, %v1936_v61, %v1932_v62 }
 0x78a   : > { %1939 = vst.msk [vmem:[%s549_s9] sm:$0xff] %vm608_vm2, %v1938_v0 }
 0x78b   : > { %2886 = shalt.err (!%p2883_p4)
}
 0x78c   : > { %s2887_s16 = scalar_lea.hbm %s3677_s5, 128  ;;  %s2891_s11 = scalar_lea.hbm %s3802_s20, 256 }
 0x78d   : > { %p2888_p7 = scmp.ne.s32.totalorder %s3677_s5, %s2887_s16  ;;  %p2892_p5 = scmp.lt.u32.totalorder %s3677_s5, %s3802_s20 }
 0x78e   : > { %p2893_p1 = scmp.lt.u32.totalorder %s2891_s11, %s2887_s16  ;;  %p2895_p3 = scmp.lt.u32.totalorder %s2887_s16, %s3677_s5 }
 0x78f   : > { %p2889_p2 = pnand %p2888_p7, %p3801_p6 }
 0x790   : > { %p2894_p0 = por %p2893_p1, %p2892_p5 }
 0x791   : > { %p2890_p12 = pneg %p2889_p2 }
 0x792   : > { %p2896_p10 = por %p2895_p3, %p2894_p0 }
 0x794   : > { %p2897_p9 = pnand %p2896_p10, %p2890_p12 }
 0x796   : > { %2900 = shalt.err (!%p2897_p9)
}
 0x797   : > { %2438 = dma.vmem_to_hbm [thread:$0]  (%p3801_p6), %s3679_s23, 128, %s3677_s5, %s1941_s28  }
 0x798 PF: > { %s3803_s21 = sld [smem:[#allocation33_spill]]  ;;  %s3804_s22 = sld [smem:[#allocation29_spill]] }
 0x799   : > { %s1989_s24 = sand.u32 1, %s2955_s13  }
 0x79a   : > { %s1990_s3 = scalar_lea.sflag [#allocation4], %s1989_s24 }
 0x79e   : > { %p3805_p8 = scmp.ne.s32.totalorder %s3803_s21, 0  ;;  %p3806_p11 = scmp.ge.s32.totalorder %s3804_s22, 2 }
 0x7a0   : > { %p2472_p13 = pnand %p3806_p11, %p3805_p8 }
 0x7a2   : > { %2946 = dma.done.wait (!%p2472_p13), %s1990_s3, 128  }
 0x7a3   : > { %2948 = vsyncadd (!%p2472_p13), %s1990_s3, 4294967168  ;;  %s1999_s9 = scalar_lea.sflag [#allocation19], %s1989_s24 }
 0x7a4   : > { %2950 = dma.done.wait (!%p2472_p13), %s1999_s9, 512  }
 0x7a5   : > { %2952 = vsyncadd (!%p2472_p13), %s1999_s9, 4294966784  ;;  %s36_s18 = sadd.s32 1, %s3804_s22   ;;  %s3807_s29 = sld [smem:[#allocation27_spill]] }
 0x7a6   : > { %p33_p4 = scmp.ge.s32.totalorder %s36_s18, 4   ;;  %s3808_s15 = sld [smem:[#allocation32_spill]] }
 0x7a7   : > { %s3809_s23 = sld [smem:[#allocation31_spill]]  ;;  %s3810_s13 = smov %s2959_s14 }
 0x7a8   : > { %s3812_s16 = smov %s2971_s17  ;;  %35 = sbr.rel (!%p33_p4) target bundleno = 20 (0x14), region = 166 }
 0x7ab   : > { %s3811_s14 = smov %s3807_s29 }
 0x7ad   : > { %s3813_s17 = smov %s3809_s23 }
 0x7af   :  { %2004 = vsyncpa [#allocation3], 1 }
 0x7b0   :  { %2006 = vsyncpa [#allocation3 + $0x1], 1 }
 0x7b1   :  { %2007 = vsyncpa [#allocation6], 1 }
 0x7b2   :  { %2009 = vsyncpa [#allocation6 + $0x1], 1 }
 0x7b3   :  { %2010 = vsyncpa [#allocation9], 1 }
 0x7b4   :  { %2011 = vsyncpa [#allocation12], 1 }
 0x7b5   :  { %2012 = vsyncpa [#allocation15], 1 }
 0x7b6   :  { %2013 = vsyncpa [#allocation4], 1 }
 0x7b7   :  { %2015 = vsyncpa [#allocation4 + $0x1], 1 }
 0x7b8   :  { %2016 = vsyncpa [#allocation19], 1 }
 0x7b9   :  { %2018 = vsyncpa [#allocation19 + $0x1], 1 }

// kernel: tpu_custom_call.1
= control target key start
LH: loop header
LB: loop body
LE: loop exit
PB: predicated region body
PF: predicated region fallthrough
CT: control target
= control target key end

     0   :  { %s3727_s0 = inlined_call_operand.hbm [shape: f32[2,8,32], index: 0, kind: input, shape index: {}]   ;;  %s3728_s1 = inlined_call_operand.hbm [shape: f32[2,128,64], index: 1, kind: input, shape index: {}]   ;;  %s3729_s2 = inlined_call_operand.hbm [shape: f32[2,1,128], index: 2, kind: input, shape index: {}]   ;;  %s3730_s3 = inlined_call_operand.hbm [shape: bf16[32,32], index: 3, kind: input, shape index: {}]   ;;  %s3731_s4 = inlined_call_operand.hbm [shape: f32[1,32], index: 4, kind: input, shape index: {}]   ;;  %s3732_s5 = inlined_call_operand.hbm [shape: bf16[64,32], index: 5, kind: input, shape index: {}]   ;;  %s3733_s6 = inlined_call_operand.hbm [shape: f32[1,32], index: 6, kind: input, shape index: {}]   ;;  %s3734_s7 = inlined_call_operand.hbm [shape: bf16[64,32], index: 7, kind: input, shape index: {}]   ;;  %s3735_s8 = inlined_call_operand.hbm [shape: f32[1,32], index: 8, kind: input, shape index: {}]   ;;  %s3736_s9 = inlined_call_operand.hbm [shape: f32[2,8,32], index: 9, kind: output, shape index: {0}]   ;;  %s3737_s10 = inlined_call_operand.hbm [shape: f32[2,4,8,128], index: 10, kind: output, shape index: {1}]  }
   0x1   :  { %3759 = sst [smem:[#allocation34_spill]] %s3728_s1 }
   0x2   :  { %3760 = sst [smem:[#allocation35_spill]] %s3730_s3 }
   0x3   :  { %3761 = sst [smem:[#allocation36_spill]] %s3732_s5 }
   0x4   :  { %3762 = sst [smem:[#allocation37_spill]] %s3734_s7 }
   0x5   :  { %3763 = sst [smem:[#allocation38_spill]] %s3736_s9 }
   0x6   :  { %3764 = sst [smem:[#allocation39_spill]] %s3737_s10 }
   0x7   :  { %16 = vsyncpa [#allocation3], 0 }
   0x8   :  { %18 = vsyncpa [#allocation3 + $0x1], 0 }
   0x9   :  { %19 = vsyncpa [#allocation6], 0 }
   0xa   :  { %21 = vsyncpa [#allocation6 + $0x1], 0 }
   0xb   :  { %22 = vsyncpa [#allocation9], 0 }
   0xc   :  { %23 = vsyncpa [#allocation12], 0 }
   0xd   :  { %24 = vsyncpa [#allocation15], 0 }
   0xe   :  { %25 = vsyncpa [#allocation4], 0 }
   0xf   :  { %27 = vsyncpa [#allocation4 + $0x1], 0 }
  0x10   :  { %28 = vsyncpa [#allocation19], 0 }
  0x11   :  { %30 = vsyncpa [#allocation19 + $0x1], 0  ;;  %s3058_s13 = smov 0   ;;  %s3060_s14 = smov 0  }
  0x12   :  { %s3062_s15 = smov 0   ;;  %s3064_s16 = smov 0  }
  0x13   :  { %s3066_s17 = smov 0   ;;  %s3068_s18 = smov 0  }
  0x14 LB: > { %3765 = sst [smem:[#allocation27_spill]] %s2963_s15  ;;  %s3089_s19 = sadd.s32 4294967295, %s2975_s18   ;;  %s2975_s18 = sphi %s3068_s18, %s36_s18   ;;  %s2971_s17 = sphi %s3066_s17, %s3813_s17   ;;  %s2967_s16 = sphi %s3064_s16, %s3812_s16   ;;  %s2963_s15 = sphi %s3062_s15, %s3808_s15   ;;  %s2959_s14 = sphi %s3060_s14, %s3811_s14   ;;  %s2955_s13 = sphi %s3058_s13, %s3810_s13  }
  0x15   : > { %3766 = sst [smem:[#allocation28_spill]] %s2967_s16  ;;  %p2190_p0 = scmp.ge.s32.totalorder %s2975_s18, 1 }
  0x16   : > { %3767 = sst [smem:[#allocation29_spill]] %s2975_s18  ;;  %p3742_p1 = scmp.eq.s32.totalorder %s3089_s19, 0 }
  0x17   : > { %p315_p2 = scmp.lt.s32.totalorder %s2975_s18, 3  ;;  %s2977_s21 = smov [#allocation8]  }
  0x18   : > { %s327_s22 = sshll.u32 %s2977_s21, 4  ;;  %s2978_s24 = smov [#allocation11]   ;;  %s3098_s22 = int_to_ptr.vmem [resolvable:$true] %s327_s22 }
  0x19   : > { %p3094_p3 = pnand %p2190_p0, %p315_p2  ;;  %s351_s25 = sshll.u32 %s2978_s24, 4  ;;  %s3109_s25 = int_to_ptr.vmem [resolvable:$true] %s351_s25 }
  0x1a   : > { %s2979_s26 = smov [#allocation14]   ;;  %s3771_s3 = sld [smem:[#allocation35_spill]] }
  0x1b   : > { %s3768_s20 = scalar_select %p3094_p3, 1, 0 }
  0x1c   : > { %p2442_p4 = pneg %p3094_p3  ;;  %s3111_s27 = sshll.u32 %s2979_s26, 4  ;;  %s376_s27 = int_to_ptr.vmem [resolvable:$true] %s3111_s27 }
  0x1d   : > { %3769 = sst [smem:[#allocation30_spill]] %s3768_s20 }
  0x1e   : > { %p3105_p6 = pnand %p2442_p4, %p3742_p1 }
  0x20   : > { %s3770_s23 = scalar_select %p3105_p6, 1, 0 }
  0x21   : > { %s2587_s30 = scalar_lea.hbm %s3771_s3, 256  ;;  %p3121_p8 = pneg %p3105_p6 }
  0x22   : > { %p2588_p7 = scmp.ne.s32.totalorder %s3771_s3, %s2587_s30  ;;  %p2594_p11 = scmp.lt.u32.totalorder %s2587_s30, %s3771_s3 }
  0x23   : > { %s3772_s21 = scalar_select %p3121_p8, 1, 0 }
  0x24   : > { %p2590_p9 = pnand %p3121_p8, %p2588_p7 }
  0x26   : > { %p2591_p10 = pneg %p2590_p9 }
  0x28   : > { %p2596_p12 = pnand %p2594_p11, %p2591_p10 }
  0x2a   : > { %2599 = shalt.err (!%p2596_p12)
}
  0x2b   : > { %s2600_s28 = scalar_lea.vmem %s3098_s22, 256  ;;  %p2608_p4 = scmp.lt.s32.totalorder %s3098_s22, %s3098_s22 }
  0x2c   : > { %p2601_p13 = scmp.ne.s32.totalorder %s3098_s22, %s2600_s28  ;;  %p2609_p5 = scmp.lt.s32.totalorder %s2600_s28, %s2600_s28 }
  0x2e   : > { %p2603_p0 = pnand %p2601_p13, %p3121_p8  ;;  %p2610_p7 = por %p2609_p5, %p2608_p4 }
  0x30   : > { %p2604_p2 = pneg %p2603_p0 }
  0x32   : > { %p2611_p9 = pnand %p2610_p7, %p2604_p2 }
  0x34   : > { %2614 = shalt.err (!%p2611_p9)
}
  0x35   : > { %s2980_s29 = smov 64   ;;  %s2981_s30 = smov 4  }
  0x36   : > { %2445 = dma.hbm_to_vmem [thread:$0]  (!%p3105_p6), %s3771_s3, 256, %s3098_s22, [#allocation9], %s2980_s29, %s2980_s29, %s2981_s30  }
  0x37   : > { %s3773_s5 = sld [smem:[#allocation36_spill]] }
  0x3d   : > { %s2615_s28 = scalar_lea.hbm %s3773_s5, 512 }
  0x3e   : > { %p2616_p5 = scmp.ne.s32.totalorder %s3773_s5, %s2615_s28  ;;  %p2622_p12 = scmp.lt.u32.totalorder %s2615_s28, %s3773_s5 }
  0x40   : > { %p2618_p10 = pnand %p2616_p5, %p3121_p8 }
  0x42   : > { %p2619_p11 = pneg %p2618_p10 }
  0x44   : > { %p2624_p13 = pnand %p2622_p12, %p2619_p11 }
  0x46   : > { %2627 = shalt.err (!%p2624_p13)
}
  0x47   : > { %s2628_s22 = scalar_lea.vmem %s3109_s25, 512  ;;  %p2636_p7 = scmp.lt.s32.totalorder %s3109_s25, %s3109_s25 }
  0x48   : > { %p2629_p0 = scmp.ne.s32.totalorder %s3109_s25, %s2628_s22  ;;  %p2637_p9 = scmp.lt.s32.totalorder %s2628_s22, %s2628_s22 }
  0x4a   : > { %p2631_p2 = pnand %p2629_p0, %p3121_p8  ;;  %p2638_p5 = por %p2637_p9, %p2636_p7 }
  0x4c   : > { %p2632_p4 = pneg %p2631_p2 }
  0x4e   : > { %p2639_p10 = pnand %p2638_p5, %p2632_p4 }
  0x50   : > { %2642 = shalt.err (!%p2639_p10)
}
  0x51   : > { %2451 = dma.hbm_to_vmem [thread:$0]  (!%p3105_p6), %s3773_s5, 512, %s3109_s25, [#allocation12], %s2980_s29, %s2980_s29, %s2981_s30  }
  0x52   : > { %s3774_s7 = sld [smem:[#allocation37_spill]] }
  0x58   : > { %s2643_s11 = scalar_lea.hbm %s3774_s7, 512 }
  0x59   : > { %p2644_p11 = scmp.ne.s32.totalorder %s3774_s7, %s2643_s11  ;;  %p2650_p0 = scmp.lt.u32.totalorder %s2643_s11, %s3774_s7 }
  0x5b   : > { %p2646_p12 = pnand %p2644_p11, %p3121_p8 }
  0x5d   : > { %p2647_p13 = pneg %p2646_p12 }
  0x5f   : > { %p2652_p2 = pnand %p2650_p0, %p2647_p13 }
  0x61   : > { %2655 = shalt.err (!%p2652_p2)
}
  0x62   : > { %s2656_s22 = scalar_lea.vmem %s376_s27, 512  ;;  %p2664_p5 = scmp.lt.s32.totalorder %s376_s27, %s376_s27 }
  0x63   : > { %p2657_p4 = scmp.ne.s32.totalorder %s376_s27, %s2656_s22  ;;  %p2665_p10 = scmp.lt.s32.totalorder %s2656_s22, %s2656_s22 }
  0x65   : > { %p2659_p7 = pnand %p2657_p4, %p3121_p8  ;;  %p2666_p1 = por %p2665_p10, %p2664_p5 }
  0x67   : > { %p2660_p9 = pneg %p2659_p7 }
  0x69   : > { %p2667_p3 = pnand %p2666_p1, %p2660_p9 }
  0x6b   : > { %2670 = shalt.err (!%p2667_p3)
}
  0x6c   : > { %2457 = dma.hbm_to_vmem [thread:$0]  (!%p3105_p6), %s3774_s7, 512, %s376_s27, [#allocation15], %s2980_s29, %s2980_s29, %s2981_s30  }
  0x6d   : > { %s2189_s10 = sadd.s32 4294967294, %s2975_s18   ;;  %s48_s16 = sadd.s32 1, %s2971_s17 }
  0x6e   : > { %s57_s20 = sadd.s32 1, %s2963_s15  ;;  %p50_p1 = scmp.ge.s32.totalorder %s48_s16, 2 }
  0x6f   : > { %p64_p3 = scmp.ne.s32.totalorder %s2963_s15, %s2959_s14  ;;  %p65_p11 = scmp.eq.s32.totalorder %s2975_s18, 0 }
  0x70   : > { %p70_p12 = scmp.ne.s32.totalorder %s2959_s14, %s2955_s13  ;;  %s3815_s16 = smov (%p50_p1, %s48_s16), 0 }
  0x71   : > { %3775 = sst [smem:[#allocation31_spill]] %s3815_s16  ;;  %p66_p13 = por %p65_p11, %p64_p3 }
  0x72   : > { %p3776_p0 = scmp.eq.s32.totalorder %s3089_s19, 0  ;;  %s52_s27 = ssub.s32 %s2971_s17, %s3815_s16 }
  0x73   : > { %p274_p4 = scmp.eq.s32.totalorder %s3089_s19, 1  ;;  %p55_p7 = scmp.eq.s32.totalorder %s52_s27, 0 }
  0x74   : > { %p3205_p2 = por %p3776_p0, %p70_p12  ;;  %p280_p9 = scmp.eq.s32.totalorder %s2189_s10, 1 }
  0x75   : > { %p3212_p5 = por %p274_p4, %p64_p3  ;;  %p2484_p10 = scmp.lt.s32.totalorder %s2975_s18, 2 }
  0x76   : > { %s3777_s11 = scalar_select %p3205_p2, 1, 0 }
  0x77   : > { %s3778_s29 = scalar_select %p3212_p5, 1, 0 }
  0x78   : > { %s3218_s30 = scalar_select %p55_p7, %s2963_s15, %s57_s20  }
  0x79   : > { %p3220_p1 = por %p280_p9, %p70_p12  ;;  %s3225_s24 = sand.u32 1, %s2963_s15  }
  0x7a   : > { %3779 = sst [smem:[#allocation32_spill]] %s3218_s30  ;;  %p3227_p11 = pnand %p2484_p10, %p66_p13 }
  0x7b   : > { %s3780_s12 = scalar_select %p3220_p1, 1, 0 }
  0x7c   : > { %s3782_s26 = scalar_select %p3227_p11, 1, 0 }
  0x7d   : > { %3781 = sst [smem:[#allocation33_spill]] %s3780_s12  ;;  %s419_s28 = sand.u32 1, %s2975_s18  }
  0x7e   : > { %s2200_s22 = sshll.u32 %s3225_s24, 7  ;;  %s2259_s25 = sshll.u32 %s2971_s17, 11 }
  0x7f   : > { %s423_s9 = scalar_lea.vmem [#allocation5], %s2200_s22  ;;  %s3783_s1 = sld [smem:[#allocation34_spill]] }
  0x80   : > { %s430_s10 = sshll.u32 %s423_s9, 4  ;;  %s3241_s5 = scalar_lea.sflag [#allocation6], %s419_s28  ;;  %s3239_s10 = int_to_ptr.vmem [resolvable:$true] %s430_s10 }
  0x81   : > { %p3247_p12 = pneg %p3227_p11 }
  0x83   : > { %s3784_s16 = scalar_select %p3247_p12, 1, 0 }
  0x85   : > { %s3237_s3 = scalar_lea.hbm %s3783_s1, %s2259_s25  ;;  %s2676_s9 = scalar_lea.hbm %s3783_s1, 4096 }
  0x86   : > { %s2671_s7 = scalar_lea.hbm %s3237_s3, 2048  ;;  %p2677_p4 = scmp.lt.u32.totalorder %s3237_s3, %s3783_s1 }
  0x87   : > { %p2672_p3 = scmp.ne.s32.totalorder %s3237_s3, %s2671_s7  ;;  %p2678_p7 = scmp.lt.u32.totalorder %s2676_s9, %s2671_s7 }
  0x88   : > { %p2680_p10 = scmp.lt.u32.totalorder %s2671_s7, %s3237_s3 }
  0x89   : > { %p2674_p13 = pnand %p3247_p12, %p2672_p3  ;;  %p2679_p9 = por %p2678_p7, %p2677_p4 }
  0x8b   : > { %p2675_p0 = pneg %p2674_p13  ;;  %p2681_p1 = por %p2680_p10, %p2679_p9 }
  0x8d   : > { %p2682_p5 = pnand %p2681_p1, %p2675_p0 }
  0x8f   : > { %2685 = shalt.err (!%p2682_p5)
}
  0x90   : > { %s2686_s28 = scalar_lea.vmem %s3239_s10, 2048  ;;  %s2982_s22 = smov [#allocation5]  }
  0x91   : > { %p2687_p3 = scmp.ne.s32.totalorder %s3239_s10, %s2686_s28  ;;  %s2691_s25 = sshll.u32 %s2982_s22, 4  ;;  %s2692_s25 = int_to_ptr.vmem [resolvable:$false] %s2691_s25 }
  0x92   : > { %s2693_s27 = scalar_lea.vmem %s2692_s25, 4096  ;;  %p2694_p6 = scmp.lt.s32.totalorder %s3239_s10, %s2692_s25 }
  0x93   : > { %p2689_p13 = pnand %p2687_p3, %p3247_p12  ;;  %p2695_p8 = scmp.lt.s32.totalorder %s2693_s27, %s2686_s28 }
  0x95   : > { %p2690_p2 = pneg %p2689_p13  ;;  %p2696_p4 = por %p2695_p8, %p2694_p6 }
  0x97   : > { %p2697_p7 = pnand %p2696_p4, %p2690_p2 }
  0x99   : > { %2700 = shalt.err (!%p2697_p7)
}
  0x9a   : > { %s2983_s7 = smov 128   ;;  %s2984_s9 = smov 8  }
  0x9b   : > { %2467 = dma.hbm_to_vmem [thread:$0]  (!%p3227_p11), %s3237_s3, 2048, %s3239_s10, %s3241_s5, %s2983_s7, %s2983_s7, %s2984_s9  }
  0x9c   : > { %s2985_s20 = smov [#allocation10]   ;;  %s2986_s30 = smov [#allocation13]  }
  0x9d   : > { %s341_s1 = sshll.u32 %s2985_s20, 4  ;;  %s365_s22 = sshll.u32 %s2986_s30, 4  ;;  %s342_s1 = int_to_ptr.vmem [resolvable:$true] %s341_s1  ;;  %s3271_s22 = int_to_ptr.vmem [resolvable:$true] %s365_s22 }
  0x9e   : > { %s2701_s27 = scalar_lea.hbm %s3731_s4, 16  ;;  %p3785_p8 = scmp.ne.s32.totalorder %s3772_s21, 0 }
  0x9f   : > { %p2702_p6 = scmp.ne.s32.totalorder %s3731_s4, %s2701_s27  ;;  %p2708_p1 = scmp.lt.u32.totalorder %s2701_s27, %s3731_s4 }
  0xa1   : > { %p2704_p2 = pnand %p2702_p6, %p3785_p8 }
  0xa3   : > { %p2705_p5 = pneg %p2704_p2 }
  0xa5   : > { %p2710_p0 = pnand %p2708_p1, %p2705_p5 }
  0xa7   : > { %2713 = shalt.err (!%p2710_p0)
}
  0xa8   : > { %s2714_s30 = scalar_lea.vmem %s342_s1, 16  ;;  %s2721_s10 = scalar_lea.vmem %s342_s1, 32 }
  0xa9   : > { %p2715_p9 = scmp.ne.s32.totalorder %s342_s1, %s2714_s30  ;;  %p2722_p13 = scmp.lt.s32.totalorder %s342_s1, %s342_s1 }
  0xaa   : > { %p2723_p4 = scmp.lt.s32.totalorder %s2721_s10, %s2714_s30 }
  0xab   : > { %p2717_p10 = pnand %p2715_p9, %p3785_p8 }
  0xac   : > { %p2724_p7 = por %p2723_p4, %p2722_p13 }
  0xad   : > { %p2718_p3 = pneg %p2717_p10 }
  0xaf   : > { %p2725_p11 = pnand %p2724_p7, %p2718_p3 }
  0xb1   : > { %2728 = shalt.err (!%p2725_p11)
}
  0xb2   : > { %p3786_p6 = scmp.ne.s32.totalorder %s3770_s23, 0  ;;  %s2729_s9 = scalar_lea.hbm %s3733_s6, 16 }
  0xb3   : > { %p2730_p2 = scmp.ne.s32.totalorder %s3733_s6, %s2729_s9  ;;  %p2736_p11 = scmp.lt.u32.totalorder %s2729_s9, %s3733_s6 }
  0xb4   : > { %2448 = dma.hbm_to_vmem [thread:$0]  (!%p3786_p6), %s3731_s4, 16, %s342_s1, [#allocation9]  }
  0xb5   : > { %p2732_p5 = pnand %p2730_p2, %p3785_p8 }
  0xb7   : > { %p2733_p1 = pneg %p2732_p5 }
  0xb9   : > { %p2738_p0 = pnand %p2736_p11, %p2733_p1 }
  0xbb   : > { %2741 = shalt.err (!%p2738_p0)
}
  0xbc   : > { %s2742_s1 = scalar_lea.vmem %s3271_s22, 16  ;;  %s2749_s3 = scalar_lea.vmem %s3271_s22, 32 }
  0xbd   : > { %p2743_p9 = scmp.ne.s32.totalorder %s3271_s22, %s2742_s1  ;;  %p2750_p13 = scmp.lt.s32.totalorder %s3271_s22, %s3271_s22 }
  0xbe   : > { %p2751_p4 = scmp.lt.s32.totalorder %s2749_s3, %s2742_s1 }
  0xbf   : > { %p2745_p10 = pnand %p2743_p9, %p3785_p8 }
  0xc0   : > { %p2752_p7 = por %p2751_p4, %p2750_p13 }
  0xc1   : > { %p2746_p3 = pneg %p2745_p10 }
  0xc3   : > { %p2753_p2 = pnand %p2752_p7, %p2746_p3 }
  0xc5   : > { %2756 = shalt.err (!%p2753_p2)
}
  0xc6   : > { %2454 = dma.hbm_to_vmem [thread:$0]  (!%p3786_p6), %s3733_s6, 16, %s3271_s22, [#allocation12]  }
  0xc7   : > { %s2987_s15 = smov [#allocation16]   ;;  %s2198_s12 = sshll.u32 %s3225_s24, 3 }
  0xc8   : > { %s389_s18 = sshll.u32 %s2987_s15, 4  ;;  %s2757_s20 = scalar_lea.hbm %s3735_s8, 16  ;;  %s390_s18 = int_to_ptr.vmem [resolvable:$true] %s389_s18 }
  0xc9   : > { %p2758_p5 = scmp.ne.s32.totalorder %s3735_s8, %s2757_s20  ;;  %p2764_p0 = scmp.lt.u32.totalorder %s2757_s20, %s3735_s8 }
  0xcb   : > { %p2760_p1 = pnand %p2758_p5, %p3785_p8 }
  0xcd   : > { %p2761_p11 = pneg %p2760_p1 }
  0xcf   : > { %p2766_p9 = pnand %p2764_p0, %p2761_p11 }
  0xd1   : > { %2769 = shalt.err (!%p2766_p9)
}
  0xd2   : > { %s2770_s22 = scalar_lea.vmem %s390_s18, 16  ;;  %s2777_s3 = scalar_lea.vmem %s390_s18, 32 }
  0xd3   : > { %p2771_p10 = scmp.ne.s32.totalorder %s390_s18, %s2770_s22  ;;  %p2778_p4 = scmp.lt.s32.totalorder %s390_s18, %s390_s18 }
  0xd4   : > { %p2779_p7 = scmp.lt.s32.totalorder %s2777_s3, %s2770_s22 }
  0xd5   : > { %p2773_p3 = pnand %p2771_p10, %p3785_p8 }
  0xd6   : > { %p2780_p2 = por %p2779_p7, %p2778_p4 }
  0xd7   : > { %p2774_p13 = pneg %p2773_p3 }
  0xd9   : > { %p2781_p12 = pnand %p2780_p2, %p2774_p13 }
  0xdb   : > { %2784 = shalt.err (!%p2781_p12)
}
  0xdc   : > { %2460 = dma.hbm_to_vmem [thread:$0]  (!%p3786_p6), %s3735_s8, 16, %s390_s18, [#allocation15]  }
  0xdd   : > { %s2199_s15 = sshll.u32 %s2971_s17, 7  ;;  %s404_s7 = scalar_lea.vmem [#allocation2], %s2198_s12 }
  0xde   : > { %s412_s21 = sshll.u32 %s404_s7, 4  ;;  %s3338_s28 = scalar_lea.hbm %s3727_s0, %s2199_s15  ;;  %s413_s21 = int_to_ptr.vmem [resolvable:$true] %s412_s21 }
  0xdf   : > { %s401_s23 = scalar_lea.sflag [#allocation3], %s3225_s24  ;;  %s2785_s25 = scalar_lea.hbm %s3338_s28, 128 }
  0xe0   : > { %p2786_p12 = scmp.ne.s32.totalorder %s3338_s28, %s2785_s25  ;;  %p3787_p8 = scmp.ne.s32.totalorder %s3784_s16, 0 }
  0xe1   : > { %s2790_s12 = scalar_lea.hbm %s3727_s0, 256  ;;  %p2791_p6 = scmp.lt.u32.totalorder %s3338_s28, %s3727_s0 }
  0xe2   : > { %p2788_p5 = pnand %p2786_p12, %p3787_p8  ;;  %p2792_p11 = scmp.lt.u32.totalorder %s2790_s12, %s2785_s25 }
  0xe3   : > { %p2794_p9 = scmp.lt.u32.totalorder %s2785_s25, %s3338_s28 }
  0xe4   : > { %p2789_p1 = pneg %p2788_p5  ;;  %p2793_p0 = por %p2792_p11, %p2791_p6 }
  0xe6   : > { %p2795_p10 = por %p2794_p9, %p2793_p0 }
  0xe8   : > { %p2796_p3 = pnand %p2795_p10, %p2789_p1 }
  0xea   : > { %2799 = shalt.err (!%p2796_p3)
}
  0xeb   : > { %s2800_s3 = scalar_lea.vmem %s413_s21, 128  ;;  %s2988_s30 = smov [#allocation2]  }
  0xec   : > { %p2801_p13 = scmp.ne.s32.totalorder %s413_s21, %s2800_s3  ;;  %s2805_s10 = sshll.u32 %s2988_s30, 4  ;;  %s2806_s10 = int_to_ptr.vmem [resolvable:$false] %s2805_s10 }
  0xed   : > { %s2807_s15 = scalar_lea.vmem %s2806_s10, 256  ;;  %p2808_p2 = scmp.lt.s32.totalorder %s413_s21, %s2806_s10 }
  0xee   : > { %p2803_p4 = pnand %p2801_p13, %p3787_p8  ;;  %p2809_p12 = scmp.lt.s32.totalorder %s2807_s15, %s2800_s3 }
  0xf0   : > { %p2804_p7 = pneg %p2803_p4  ;;  %p2810_p5 = por %p2809_p12, %p2808_p2 }
  0xf2   : > { %p2811_p6 = pnand %p2810_p5, %p2804_p7 }
  0xf4   : > { %2814 = shalt.err (!%p2811_p6)
}
  0xf5   : > { %p3788_p11 = scmp.ne.s32.totalorder %s3782_s26, 0  ;;  %s2203_s7 = sshll.u32 %s2971_s17, 4 }
  0xf6   : > { %s3362_s25 = scalar_lea.hbm %s3729_s2, %s2203_s7  ;;  %s443_s18 = scalar_lea.vmem [#allocation7], %s3225_s24 }
  0xf7   : > { %2464 = dma.hbm_to_vmem [thread:$0]  (!%p3788_p11), %s3338_s28, 128, %s413_s21, %s401_s23  }
  0xf8   : > { %s450_s27 = sshll.u32 %s443_s18, 4  ;;  %s2815_s12 = scalar_lea.hbm %s3362_s25, 16  ;;  %s451_s27 = int_to_ptr.vmem [resolvable:$true] %s450_s27 }
  0xf9   : > { %p2816_p1 = scmp.ne.s32.totalorder %s3362_s25, %s2815_s12  ;;  %s2820_s28 = scalar_lea.hbm %s3729_s2, 32 }
  0xfa   : > { %p2821_p10 = scmp.lt.u32.totalorder %s3362_s25, %s3729_s2  ;;  %p2822_p3 = scmp.lt.u32.totalorder %s2820_s28, %s2815_s12 }
  0xfb   : > { %p2818_p0 = pnand %p2816_p1, %p3787_p8  ;;  %p2824_p4 = scmp.lt.u32.totalorder %s2815_s12, %s3362_s25 }
  0xfc   : > { %p2823_p13 = por %p2822_p3, %p2821_p10 }
  0xfd   : > { %p2819_p9 = pneg %p2818_p0 }
  0xfe   : > { %p2825_p7 = por %p2824_p4, %p2823_p13 }
 0x100   : > { %p2826_p2 = pnand %p2825_p7, %p2819_p9 }
 0x102   : > { %2829 = shalt.err (!%p2826_p2)
}
 0x103   : > { %s2830_s24 = scalar_lea.vmem %s451_s27, 16  ;;  %s2989_s3 = smov [#allocation7]  }
 0x104   : > { %p2831_p12 = scmp.ne.s32.totalorder %s451_s27, %s2830_s24  ;;  %s2835_s30 = sshll.u32 %s2989_s3, 4  ;;  %s2836_s30 = int_to_ptr.vmem [resolvable:$false] %s2835_s30 }
 0x105   : > { %s2837_s10 = scalar_lea.vmem %s2836_s30, 32  ;;  %p2838_p1 = scmp.lt.s32.totalorder %s451_s27, %s2836_s30 }
 0x106   : > { %p2833_p5 = pnand %p2831_p12, %p3787_p8  ;;  %p2839_p0 = scmp.lt.s32.totalorder %s2837_s10, %s2830_s24 }
 0x108   : > { %p2834_p6 = pneg %p2833_p5  ;;  %p2840_p11 = por %p2839_p0, %p2838_p1 }
 0x10a   : > { %p2841_p3 = pnand %p2840_p11, %p2834_p6 }
 0x10c   : > { %2844 = shalt.err (!%p2841_p3)
}
 0x10d   : > { %p3789_p10 = scmp.ne.s32.totalorder %s3782_s26, 0  ;;  %s3790_s15 = sld [smem:[#allocation30_spill]] }
 0x10f   : > { %2470 = dma.hbm_to_vmem [thread:$0]  (!%p3789_p10), %s3362_s25, 16, %s451_s27, %s3241_s5  }
 0x113   : > { %p3791_p9 = scmp.ne.s32.totalorder %s3790_s15, 0 }
 0x114   : > { %s3386_s16 = sand.u32 (!%p3791_p9), 1, %s2959_s14   ;;  %p3792_p8 = scmp.ne.s32.totalorder (!%p3791_p9), %s3777_s11, 0 }
 0x115   : > { %459 = sbr.rel (%p3791_p9) target bundleno = 1944 (0x798), region = 56  ;;  %s2205_s7 = sshll.u32 (!%p3791_p9), %s3386_s16, 3 }
 0x116   : > { %s462_s9 = scalar_lea.sflag (!%p3791_p9), [#allocation3], %s3386_s16  ;;  %s465_s20 = scalar_lea.vmem (!%p3791_p9), [#allocation2], %s2205_s7 }
 0x11c   : > { %2926 = dma.done.wait (%p3792_p8), %s462_s9, 128  }
 0x11d   : > { %2928 = vsyncadd (%p3792_p8), %s462_s9, 4294967168  ;;  %s470_s5 = sand.u32 1, %s3089_s19   ;;  %s2206_s26 = sshll.u32 %s3386_s16, 7 }
 0x11e   : > { %s471_s25 = scalar_lea.sflag [#allocation6], %s470_s5  ;;  %s3398_s18 = scalar_lea.vmem [#allocation5], %s2206_s26 }
 0x11f   : > { %2930 = dma.done.wait (%p3792_p8), %s471_s25, 2064  }
 0x120   : > { %2932 = vsyncadd (%p3792_p8), %s471_s25, 4294965232  ;;  %s482_s27 = scalar_lea.vmem [#allocation7], %s3386_s16  ;;  %p3793_p11 = scmp.eq.s32.totalorder %s3089_s19, 0 }
 0x122   : > { %2934 = dma.done.wait (%p3793_p11), [#allocation9], 272   ;;  %p3794_p13 = pmov %p3793_p11 }
 0x123   : > { %p3795_p4 = pmov %p3793_p11 }
 0x124   : > { %2936 = vsyncadd (%p3794_p13), [#allocation9], 4294967024 }
 0x125   : > { %2938 = dma.done.wait (%p3795_p4), [#allocation12], 528   ;;  %p3796_p7 = pmov %p3795_p4 }
 0x126   : > { %p3797_p2 = pmov %p3795_p4 }
 0x127   : > { %2940 = vsyncadd (%p3796_p7), [#allocation12], 4294966768 }
 0x128   : > { %2942 = dma.done.wait (%p3797_p2), [#allocation15], 528   ;;  %p3798_p12 = pmov %p3797_p2 }
 0x129   : > { %v2990_v0 = vmov 0.0   ;;  %vm2991_vm0 = vmmov 0   ;;  %v2561_v1 = vld [vmem:[#allocation11] sm:$0xff]   ;;  %v2562_v2 = vld [vmem:[#allocation8] sm:$0xff]   ;;  %v2564_v4 = vld [vmem:[#allocation8 + $0x8] sm:$0xff]   ;;  %vm691_vm1 = vcmask 523264  }
 0x12a   : > { %2944 = vsyncadd (%p3798_p12), [#allocation15], 4294966768  ;;  %2304 = vmatprep.subr.bf16.mxu0 %v2990_v0  ;;  %2308 = vmatprep.mubr.msk.bf16.mxu0 %vm2991_vm0, %v2990_v0  ;;  %v2563_v3 = vld [vmem:[#allocation11 + $0x8] sm:$0xff]   ;;  %v2565_v6 = vld [vmem:[#allocation11 + $0x10] sm:$0xff]   ;;  %vm608_vm2 = vcmask 261120   ;;  %s2992_s19 = smov 120  }
 0x12b   : > { %2312 = vmatprep.subr.bf16.mxu1 %v2561_v1  ;;  %2305 = vmatpush3.bf16.msra.mxu0 %v2562_v2  ;;  %v558_v5 = vld [vmem:[%s465_s20] sm:$0xff]  ;;  %v559_v8 = vld [vmem:[%s3398_s18] sm:$0xff]  ;;  %v560_v9 = vld [vmem:[%s3398_s18 + $0x8] sm:$0xff]  ;;  %s2993_s11 = smov 112   ;;  %s2994_s12 = smov 104   ;;  %vm1208_vm3 = vcmask 1043456  }
 0x12c   : > { %2313 = vmatpush3.bf16.msra.mxu1 %v2561_v1  ;;  %2306 = vmatprep.subr.bf16.mxu0 %v2990_v0  ;;  %v576_v7 = vpack.c.bf16 %v558_v5, %v558_v5  ;;  %v577_v10 = vpack.c.bf16 %v560_v9, %v559_v8  ;;  %v2566_v11 = vld [vmem:[#allocation11 + $0x18] sm:$0xff]   ;;  %v562_v13 = vld [vmem:[%s3398_s18 + $0x18] sm:$0xff]  ;;  %v563_v14 = vld [vmem:[%s3398_s18 + $0x20] sm:$0xff]  ;;  %vm1204_vm4 = vcmask 64512   ;;  %s2214_s1 = sshll.u32 %s3386_s16, 5  ;;  %s3799_s28 = sld [smem:[#allocation28_spill]] }
 0x12d   : > { %2314 = vmatprep.subr.bf16.mxu1 %v2563_v3  ;;  %v561_v12 = vld [vmem:[%s3398_s18 + $0x10] sm:$0xff]  ;;  %v564_v15 = vld [vmem:[%s3398_s18 + $0x28] sm:$0xff]  ;;  %v566_v19 = vld [vmem:[%s3398_s18 + $0x38] sm:$0xff]  ;;  %s3581_s21 = scalar_lea.vmem [#allocation18], %s2214_s1  ;;  %s3800_s30 = sld [smem:[#allocation39_spill]] }
 0x12e   : > { %2320 = vmatprep.mubr.msk.bf16.mxu1 %vm691_vm1, %v577_v10  ;;  %v578_v16 = vpack.c.bf16 %v562_v13, %v561_v12  ;;  %v579_v17 = vpack.c.bf16 %v564_v15, %v563_v14  ;;  %v565_v18 = vld [vmem:[%s3398_s18 + $0x30] sm:$0xff]  ;;  %v567_v20 = vld [vmem:[%s3398_s18 + $0x40] sm:$0xff]  ;;  %v568_v21 = vld [vmem:[%s3398_s18 + $0x48] sm:$0xff]  ;;  %s1974_s23 = sshll.u32 %s3581_s21, 4  ;;  %s1946_s15 = scalar_lea.sflag [#allocation19], %s3386_s16  ;;  %s3638_s23 = int_to_ptr.vmem [resolvable:$true] %s1974_s23 }
 0x12f   : > { %2307 = vmatpush3.bf16.msra.mxu0 %v2564_v4  ;;  %v580_v22 = vpack.c.bf16 %v566_v19, %v565_v18  ;;  %v581_v23 = vpack.c.bf16 %v568_v21, %v567_v20  ;;  %v569_v24 = vld [vmem:[%s3398_s18 + $0x50] sm:$0xff]  ;;  %v570_v25 = vld [vmem:[%s3398_s18 + $0x58] sm:$0xff]  ;;  %v571_v26 = vld [vmem:[%s3398_s18 + $0x60] sm:$0xff]  ;;  %s2845_s9 = scalar_lea.vmem %s3638_s23, 512  ;;  %p3801_p6 = scmp.ne.s32.totalorder %s3778_s29, 0 }
 0x130   : > { %2315 = vmatpush3.bf16.msra.mxu1 %v2563_v3  ;;  %v572_v27 = vld [vmem:[%s3398_s18 + $0x68] sm:$0xff]  ;;  %v582_v28 = vpack.c.bf16 %v570_v25, %v569_v24  ;;  %v573_v30 = vld [vmem:[%s3398_s18 + $0x70] sm:$0xff]  ;;  %v574_v31 = vld [vmem:[%s3398_s18 + $0x78] sm:$0xff]  ;;  %p2846_p5 = scmp.ne.s32.totalorder %s3638_s23, %s2845_s9  ;;  %s2997_s20 = smov [#allocation18]  }
 0x131   : > { %2316 = vmatprep.subr.bf16.mxu1 %v2565_v6  ;;  %v583_v29 = vpack.c.bf16 %v572_v27, %v571_v26  ;;  %v584_v32 = vpack.c.bf16 %v574_v31, %v573_v30  ;;  %v2567_v33 = vld [vmem:[#allocation14] sm:$0xff]   ;;  %v2568_v34 = vld [vmem:[#allocation14 + $0x8] sm:$0xff]   ;;  %v2569_v35 = vld [vmem:[#allocation14 + $0x10] sm:$0xff]   ;;  %s2849_s5 = sshll.u32 %s2997_s20, 4  ;;  %s2850_s5 = int_to_ptr.vmem [resolvable:$false] %s2849_s5 }
 0x132   : > { %2309 = vmatmul.mubr.msk.bf16.vlgmr.msra.gmra.mrb[0].mxu0 %vm608_vm2, %v576_v7  ;;  %2336 = vmatprep.subr.bf16.mxu0 %v2567_v33  ;;  %v2570_v36 = vld [vmem:[#allocation14 + $0x18] sm:$0xff]   ;;  %s2260_s22 = sshll.u32 %s3799_s28, 9  ;;  %p2847_p1 = pnand %p2846_p5, %p3801_p6 }
 0x133   : > { %2344 = vmatprep.mubr.msk.bf16.mxu0 %vm691_vm1, %v577_v10  ;;  %2337 = vmatpush3.bf16.msra.mxu0 %v2567_v33  ;;  %v2215_v37 = vld [vmem:[#allocation10] ss:$0 sm:$0xff]  ;;  %v2219_v46 = vld [vmem:[#allocation13] ss:$0 sm:$0xff]  ;;  %s3644_s10 = scalar_lea.hbm %s3800_s30, %s2260_s22  ;;  %s2851_s26 = scalar_lea.vmem %s2850_s5, 1024 }
 0x134   : > { %2317 = vmatpush3.bf16.msra.mxu1 %v2565_v6  ;;  %2338 = vmatprep.subr.bf16.mxu0 %v2568_v34  ;;  %p2848_p0 = pneg %p2847_p1  ;;  %p2852_p3 = scmp.lt.s32.totalorder %s3638_s23, %s2850_s5 }
 0x135   : > { %2318 = vmatprep.subr.bf16.mxu1 %v2566_v11  ;;  %p2853_p10 = scmp.lt.s32.totalorder %s2851_s26, %s2845_s9 }
 0x137   : > { %2339 = vmatpush3.bf16.msra.mxu0 %v2568_v34  ;;  %v2232_v34 = vld [vmem:[#allocation16] ss:$0 sm:$0xff]  ;;  %p2854_p9 = por %p2853_p10, %p2852_p3 }
 0x138   : > { %2319 = vmatpush3.bf16.msra.mxu1 %v2566_v11  ;;  %2340 = vmatprep.subr.bf16.mxu0 %v2569_v35 }
 0x139   : > { %2360 = vmatprep.subr.bf16.mxu1 %v2990_v0  ;;  %p2855_p8 = pnand %p2854_p9, %p2848_p0 }
 0x13b   : > { %2321 = vmatmul.mubr.msk.bf16.vlgmr.msra.gmra.mrb[0].mxu1 %vm691_vm1, %v578_v16  ;;  %2341 = vmatpush3.bf16.msra.mxu0 %v2569_v35 }
 0x13c   : > { %2324 = vmatprep.mubr.msk.bf16.mxu1 %vm691_vm1, %v579_v17  ;;  %2342 = vmatprep.subr.bf16.mxu0 %v2570_v36 }
 0x13f   : > { %2343 = vmatpush3.bf16.msra.mxu0 %v2570_v36 }
 0x140   : > { %2366 = vmatprep.subr.bf16.mxu0 %v2990_v0 }
 0x142   : > { %2345 = vmatmul.mubr.msk.bf16.vlgmr.msra.gmra.mrb[4].mxu0 %vm691_vm1, %v578_v16 }
 0x143   : > { %2325 = vmatmul.mubr.msk.bf16.gmra.mrb[4].mxu1 %vm691_vm1, %v580_v22  ;;  %2348 = vmatprep.mubr.msk.bf16.mxu0 %vm691_vm1, %v579_v17 }
 0x144   : > { %2328 = vmatprep.mubr.msk.bf16.mxu1 %vm691_vm1, %v581_v23 }
 0x14a   : > { %2349 = vmatmul.mubr.msk.bf16.gmra.mrb[8].mxu0 %vm691_vm1, %v580_v22 }
 0x14b   : > { %2329 = vmatmul.mubr.msk.bf16.gmra.mrb[8].mxu1 %vm691_vm1, %v582_v28  ;;  %2352 = vmatprep.mubr.msk.bf16.mxu0 %vm691_vm1, %v581_v23 }
 0x14c   : > { %2332 = vmatprep.mubr.msk.bf16.mxu1 %vm691_vm1, %v583_v29 }
 0x152   : > { %2353 = vmatmul.mubr.msk.bf16.gmra.mrb[12].mxu0 %vm691_vm1, %v582_v28 }
 0x153   : > { %2333 = vmatmul.mubr.msk.bf16.gmra.mrb[12].mxu1 %vm691_vm1, %v584_v32  ;;  %2356 = vmatprep.mubr.msk.bf16.mxu0 %vm691_vm1, %v583_v29 }
 0x154   : > { %2362 = vmatprep.mubr.msk.bf16.mxu1 %vm2991_vm0, %v2990_v0 }
 0x15a   : > { %2357 = vmatmul.mubr.msk.bf16.gmra.mrb[16].mxu0 %vm691_vm1, %v584_v32 }
 0x15b   : > { %2368 = vmatprep.mubr.msk.bf16.mxu0 %vm2991_vm0, %v2990_v0 }
 0x205   : > { %v646_v38 = vpop.f32.mrb[0].mxu0 }
 0x206   : > { %v647_v39 = vadd.f32 %v2215_v37, %v646_v38  ;;  %v2310_v40 = vpop.f32.mrb[1].mxu0 }
 0x207   : > { %v649_v41 = vpop.f32.mrb[2].mxu0 }
 0x208   : > { %v949_v42 = vmul.f32 0.35355338, %v647_v39  ;;  %v2311_v43 = vpop.f32.mrb[3].mxu0 }
 0x20a   : > { %v3460_v44 = vpack.c.bf16 %v949_v42, %v949_v42 }
 0x20c   : > { %952 = vrot.lane.b32.xlu0 %v3460_v44, %s2992_s19  ;;  %954 = vrot.lane.b32.xlu1 %v3460_v44, %s2993_s11 }
 0x20e   : > { %v2322_v45 = vpop.f32.mrb[0].mxu1 }
 0x20f   : > { %v750_v47 = vpop.f32.mrb[1].mxu1  ;;  %v759_v49 = vadd.f32 %v2322_v45, %v2219_v46 }
 0x210   : > { %v2323_v48 = vpop.f32.mrb[2].mxu1  ;;  %956 = vrot.lane.b32.xlu0 %v3460_v44, %s2994_s12  ;;  %v751_v52 = vadd.f32 %v2219_v46, %v750_v47 }
 0x211   : > { %v762_v50 = vadd.f32 %v2323_v48, %v2219_v46  ;;  %v753_v51 = vpop.f32.mrb[3].mxu1 }
 0x212   : > { %v754_v53 = vadd.f32 %v2219_v46, %v753_v51 }
 0x213   : > { %v959_v54 = vpack.c.bf16 %v762_v50, %v759_v49 }
 0x214   : > { %v958_v55 = vpack.c.bf16 %v754_v53, %v751_v52 }
 0x215   : > { %1024 = vrot.lane.b32.xlu1 %v959_v54, %s2994_s12  ;;  %976 = vrot.lane.b32.xlu0 %v959_v54, %s2992_s19  ;;  %v2346_v30 = vpop.f32.mrb[4].mxu0 }
 0x216   : > { %v2326_v56 = vpop.f32.mrb[4].mxu1  ;;  %v886_v31 = vpop.f32.mrb[5].mxu0  ;;  %v895_v42 = vadd.f32 %v2346_v30, %v2232_v34 }
 0x217   : > { %v766_v57 = vpop.f32.mrb[5].mxu1  ;;  %v775_v59 = vadd.f32 %v2326_v56, %v2219_v46  ;;  %v2347_v35 = vpop.f32.mrb[6].mxu0  ;;  %v887_v36 = vadd.f32 %v2232_v34, %v886_v31 }
 0x218   : > { %v2327_v58 = vpop.f32.mrb[6].mxu1  ;;  %v767_v62 = vadd.f32 %v2219_v46, %v766_v57  ;;  %v889_v37 = vpop.f32.mrb[7].mxu0  ;;  %v898_v43 = vadd.f32 %v2347_v35, %v2232_v34 }
 0x219   : > { %v778_v60 = vadd.f32 %v2327_v58, %v2219_v46  ;;  %v769_v61 = vpop.f32.mrb[7].mxu1  ;;  %998 = vrot.lane.b32.xlu1 %v958_v55, %s2993_s11  ;;  %1000 = vrot.lane.b32.xlu0 %v959_v54, %s2993_s11  ;;  %v890_v38 = vadd.f32 %v2232_v34, %v889_v37 }
 0x21a   : > { %v770_v63 = vadd.f32 %v2219_v46, %v769_v61  ;;  %v3504_v49 = vpack.c.bf16 %v898_v43, %v895_v42 }
 0x21b   : > { %v961_v1 = vpack.c.bf16 %v778_v60, %v775_v59  ;;  %v3502_v41 = vpack.c.bf16 %v890_v38, %v887_v36 }
 0x21c   : > { %v960_v2 = vpack.c.bf16 %v770_v63, %v767_v62 }
 0x21d   : > { %980 = vrot.lane.b32.xlu1 %v961_v1, %s2992_s19  ;;  %974 = vrot.lane.b32.xlu0 %v958_v55, %s2992_s19  ;;  %v2350_v45 = vpop.f32.mrb[8].mxu0 }
 0x21e   : > { %v2330_v3 = vpop.f32.mrb[8].mxu1  ;;  %v911_v57 = vadd.f32 %v2350_v45, %v2232_v34 }
 0x21f   : > { %v791_v4 = vadd.f32 %v2330_v3, %v2219_v46  ;;  %v782_v5 = vpop.f32.mrb[9].mxu1 }
 0x220   : > { %v783_v6 = vadd.f32 %v2219_v46, %v782_v5  ;;  %v2331_v7 = vpop.f32.mrb[10].mxu1 }
 0x221   : > { %1028 = vrot.lane.b32.xlu1 %v961_v1, %s2994_s12  ;;  %1022 = vrot.lane.b32.xlu0 %v958_v55, %s2994_s12  ;;  %v794_v8 = vadd.f32 %v2331_v7, %v2219_v46  ;;  %v785_v9 = vpop.f32.mrb[11].mxu1 }
 0x222   : > { %v786_v10 = vadd.f32 %v2219_v46, %v785_v9 }
 0x223   : > { %v963_v11 = vpack.c.bf16 %v794_v8, %v791_v4 }
 0x224   : > { %v962_v12 = vpack.c.bf16 %v786_v10, %v783_v6 }
 0x225   : > { %978 = vrot.lane.b32.xlu1 %v960_v2, %s2992_s19  ;;  %1004 = vrot.lane.b32.xlu0 %v961_v1, %s2993_s11 }
 0x226   : > { %v2334_v13 = vpop.f32.mrb[12].mxu1 }
 0x227   : > { %v807_v14 = vadd.f32 %v2334_v13, %v2219_v46  ;;  %v798_v15 = vpop.f32.mrb[13].mxu1 }
 0x228   : > { %v799_v16 = vadd.f32 %v2219_v46, %v798_v15  ;;  %v2335_v17 = vpop.f32.mrb[14].mxu1 }
 0x229   : > { %1002 = vrot.lane.b32.xlu1 %v960_v2, %s2993_s11  ;;  %1026 = vrot.lane.b32.xlu0 %v960_v2, %s2994_s12  ;;  %v810_v18 = vadd.f32 %v2335_v17, %v2219_v46  ;;  %v801_v19 = vpop.f32.mrb[15].mxu1 }
 0x22a   : > { %v802_v20 = vadd.f32 %v2219_v46, %v801_v19  ;;  %v902_v46 = vpop.f32.mrb[9].mxu0 }
 0x22b   : > { %v965_v21 = vpack.c.bf16 %v810_v18, %v807_v14  ;;  %v2351_v50 = vpop.f32.mrb[10].mxu0  ;;  %v903_v51 = vadd.f32 %v2232_v34, %v902_v46 }
 0x22c   : > { %v964_v22 = vpack.c.bf16 %v802_v20, %v799_v16  ;;  %v905_v52 = vpop.f32.mrb[11].mxu0  ;;  %v914_v58 = vadd.f32 %v2351_v50, %v2232_v34 }
 0x22d   : > { %984 = vrot.lane.b32.xlu1 %v963_v11, %s2992_s19  ;;  %1008 = vrot.lane.b32.xlu0 %v963_v11, %s2993_s11  ;;  %v906_v53 = vadd.f32 %v2232_v34, %v905_v52  ;;  %v2354_v59 = vpop.f32.mrb[12].mxu0 }
 0x22e   : > { %v918_v60 = vpop.f32.mrb[13].mxu0  ;;  %v3508_v63 = vpack.c.bf16 %v914_v58, %v911_v57  ;;  %v927_v7 = vadd.f32 %v2354_v59, %v2232_v34 }
 0x22f   : > { %v3506_v56 = vpack.c.bf16 %v906_v53, %v903_v51 }
 0x231   : > { %1032 = vrot.lane.b32.xlu1 %v963_v11, %s2994_s12  ;;  %982 = vrot.lane.b32.xlu0 %v962_v12, %s2992_s19 }
 0x235   : > { %1030 = vrot.lane.b32.xlu1 %v962_v12, %s2994_s12  ;;  %1006 = vrot.lane.b32.xlu0 %v962_v12, %s2993_s11 }
 0x239   : > { %988 = vrot.lane.b32.xlu1 %v965_v21, %s2992_s19  ;;  %1012 = vrot.lane.b32.xlu0 %v965_v21, %s2993_s11 }
 0x23d   : > { %1036 = vrot.lane.b32.xlu1 %v965_v21, %s2994_s12  ;;  %986 = vrot.lane.b32.xlu0 %v964_v22, %s2992_s19 }
 0x241   : > { %1034 = vrot.lane.b32.xlu1 %v964_v22, %s2994_s12  ;;  %1010 = vrot.lane.b32.xlu0 %v964_v22, %s2993_s11 }
 0x264   : > { %1140 = vxpose.xlu1.c.b16.start [1/8] (narrow) %v958_v55, 16 }
 0x268   : > { %1141 = vxpose.xlu1.c.b16.cont [2/8] (narrow) %v959_v54, 16 }
 0x26c   : > { %1142 = vxpose.xlu1.c.b16.cont [3/8] (narrow) %v960_v2, 16  ;;  %v919_v2 = vadd.f32 %v2232_v34, %v918_v60 }
 0x270   : > { %1143 = vxpose.xlu1.c.b16.cont [4/8] (narrow) %v961_v1, 16  ;;  %v2355_v1 = vpop.f32.mrb[14].mxu0 }
 0x271   : > { %v921_v3 = vpop.f32.mrb[15].mxu0  ;;  %v930_v8 = vadd.f32 %v2355_v1, %v2232_v34 }
 0x272   : > { %v922_v4 = vadd.f32 %v2232_v34, %v921_v3 }
 0x273   : > { %v3512_v10 = vpack.c.bf16 %v930_v8, %v927_v7 }
 0x274   : > { %1144 = vxpose.xlu1.c.b16.cont [5/8] (narrow) %v962_v12, 16  ;;  %v3510_v9 = vpack.c.bf16 %v922_v4, %v919_v2 }
 0x278   : > { %1145 = vxpose.xlu1.c.b16.cont [6/8] (narrow) %v963_v11, 16  ;;  %v2358_v11 = vpop.f32.mrb[16].mxu0 }
 0x279   : > { %v934_v12 = vpop.f32.mrb[17].mxu0  ;;  %v943_v15 = vadd.f32 %v2358_v11, %v2232_v34 }
 0x27a   : > { %v935_v16 = vadd.f32 %v2232_v34, %v934_v12  ;;  %v2359_v17 = vpop.f32.mrb[18].mxu0 }
 0x27b   : > { %v946_v18 = vadd.f32 %v2359_v17, %v2232_v34  ;;  %v937_v19 = vpop.f32.mrb[19].mxu0 }
 0x27c   : > { %1146 = vxpose.xlu1.c.b16.cont [7/8] (narrow) %v964_v22, 16  ;;  %v938_v20 = vadd.f32 %v2232_v34, %v937_v19 }
 0x27e   : > { %v3492_v23 = vpop.permute.xlu0 %952  ;;  %v3494_v24 = vpop.permute.xlu1 %954 }
 0x280   : > { %1147 = vxpose.xlu1.c.b16.end [8/8] (narrow) %v965_v21, 16 }
 0x282   : > { %v3496_v25 = vpop.permute.xlu0 %956 }
 0x287   : > { %v1025_v26 = vpop.permute.xlu1 %1024  ;;  %v977_v27 = vpop.permute.xlu0 %976 }
 0x28b   : > { %v3498_v28 = vpop.permute.xlu1 %998  ;;  %v3500_v29 = vpop.permute.xlu0 %1000 }
 0x28f   : > { %v981_v32 = vpop.permute.xlu1 %980  ;;  %v975_v33 = vpop.permute.xlu0 %974 }
 0x290   : > { %1156 = vxpose.xlu0.c.b16.start [1/8] (narrow) %v975_v33, 16 }
 0x293   : > { %v1029_v39 = vpop.permute.xlu1 %1028  ;;  %v1023_v40 = vpop.permute.xlu0 %1022 }
 0x294   : > { %1157 = vxpose.xlu0.c.b16.cont [2/8] (narrow) %v977_v27, 16  ;;  %1188 = vxpose.xlu1.c.b16.start [1/8] (narrow) %v1023_v40, 16  ;;  %v3516_v27 = vpack.c.bf16 %v938_v20, %v935_v16 }
 0x297   : > { %v979_v47 = vpop.permute.xlu1 %978  ;;  %v1005_v48 = vpop.permute.xlu0 %1004 }
 0x298   : > { %1158 = vxpose.xlu0.c.b16.cont [3/8] (narrow) %v979_v47, 16  ;;  %1189 = vxpose.xlu1.c.b16.cont [2/8] (narrow) %v1025_v26, 16  ;;  %v3514_v26 = vpack.c.bf16 %v946_v18, %v943_v15 }
 0x29b   : > { %v1003_v54 = vpop.permute.xlu1 %1002  ;;  %v1027_v55 = vpop.permute.xlu0 %1026 }
 0x29c   : > { %1159 = vxpose.xlu0.c.b16.cont [4/8] (narrow) %v981_v32, 16  ;;  %1190 = vxpose.xlu1.c.b16.cont [3/8] (narrow) %v1027_v55, 16 }
 0x29f   : > { %v985_v61 = vpop.permute.xlu1 %984  ;;  %v1009_v62 = vpop.permute.xlu0 %1008 }
 0x2a0   : > { %1191 = vxpose.xlu1.c.b16.cont [4/8] (narrow) %v1029_v39, 16 }
 0x2a3   : > { %v1033_v5 = vpop.permute.xlu1 %1032  ;;  %v983_v6 = vpop.permute.xlu0 %982 }
 0x2a4   : > { %1160 = vxpose.xlu0.c.b16.cont [5/8] (narrow) %v983_v6, 16 }
 0x2a7   : > { %v1031_v13 = vpop.permute.xlu1 %1030  ;;  %v1007_v14 = vpop.permute.xlu0 %1006 }
 0x2a8   : > { %1192 = vxpose.xlu1.c.b16.cont [5/8] (narrow) %v1031_v13, 16  ;;  %1161 = vxpose.xlu0.c.b16.cont [6/8] (narrow) %v985_v61, 16 }
 0x2ab   : > { %v989_v21 = vpop.permute.xlu1 %988  ;;  %v1013_v22 = vpop.permute.xlu0 %1012 }
 0x2ac   : > { %1193 = vxpose.xlu1.c.b16.cont [6/8] (narrow) %v1033_v5, 16 }
 0x2af   : > { %v1037_v30 = vpop.permute.xlu1 %1036  ;;  %v987_v31 = vpop.permute.xlu0 %986 }
 0x2b0   : > { %1162 = vxpose.xlu0.c.b16.cont [7/8] (narrow) %v987_v31, 16 }
 0x2b3   : > { %v1035_v32 = vpop.permute.xlu1 %1034 }
 0x2b4   : > { %1194 = vxpose.xlu1.c.b16.cont [7/8] (narrow) %v1035_v32, 16  ;;  %1163 = vxpose.xlu0.c.b16.end [8/8] (narrow) %v989_v21, 16 }
 0x2b8   : > { %1195 = vxpose.xlu1.c.b16.end [8/8] (narrow) %v1037_v30, 16  ;;  %1172 = vxpose.xlu0.c.b16.start [1/8] (narrow) %v3498_v28, 16 }
 0x2bc   : > { %1173 = vxpose.xlu0.c.b16.cont [2/8] (narrow) %v3500_v29, 16  ;;  %1064 = vrot.lane.b32.xlu1 %v3504_v49, %s2992_s19  ;;  %v1011_v29 = vpop.permute.xlu0 %1010 }
 0x2c0   : > { %1174 = vxpose.xlu0.c.b16.cont [3/8] (narrow) %v1003_v54, 16  ;;  %1066 = vrot.lane.b32.xlu1 %v3506_v56, %s2992_s19 }
 0x2c4   : > { %1175 = vxpose.xlu0.c.b16.cont [4/8] (narrow) %v1005_v48, 16  ;;  %1070 = vrot.lane.b32.xlu1 %v3510_v9, %s2992_s19 }
 0x2c8   : > { %1176 = vxpose.xlu0.c.b16.cont [5/8] (narrow) %v1007_v14, 16  ;;  %1110 = vrot.lane.b32.xlu1 %v3502_v41, %s2994_s12 }
 0x2ca   : > { %v1148_v33 = vpop.trf.xlu1 }
 0x2cb   : > { %v1210_v28 = vsel %vm1208_vm3, %v1148_v33, 0 }
 0x2cc   : > { %2361 = vmatpush3.bf16.msra.mxu1 %v1210_v28  ;;  %1177 = vxpose.xlu0.c.b16.cont [6/8] (narrow) %v1009_v62, 16 }
 0x2cd   : > { %2372 = vmatprep.subr.bf16.mxu1 %v2990_v0  ;;  %1088 = vrot.lane.b32.xlu1 %v3504_v49, %s2993_s11 }
 0x2cf   : > { %2363 = vmatmul.mubr.msk.bf16.vlgmr.msra.gmra.mrb[16].mxu1 %vm1204_vm4, %v3460_v44 }
 0x2d0   : > { %1178 = vxpose.xlu0.c.b16.cont [7/8] (narrow) %v1011_v29, 16  ;;  %2374 = vmatprep.mubr.msk.bf16.mxu1 %vm2991_vm0, %v2990_v0 }
 0x2d1   : > { %1074 = vrot.lane.b32.xlu1 %v3516_v27, %s2992_s19 }
 0x2d4   : > { %1179 = vxpose.xlu0.c.b16.end [8/8] (narrow) %v1013_v22, 16 }
 0x2d8   : > { %1434 = vxpose.xlu0.c.b16.start [1/8] (narrow) %v3502_v41, 16 }
 0x2dc   : > { %1435 = vxpose.xlu0.c.b16.cont [2/8] (narrow) %v3504_v49, 16 }
 0x2e0   : > { %1436 = vxpose.xlu0.c.b16.cont [3/8] (narrow) %v3506_v56, 16 }
 0x2e4   : > { %1437 = vxpose.xlu0.c.b16.cont [4/8] (narrow) %v3508_v63, 16 }
 0x2e8   : > { %1438 = vxpose.xlu0.c.b16.cont [5/8] (narrow) %v3510_v9, 16 }
 0x2ec   : > { %1439 = vxpose.xlu0.c.b16.cont [6/8] (narrow) %v3512_v10, 16 }
 0x2f0   : > { %1440 = vxpose.xlu0.c.b16.cont [7/8] (narrow) %v3516_v27, 16 }
 0x2f4   : > { %1441 = vxpose.xlu0.c.b16.end [8/8] (narrow) %v3514_v26, 16 }
 0x2fd   : > { %1062 = vrot.lane.b32.xlu0 %v3502_v41, %s2992_s19 }
 0x2fe   : > { %v1164_v44 = vpop.trf.xlu0 }
 0x2ff   : > { %v1256_v34 = vsel %vm1208_vm3, %v1164_v44, 0 }
 0x300   : > { %2367 = vmatpush3.bf16.msra.mxu0 %v1256_v34 }
 0x301   : > { %2378 = vmatprep.subr.bf16.mxu0 %v2990_v0  ;;  %1068 = vrot.lane.b32.xlu0 %v3508_v63, %s2992_s19 }
 0x302   : > { %v1196_v35 = vpop.trf.xlu1 }
 0x303   : > { %2369 = vmatmul.mubr.msk.bf16.vlgmr.msra.gmra.mrb[20].mxu0 %vm1204_vm4, %v3492_v23  ;;  %v1348_v36 = vsel %vm1208_vm3, %v1196_v35, 0 }
 0x304   : > { %2379 = vmatpush3.bf16.msra.mxu0 %v1348_v36  ;;  %2380 = vmatprep.mubr.msk.bf16.mxu0 %vm2991_vm0, %v2990_v0 }
 0x305   : > { %1086 = vrot.lane.b32.xlu0 %v3502_v41, %s2993_s11  ;;  %2390 = vmatprep.subr.bf16.mxu0 %v2990_v0 }
 0x309   : > { %1072 = vrot.lane.b32.xlu0 %v3512_v10, %s2992_s19 }
 0x30b   : > { %2381 = vmatmul.mubr.msk.bf16.vlgmr.msra.gmra.mrb[24].mxu0 %vm1204_vm4, %v3496_v25  ;;  %v2245_v25 = vld [vmem:[%s482_s27] ss:$0 sm:$0xff] }
 0x30c   : > { %2392 = vmatprep.mubr.msk.bf16.mxu0 %vm2991_vm0, %v2990_v0 }
 0x30d   : > { %1112 = vrot.lane.b32.xlu0 %v3504_v49, %s2994_s12 }
 0x311   : > { %1090 = vrot.lane.b32.xlu0 %v3506_v56, %s2993_s11 }
 0x31e   : > { %v1180_v23 = vpop.trf.xlu0 }
 0x31f   : > { %v1302_v37 = vsel %vm1208_vm3, %v1180_v23, 0 }
 0x320   : > { %2373 = vmatpush3.bf16.msra.mxu1 %v1302_v37 }
 0x321   : > { %2384 = vmatprep.subr.bf16.mxu1 %v2990_v0 }
 0x323   : > { %2375 = vmatmul.mubr.msk.bf16.vlgmr.msra.gmra.mrb[20].mxu1 %vm1204_vm4, %v3494_v24 }
 0x324   : > { %2386 = vmatprep.mubr.msk.bf16.mxu1 %vm2991_vm0, %v2990_v0 }
 0x32e   : > { %v1065_v60 = vpop.permute.xlu1 %1064 }
 0x332   : > { %v1067_v62 = vpop.permute.xlu1 %1066 }
 0x336   : > { %v1071_v2 = vpop.permute.xlu1 %1070 }
 0x33a   : > { %v1111_v4 = vpop.permute.xlu1 %1110 }
 0x33e   : > { %v3594_v59 = vpop.trf.xlu0 }
 0x33f   : > { %v3604_v6 = vpop.permute.xlu1 %1088 }
 0x343   : > { %v1075_v7 = vpop.permute.xlu1 %1074 }
 0x36f   : > { %v1063_v61 = vpop.permute.xlu0 %1062 }
 0x373   : > { %v1069_v1 = vpop.permute.xlu0 %1068 }
 0x377   : > { %v3598_v3 = vpop.permute.xlu0 %1086 }
 0x37b   : > { %v1073_v5 = vpop.permute.xlu0 %1072 }
 0x37f   : > { %v1113_v8 = vpop.permute.xlu0 %1112 }
 0x383   : > { %v3610_v11 = vpop.permute.xlu0 %1090 }
 0x3a2   : > { %v1246_v38 = vpop.f32.mrb[16].mxu1 }
 0x3a3   : > { %v3579_v39 = vadd.f32 %v2245_v25, %v1246_v38  ;;  %v2364_v40 = vpop.f32.mrb[17].mxu1 }
 0x3a4   : > { %v1249_v41 = vpop.f32.mrb[18].mxu1 }
 0x3a5   : > { %1390 = vst [vmem:[%s3581_s21] sm:$0xff] %v3579_v39  ;;  %v2365_v42 = vpop.f32.mrb[19].mxu1  ;;  %1394 = vmax.xlane.f32.xlu0 %v3579_v39 }
 0x3bb   : > { %1076 = vrot.lane.b32.xlu0 %v3514_v26, %s2992_s19 }
 0x3d6   : > { %v1292_v24 = vpop.f32.mrb[20].mxu0 }
 0x3d7   : > { %v1293_v43 = vadd.f32 %v2245_v25, %v1292_v24  ;;  %v2370_v45 = vpop.f32.mrb[21].mxu0 }
 0x3d8   : > { %v1295_v46 = vpop.f32.mrb[22].mxu0 }
 0x3d9   : > { %1391 = vst [vmem:[%s3581_s21 + $0x8] sm:$0xff] %v1293_v43  ;;  %v2371_v47 = vpop.f32.mrb[23].mxu0  ;;  %1396 = vmax.xlane.f32.xlu1 %v1293_v43 }
 0x3de   : > { %v1384_v48 = vpop.f32.mrb[24].mxu0 }
 0x3df   : > { %v3589_v49 = vadd.f32 %v2245_v25, %v1384_v48  ;;  %v2382_v50 = vpop.f32.mrb[25].mxu0 }
 0x3e0   : > { %v1387_v51 = vpop.f32.mrb[26].mxu0 }
 0x3e1   : > { %1393 = vst [vmem:[%s3581_s21 + $0x18] sm:$0xff] %v3589_v49  ;;  %v2383_v52 = vpop.f32.mrb[27].mxu0 }
 0x3f6   : > { %v1338_v53 = vpop.f32.mrb[20].mxu1 }
 0x3f7   : > { %v1339_v54 = vadd.f32 %v2245_v25, %v1338_v53  ;;  %v2376_v55 = vpop.f32.mrb[21].mxu1 }
 0x3f8   : > { %v1341_v57 = vpop.f32.mrb[22].mxu1 }
 0x3f9   : > { %1392 = vst [vmem:[%s3581_s21 + $0x10] sm:$0xff] %v1339_v54  ;;  %v2377_v58 = vpop.f32.mrb[23].mxu1  ;;  %1398 = vmax.xlane.f32.xlu0 %v1339_v54 }
 0x406   : > { %1450 = vxpose.xlu1.c.b16.start [1/8] (narrow) %v1063_v61, 16 }
 0x40a   : > { %1451 = vxpose.xlu1.c.b16.cont [2/8] (narrow) %v1065_v60, 16 }
 0x40e   : > { %1452 = vxpose.xlu1.c.b16.cont [3/8] (narrow) %v1067_v62, 16 }
 0x40f   : > { %1116 = vrot.lane.b32.xlu0 %v3508_v63, %s2994_s12 }
 0x412   : > { %1453 = vxpose.xlu1.c.b16.cont [4/8] (narrow) %v1069_v1, 16 }
 0x413   : > { %1118 = vrot.lane.b32.xlu0 %v3510_v9, %s2994_s12 }
 0x416   : > { %1454 = vxpose.xlu1.c.b16.cont [5/8] (narrow) %v1071_v2, 16 }
 0x417   : > { %1096 = vrot.lane.b32.xlu0 %v3512_v10, %s2993_s11 }
 0x41a   : > { %1455 = vxpose.xlu1.c.b16.cont [6/8] (narrow) %v1073_v5, 16 }
 0x41b   : > { %1122 = vrot.lane.b32.xlu0 %v3516_v27, %s2994_s12 }
 0x41e   : > { %1456 = vxpose.xlu1.c.b16.cont [7/8] (narrow) %v1075_v7, 16 }
 0x41f   : > { %1124 = vrot.lane.b32.xlu0 %v3514_v26, %s2994_s12 }
 0x432   : > { %v1395_v12 = vpop.xlane.xlu0 %1394 }
 0x436   : > { %v1077_v13 = vpop.permute.xlu0 %1076 }
 0x437   : > { %1457 = vxpose.xlu1.c.b16.end [8/8] (narrow) %v1077_v13, 16 }
 0x43b   : > { %1114 = vrot.lane.b32.xlu1 %v3506_v56, %s2994_s12  ;;  %v1402_v56 = vsub.f32 %v3579_v39, %v1395_v12  ;;  %v2995_v12 = vmov 1983009808  }
 0x43c   : > { %v1789_v13 = vunpack.c.l.s4 %v2995_v12 }
 0x43d   : > { %v1406_v19 = vmul.f32 1.442695, %v1402_v56 }
 0x45f   : > { %1400 = vmax.xlane.f32.xlu1 %v3589_v49 }
 0x466   : > { %v1397_v14 = vpop.xlane.xlu1 %1396 }
 0x467   : > { %v1403_v15 = vsub.f32 %v1293_v43, %v1397_v14  ;;  %v1791_v14 = vlaneseq }
 0x469   : > { %v1408_v16 = vmul.f32 1.442695, %v1403_v15  ;;  %v2996_v15 = vmov 1934713408   ;;  %v1792_v56 = vshrl.u32 %v1791_v14, 7 }
 0x46b   : > { %2571 = vpow2.f32 %v1408_v16  ;;  %v1821_v16 = vunpack.c.l.s4 %v2996_v15 }
 0x46c   : > { %2573 = vpow2.f32 %v1406_v19 }
 0x46d   : > { %v1822_v19 = vunpack.c.0.s8 %v1821_v16 }
 0x470   : > { %1092 = vrot.lane.b32.xlu1 %v3508_v63, %s2993_s11 }
 0x474   : > { %1094 = vrot.lane.b32.xlu1 %v3510_v9, %s2993_s11 }
 0x475   : > { %v2572_v17 = vpop.eup %2571 }
 0x476   : > { %1416 = vadd.xlane.f32.xlu0 %v2572_v17  ;;  %v2574_v9 = vpop.eup %2573 }
 0x478   : > { %1120 = vrot.lane.b32.xlu1 %v3512_v10, %s2994_s12 }
 0x47c   : > { %1098 = vrot.lane.b32.xlu1 %v3516_v27, %s2993_s11 }
 0x480   : > { %1100 = vrot.lane.b32.xlu1 %v3514_v26, %s2993_s11 }
 0x481   : > { %v1458_v10 = vpop.trf.xlu1 }
 0x486   : > { %v1399_v18 = vpop.xlane.xlu0 %1398 }
 0x487   : > { %v1404_v20 = vsub.f32 %v1339_v54, %v1399_v18 }
 0x489   : > { %v1410_v63 = vmul.f32 1.442695, %v1404_v20 }
 0x48a   : > { %v1117_v27 = vpop.permute.xlu0 %1116 }
 0x48b   : > { %2575 = vpow2.f32 %v1410_v63 }
 0x48e   : > { %v1119_v26 = vpop.permute.xlu0 %1118 }
 0x492   : > { %v1097_v28 = vpop.permute.xlu0 %1096 }
 0x495   : > { %v2576_v21 = vpop.eup %2575 }
 0x496   : > { %v1123_v34 = vpop.permute.xlu0 %1122 }
 0x49a   : > { %v1125_v36 = vpop.permute.xlu0 %1124 }
 0x4a4   : > { %1414 = vadd.xlane.f32.xlu1 %v2574_v9 }
 0x4a8   : > { %1418 = vadd.xlane.f32.xlu1 %v2576_v21 }
 0x4ad   : > { %v1115_v22 = vpop.permute.xlu1 %1114 }
 0x4d5   : > { %1482 = vxpose.xlu1.c.b16.start [1/8] (narrow) %v1111_v4, 16 }
 0x4d9   : > { %1483 = vxpose.xlu1.c.b16.cont [2/8] (narrow) %v1113_v8, 16 }
 0x4dd   : > { %1484 = vxpose.xlu1.c.b16.cont [3/8] (narrow) %v1115_v22, 16 }
 0x4e1   : > { %1485 = vxpose.xlu1.c.b16.cont [4/8] (narrow) %v1117_v27, 16 }
 0x4e5   : > { %1486 = vxpose.xlu1.c.b16.cont [5/8] (narrow) %v1119_v26, 16  ;;  %v1825_v26 = vsub.s32 %v1822_v19, %v1792_v56 }
 0x4ec   : > { %v1401_v30 = vpop.xlane.xlu1 %1400 }
 0x4ed   : > { %v1405_v31 = vsub.f32 %v3589_v49, %v1401_v30 }
 0x4ef   : > { %v1412_v32 = vmul.f32 1.442695, %v1405_v31 }
 0x4f0   : > { %v1093_v33 = vpop.permute.xlu1 %1092 }
 0x4f1   : > { %2577 = vpow2.f32 %v1412_v32 }
 0x4f4   : > { %v1095_v29 = vpop.permute.xlu1 %1094 }
 0x4f8   : > { %v1121_v44 = vpop.permute.xlu1 %1120 }
 0x4f9   : > { %1487 = vxpose.xlu1.c.b16.cont [6/8] (narrow) %v1121_v44, 16 }
 0x4fb   : > { %v2578_v35 = vpop.eup %2577 }
 0x4fc   : > { %1420 = vadd.xlane.f32.xlu0 %v2578_v35  ;;  %v1099_v39 = vpop.permute.xlu1 %1098 }
 0x4fd   : > { %1488 = vxpose.xlu1.c.b16.cont [7/8] (narrow) %v1123_v34, 16 }
 0x500   : > { %v1101_v40 = vpop.permute.xlu1 %1100 }
 0x501   : > { %1489 = vxpose.xlu1.c.b16.end [8/8] (narrow) %v1125_v36, 16 }
 0x503   : > { %v1417_v23 = vpop.xlane.xlu0 %1416 }
 0x504   : > { %2579 = vrcp.f32 %v1417_v23 }
 0x50e   : > { %v2580_v37 = vpop.eup %2579 }
 0x50f   : > { %v1427_v25 = vmul.f32 %v2580_v37, %v2572_v17  ;;  %v1790_v17 = vunpack.c.0.s8 %v1789_v13 }
 0x511   : > { %v1431_v38 = vpack.c.bf16 %v1427_v25, %v1427_v25  ;;  %v1793_v63 = vsub.s32 %v1790_v17, %v1792_v56 }
 0x513   : > { %2391 = vmatpush3.bf16.xpose.msra.mxu0 %v1431_v38 }
 0x514   : > { %2402 = vmatprep.subr.bf16.mxu0 %v2990_v0 }
 0x51a   : > { %2393 = vmatmul.mubr.bf16.vlgmr.msra.gmra.mrb[28].mxu0 %v1458_v10 }
 0x51b   : > { %2404 = vmatprep.mubr.msk.bf16.mxu0 %vm2991_vm0, %v2990_v0 }
 0x529   : > { %1466 = vxpose.xlu0.c.b16.start [1/8] (narrow) %v3598_v3, 16 }
 0x52d   : > { %1467 = vxpose.xlu0.c.b16.cont [2/8] (narrow) %v3604_v6, 16 }
 0x531   : > { %1468 = vxpose.xlu0.c.b16.cont [3/8] (narrow) %v3610_v11, 16  ;;  %v1415_v41 = vpop.xlane.xlu1 %1414 }
 0x532   : > { %2581 = vrcp.f32 %v1415_v41 }
 0x535   : > { %1469 = vxpose.xlu0.c.b16.cont [4/8] (narrow) %v1093_v33, 16  ;;  %v1419_v42 = vpop.xlane.xlu1 %1418 }
 0x536   : > { %2583 = vrcp.f32 %v1419_v42 }
 0x539   : > { %1470 = vxpose.xlu0.c.b16.cont [5/8] (narrow) %v1095_v29, 16 }
 0x53c   : > { %v2582_v24 = vpop.eup %2581 }
 0x53d   : > { %1471 = vxpose.xlu0.c.b16.cont [6/8] (narrow) %v1097_v28, 16  ;;  %v1426_v43 = vmul.f32 %v2582_v24, %v2574_v9 }
 0x53f   : > { %v1430_v45 = vpack.c.bf16 %v1426_v43, %v1426_v43 }
 0x540   : > { %v2584_v46 = vpop.eup %2583 }
 0x541   : > { %1472 = vxpose.xlu0.c.b16.cont [7/8] (narrow) %v1099_v39, 16  ;;  %2385 = vmatpush3.bf16.xpose.msra.mxu1 %v1430_v45  ;;  %v1428_v47 = vmul.f32 %v2584_v46, %v2576_v21 }
 0x542   : > { %2396 = vmatprep.subr.bf16.mxu1 %v2990_v0 }
 0x543   : > { %v1432_v48 = vpack.c.bf16 %v1428_v47, %v1428_v47 }
 0x545   : > { %1473 = vxpose.xlu0.c.b16.end [8/8] (narrow) %v1101_v40, 16 }
 0x548   : > { %2387 = vmatmul.mubr.bf16.vlgmr.msra.gmra.mrb[24].mxu1 %v3594_v59 }
 0x549   : > { %2397 = vmatpush3.bf16.xpose.msra.mxu1 %v1432_v48  ;;  %2398 = vmatprep.mubr.msk.bf16.mxu1 %vm2991_vm0, %v2990_v0 }
 0x54b   : > { %v1490_v54 = vpop.trf.xlu1 }
 0x589   : > { %v1421_v49 = vpop.xlane.xlu0 %1420 }
 0x58a   : > { %2585 = vrcp.f32 %v1421_v49 }
 0x58f   : > { %v1474_v50 = vpop.trf.xlu0 }
 0x590   : > { %2399 = vmatmul.mubr.bf16.vlgmr.msra.gmra.mrb[28].mxu1 %v1474_v50 }
 0x594   : > { %v2586_v51 = vpop.eup %2585 }
 0x595   : > { %v1429_v52 = vmul.f32 %v2586_v51, %v2578_v35 }
 0x597   : > { %v1433_v53 = vpack.c.bf16 %v1429_v52, %v1429_v52 }
 0x599   : > { %2403 = vmatpush3.bf16.xpose.msra.mxu0 %v1433_v53 }
 0x5a0   : > { %2405 = vmatmul.mubr.bf16.vlgmr.msra.gmra.mrb[32].mxu0 %v1490_v54 }
 0x5ed   : > { %v1572_v55 = vpop.f32.mrb[28].mxu0 }
 0x5ee   : > { %v2394_v57 = vpop.f32.mrb[29].mxu0  ;;  %1690 = vxpose.xlu1.b32.start.end [1/1] (short) (narrow) %v1572_v55, 8 }
 0x5ef   : > { %v1575_v58 = vpop.f32.mrb[30].mxu0 }
 0x5f0   : > { %v2395_v60 = vpop.f32.mrb[31].mxu0 }
 0x61b   : > { %v1532_v59 = vpop.f32.mrb[24].mxu1 }
 0x61c   : > { %1658 = vxpose.xlu0.b32.start.end [1/1] (short) (narrow) %v1532_v59, 8  ;;  %v2388_v61 = vpop.f32.mrb[25].mxu1 }
 0x61d   : > { %v1535_v62 = vpop.f32.mrb[26].mxu1 }
 0x61e   : > { %v2389_v0 = vpop.f32.mrb[27].mxu1 }
 0x663   : > { %v1612_v1 = vpop.f32.mrb[28].mxu1 }
 0x664   : > { %1722 = vxpose.xlu0.b32.start.end [1/1] (short) (narrow) %v1612_v1, 8  ;;  %v2400_v2 = vpop.f32.mrb[29].mxu1 }
 0x665   : > { %v1615_v3 = vpop.f32.mrb[30].mxu1 }
 0x666   : > { %v2401_v4 = vpop.f32.mrb[31].mxu1 }
 0x66e   : > { %v1706_v20 = vpop.trf.xlu1 }
 0x673   : > { %v1652_v5 = vpop.f32.mrb[32].mxu0 }
 0x674   : > { %1754 = vxpose.xlu0.b32.start.end [1/1] (short) (narrow) %v1652_v5, 8  ;;  %v2406_v6 = vpop.f32.mrb[33].mxu0 }
 0x675   : > { %v1655_v7 = vpop.f32.mrb[34].mxu0 }
 0x676   : > { %v2407_v8 = vpop.f32.mrb[35].mxu0 }
 0x69c   : > { %v1674_v11 = vpop.trf.xlu0 }
 0x6e4   : > { %v1738_v18 = vpop.trf.xlu0 }
 0x6e5   : > { %v1786_v9 = vcombine.low %v1674_v11, %v1738_v18  ;;  %v1787_v21 = vcombine.high %v1674_v11, %v1738_v18 }
 0x6e7   : > { %v1794_v30 = vrot.slane %v1786_v9, %v1793_v63  ;;  %v1801_v31 = vrot.slane %v1787_v21, %v1793_v63 }
 0x6f4   : > { %v1770_v10 = vpop.trf.xlu0 }
 0x6f5   : > { %v1802_v22 = vcombine.low %v1706_v20, %v1770_v10  ;;  %v1803_v27 = vcombine.high %v1706_v20, %v1770_v10 }
 0x6f7   : > { %v1810_v32 = vrot.slane %v1802_v22, %v1793_v63  ;;  %v1817_v33 = vrot.slane %v1803_v27, %v1793_v63 }
 0x6f9   : > { %v1818_v28 = vcombine.low %v1794_v30, %v1810_v32  ;;  %v1819_v29 = vcombine.high %v1794_v30, %v1810_v32  ;;  %v1834_v44 = vcombine.low %v1801_v31, %v1817_v33  ;;  %v1835_v34 = vcombine.high %v1801_v31, %v1817_v33 }
 0x6fb   : > { %v1826_v35 = vrot.slane %v1818_v28, %v1825_v26  ;;  %v1833_v36 = vrot.slane %v1819_v29, %v1825_v26  ;;  %v1842_v23 = vrot.slane %v1834_v44, %v1825_v26  ;;  %v1849_v37 = vrot.slane %v1835_v34, %v1825_v26 }
 0x6fd   : > { %v1854_v25 = vcombine.low %v1826_v35, %v1833_v36  ;;  %v2250_v38 = vcombine.high %v1826_v35, %v1833_v36  ;;  %v1870_v39 = vcombine.low %v1842_v23, %v1849_v37  ;;  %v2251_v40 = vcombine.high %v1842_v23, %v1849_v37 }
 0x6ff   : > { %v1861_v41 = vrot.slane %v1854_v25, %v1793_v63  ;;  %v1869_v42 = vrot.slane %v2250_v38, %v1793_v63  ;;  %v1877_v24 = vrot.slane %v1870_v39, %v1793_v63  ;;  %v1885_v43 = vrot.slane %v2251_v40, %v1793_v63 }
 0x701   : > { %v1886_v45 = vcombine.low %v1861_v41, %v1869_v42  ;;  %v1902_v46 = vcombine.low %v1877_v24, %v1885_v43  ;;  %v1887_v47 = vcombine.high %v1861_v41, %v1869_v42  ;;  %v1903_v48 = vcombine.high %v1877_v24, %v1885_v43 }
 0x703   : > { %v1894_v49 = vrot.slane %v1886_v45, %v1825_v26  ;;  %v1910_v50 = vrot.slane %v1902_v46, %v1825_v26  ;;  %v1901_v51 = vrot.slane %v1887_v47, %v1825_v26  ;;  %v1917_v52 = vrot.slane %v1903_v48, %v1825_v26 }
 0x704   : > { %2858 = shalt.err (!%p2855_p8)
}
 0x705   : > { %s2859_s25 = scalar_lea.hbm %s3644_s10, 512  ;;  %s2863_s19 = scalar_lea.hbm %s3800_s30, 1024 }
 0x706   : > { %p2860_p11 = scmp.ne.s32.totalorder %s3644_s10, %s2859_s25  ;;  %p2864_p7 = scmp.lt.u32.totalorder %s3644_s10, %s3800_s30 }
 0x707   : > { %p2865_p2 = scmp.lt.u32.totalorder %s2863_s19, %s2859_s25  ;;  %p2867_p5 = scmp.lt.u32.totalorder %s2859_s25, %s3644_s10 }
 0x708   : > { %p2861_p13 = pnand %p2860_p11, %p3801_p6 }
 0x709   : > { %p2866_p12 = por %p2865_p2, %p2864_p7 }
 0x70a   : > { %p2862_p4 = pneg %p2861_p13 }
 0x70b   : > { %p2868_p1 = por %p2867_p5, %p2866_p12 }
 0x70d   : > { %p2869_p0 = pnand %p2868_p1, %p2862_p4 }
 0x70f   : > { %2872 = shalt.err (!%p2869_p0)
}
 0x710   : > { %s2998_s1 = smov 128   ;;  %s2999_s21 = smov 8   ;;  %v1919_v53 = vcombine.high %v1894_v49, %v1910_v50  ;;  %v1920_v54 = vcombine.low %v1901_v51, %v1917_v52  ;;  %v1918_v55 = vcombine.low %v1894_v49, %v1910_v50  ;;  %v1921_v57 = vcombine.high %v1901_v51, %v1917_v52 }
 0x711   : > { %2439 = dma.vmem_to_hbm [thread:$0]  (%p3801_p6), %s3638_s23, 512, %s3644_s10, %s1946_s15, %s2998_s1, %s2998_s1, %s2999_s21   ;;  %vm1935_vm5 = vcmask 130048   ;;  %vm1937_vm6 = vcmask 195584  }
 0x712   : > { %1923 = vrot.lane.b32.xlu1 %v1919_v53, %s2999_s21  ;;  %s3000_s22 = smov 16   ;;  %s3001_s24 = smov 24  }
 0x713   : > { %1927 = vrot.lane.b32.xlu0 %v1920_v54, %s3000_s22  ;;  %s2254_s3 = sshll.u32 %s3799_s28, 7  ;;  %s549_s9 = scalar_lea.vmem [#allocation17], %s2205_s7 }
 0x714   : > { %s1960_s23 = sshll.u32 %s549_s9, 4  ;;  %s3802_s20 = sld [smem:[#allocation38_spill]]  ;;  %s3679_s23 = int_to_ptr.vmem [resolvable:$true] %s1960_s23 }
 0x715   : > { %s1941_s28 = scalar_lea.sflag [#allocation4], %s3386_s16  ;;  %s2873_s26 = scalar_lea.vmem %s3679_s23, 128 }
 0x716   : > { %1931 = vrot.lane.b32.xlu1 %v1921_v57, %s3001_s24  ;;  %p2874_p3 = scmp.ne.s32.totalorder %s3679_s23, %s2873_s26  ;;  %s3002_s7 = smov [#allocation17]  }
 0x717   : > { %s2877_s25 = sshll.u32 %s3002_s7, 4  ;;  %s2878_s25 = int_to_ptr.vmem [resolvable:$false] %s2877_s25 }
 0x718   : > { %p2875_p10 = pnand %p2874_p3, %p3801_p6  ;;  %s2879_s18 = scalar_lea.vmem %s2878_s25, 256 }
 0x719   : > { %p2880_p8 = scmp.lt.s32.totalorder %s3679_s23, %s2878_s25  ;;  %p2881_p11 = scmp.lt.s32.totalorder %s2879_s18, %s2873_s26 }
 0x71a   : > { %s3677_s5 = scalar_lea.hbm %s3802_s20, %s2254_s3  ;;  %p2876_p9 = pneg %p2875_p10 }
 0x71b   : > { %p2882_p13 = por %p2881_p11, %p2880_p8 }
 0x71d   : > { %p2883_p4 = pnand %p2882_p13, %p2876_p9 }
 0x784   : > { %v1924_v58 = vpop.permute.xlu1 %1923 }
 0x785   : > { %v1934_v60 = vsel %vm1204_vm4, %v1918_v55, %v1924_v58  ;;  %v1928_v59 = vpop.permute.xlu0 %1927 }
 0x786   : > { %v1936_v61 = vsel %vm1935_vm5, %v1934_v60, %v1928_v59 }
 0x788   : > { %v1932_v62 = vpop.permute.xlu1 %1931 }
 0x789   : > { %v1938_v0 = vsel %vm1937_vm6, %v1936_v61, %v1932_v62 }
 0x78a   : > { %1939 = vst.msk [vmem:[%s549_s9] sm:$0xff] %vm608_vm2, %v1938_v0 }
 0x78b   : > { %2886 = shalt.err (!%p2883_p4)
}
 0x78c   : > { %s2887_s16 = scalar_lea.hbm %s3677_s5, 128  ;;  %s2891_s11 = scalar_lea.hbm %s3802_s20, 256 }
 0x78d   : > { %p2888_p7 = scmp.ne.s32.totalorder %s3677_s5, %s2887_s16  ;;  %p2892_p5 = scmp.lt.u32.totalorder %s3677_s5, %s3802_s20 }
 0x78e   : > { %p2893_p1 = scmp.lt.u32.totalorder %s2891_s11, %s2887_s16  ;;  %p2895_p3 = scmp.lt.u32.totalorder %s2887_s16, %s3677_s5 }
 0x78f   : > { %p2889_p2 = pnand %p2888_p7, %p3801_p6 }
 0x790   : > { %p2894_p0 = por %p2893_p1, %p2892_p5 }
 0x791   : > { %p2890_p12 = pneg %p2889_p2 }
 0x792   : > { %p2896_p10 = por %p2895_p3, %p2894_p0 }
 0x794   : > { %p2897_p9 = pnand %p2896_p10, %p2890_p12 }
 0x796   : > { %2900 = shalt.err (!%p2897_p9)
}
 0x797   : > { %2438 = dma.vmem_to_hbm [thread:$0]  (%p3801_p6), %s3679_s23, 128, %s3677_s5, %s1941_s28  }
 0x798 PF: > { %s3803_s21 = sld [smem:[#allocation33_spill]]  ;;  %s3804_s22 = sld [smem:[#allocation29_spill]] }
 0x799   : > { %s1989_s24 = sand.u32 1, %s2955_s13  }
 0x79a   : > { %s1990_s3 = scalar_lea.sflag [#allocation4], %s1989_s24 }
 0x79e   : > { %p3805_p8 = scmp.ne.s32.totalorder %s3803_s21, 0  ;;  %p3806_p11 = scmp.ge.s32.totalorder %s3804_s22, 2 }
 0x7a0   : > { %p2472_p13 = pnand %p3806_p11, %p3805_p8 }
 0x7a2   : > { %2946 = dma.done.wait (!%p2472_p13), %s1990_s3, 128  }
 0x7a3   : > { %2948 = vsyncadd (!%p2472_p13), %s1990_s3, 4294967168  ;;  %s1999_s9 = scalar_lea.sflag [#allocation19], %s1989_s24 }
 0x7a4   : > { %2950 = dma.done.wait (!%p2472_p13), %s1999_s9, 512  }
 0x7a5   : > { %2952 = vsyncadd (!%p2472_p13), %s1999_s9, 4294966784  ;;  %s36_s18 = sadd.s32 1, %s3804_s22   ;;  %s3807_s29 = sld [smem:[#allocation27_spill]] }
 0x7a6   : > { %p33_p4 = scmp.ge.s32.totalorder %s36_s18, 4   ;;  %s3808_s15 = sld [smem:[#allocation32_spill]] }
 0x7a7   : > { %s3809_s23 = sld [smem:[#allocation31_spill]]  ;;  %s3810_s13 = smov %s2959_s14 }
 0x7a8   : > { %s3812_s16 = smov %s2971_s17  ;;  %35 = sbr.rel (!%p33_p4) target bundleno = 20 (0x14), region = 166 }
 0x7ab   : > { %s3811_s14 = smov %s3807_s29 }
 0x7ad   : > { %s3813_s17 = smov %s3809_s23 }
 0x7af   :  { %2004 = vsyncpa [#allocation3], 1 }
 0x7b0   :  { %2006 = vsyncpa [#allocation3 + $0x1], 1 }
 0x7b1   :  { %2007 = vsyncpa [#allocation6], 1 }
 0x7b2   :  { %2009 = vsyncpa [#allocation6 + $0x1], 1 }
 0x7b3   :  { %2010 = vsyncpa [#allocation9], 1 }
 0x7b4   :  { %2011 = vsyncpa [#allocation12], 1 }
 0x7b5   :  { %2012 = vsyncpa [#allocation15], 1 }
 0x7b6   :  { %2013 = vsyncpa [#allocation4], 1 }
 0x7b7   :  { %2015 = vsyncpa [#allocation4 + $0x1], 1 }
 0x7b8   :  { %2016 = vsyncpa [#allocation19], 1 }
 0x7b9   :  { %2018 = vsyncpa [#allocation19 + $0x1], 1 }

</bundles_post_ra>
